<compile_context>
chip_gen: v7x
topology: tpu7x:2x2x1
jax: 0.10.0
libtpu: 0.0.40
codegen_flags: <defaults>
</compile_context>

<pallas_src>
import numpy as np
import jax
import jax.numpy as jnp
from jax import lax
from jax.experimental import pallas as pl
from jax.experimental.pallas import tpu as pltpu

EPS = 1e-6
NUM_GROUPS = 32

# Flipped off automatically if pl.Buffered(1) is not supported by this JAX.
_BUFFERED_CONSTANTS = [True]


# ----------------------------------------------------------------------------
# Small host-side helpers.
# ----------------------------------------------------------------------------
def _vmem_limit_bytes():
    """Per-generation scoped VMEM limit: ~3/4 of physical, capped at 100 MiB."""
    try:
        phys = int(pltpu.get_tpu_info().vmem_capacity_bytes)
    except Exception:
        phys = 64 * 1024 * 1024  # conservative (v7x per-core VMEM)
    return min(100 * 1024 * 1024, (phys * 3) // 4)


def _const_spec(shape, index_map, buffered):
    """BlockSpec for a grid-constant operand; single-buffered when supported."""
    if buffered:
        return pl.BlockSpec(shape, index_map, pipeline_mode=pl.Buffered(1))
    return pl.BlockSpec(shape, index_map)


def _call_maybe_buffered(build, args):
    """Call build(True)(*args); fall back to build(False) if Buffered(1) fails."""
    if _BUFFERED_CONSTANTS[0]:
        try:
            return build(True)(*args)
        except Exception:
            _BUFFERED_CONSTANTS[0] = False
    return build(False)(*args)


def _nbytes(a):
    return int(np.prod(a.shape)) * np.dtype(a.dtype).itemsize


def _pick_nb(N, H, W, per_img_bytes, fixed_bytes, budget, target_rows=512):
    """Images per grid step: VMEM-feasible, grid>=2 when possible, M>=target."""
    divisors = [d for d in range(1, N + 1) if N % d == 0]
    feas = [d for d in divisors if fixed_bytes + d * per_img_bytes <= budget] or [1]
    # Keep >= 2 grid steps when N allows: enables BlockSpec double-buffering and
    # lets v7x shard the "parallel" axis across its 2 TensorCores.
    cand = [d for d in feas if N // d >= 2] or feas
    for d in cand:
        if d * H * W >= target_rows:
            return d
    return cand[-1]


def _plan_nb(N, H, W, cin, cmid, cout, budget, h_bytes=2):
    """Budget the heaviest steady-state kernel (GN2 + conv2 + shortcut)."""
    per_img = H * W * (cmid * h_bytes * 2 + cin * 4 * 2 + cout * 4 * 2) \
              + (H + 2) * (W + 2) * cmid * 2
    fixed = 2 * 2 * (9 * cmid * cout + 9 * cin * cout + cin * cout) \
            + 4 * (2 * NUM_GROUPS * (cin + cmid) + 8 * (cin + cmid + 3 * cout))
    return _pick_nb(N, H, W, per_img, fixed, budget)


def _convshort_fits(nb, H, W, cin, cout, h_bytes, budget):
    per_img = H * W * (cout * h_bytes * 2 + cin * 4 * 2 + cout * 4 * 2) \
              + (H + 2) * (W + 2) * (cout + cin) * 2
    fixed = 2 * 2 * 9 * cout * (cout + cin)
    return fixed + nb * per_img <= budget


# ----------------------------------------------------------------------------
# In-kernel helpers (traced inside Pallas kernels).
# ----------------------------------------------------------------------------
def _gn_swish(x, gamma, beta, smat, emat):
    """GroupNorm(32, C, eps=1e-6, affine) + swish. x: (nb,H,W,C) -> (nb,H*W,C) f32."""
    nb, H, W, C = x.shape
    inv_hw = 1.0 / float(H * W)
    xf = x.reshape(nb, H * W, C).astype(jnp.float32)
    s = jnp.sum(xf, axis=1)                          # (nb, C)
    sq = jnp.sum(xf * xf, axis=1)                    # (nb, C)
    # smat: (C, G) one-hot scaled by 1/C_per_group; emat: (G, C) one-hot.
    mean = jnp.dot(jnp.dot(s, smat, preferred_element_type=jnp.float32), emat,
                   preferred_element_type=jnp.float32) * inv_hw     # (nb, C)
    msq = jnp.dot(jnp.dot(sq, smat, preferred_element_type=jnp.float32), emat,
                  preferred_element_type=jnp.float32) * inv_hw      # (nb, C)
    # Single-pass E[x^2]-E[x]^2 in f32 with >=0 clamp; swap to shifted two-pass
    # variance if tight parity with PyTorch GroupNorm is ever required.
    var = jnp.maximum(msq - mean * mean, 0.0)
    inv = lax.rsqrt(var + EPS)
    y = (xf - mean[:, None, :]) * inv[:, None, :] * gamma + beta
    return y * jax.nn.sigmoid(y)                     # swish, (nb, H*W, C) f32


def _pad_into_scratch(pad_ref, y4):
    """Zero-pad y4 (nb,H,W,C) by 1 pixel into the bf16 VMEM scratch pad_ref.

    The full scratch is zeroed only on the first grid step; subsequent steps
    only overwrite the interior so the 1-pixel border stays zero.
    """
    nb, H, W, _ = y4.shape

    @pl.when(pl.program_id(0) == 0)
    def _():
        pad_ref[...] = jnp.zeros(pad_ref.shape, pad_ref.dtype)

    pad_ref[:, 1:H + 1, 1:W + 1, :] = y4.astype(pad_ref.dtype)


def _conv3x3_taps(pad_ref, w_ref, nb, H, W, cin, cout):
    """3x3 conv as 9 accumulating MXU matmuls (K=cin) on direct Ref slices.

    pad_ref: (nb,H+2,W+2,cin) bf16 VMEM scratch; w_ref: (9,cin,cout) bf16.
    """
    acc = jnp.zeros((nb * H * W, cout), jnp.float32)
    for dy in range(3):
        for dx in range(3):
            tap = pad_ref[:, dy:dy + H, dx:dx + W, :]        # (nb, H, W, cin)
            acc = acc + jnp.dot(tap.reshape(nb * H * W, cin), w_ref[dy * 3 + dx],
                                preferred_element_type=jnp.float32)
    return acc                                               # (nb*H*W, cout) f32


# ----------------------------------------------------------------------------
# Kernel 1: GN1 + swish + conv1 (3x3) + fused temb projection.
# ----------------------------------------------------------------------------
def _gn_conv1_kernel(x_ref, g_ref, b_ref, smat_ref, emat_ref, w_ref, bias_ref,
                     temb_ref, tw_ref, o_ref, pad_ref):
    nb, H, W, Cin = x_ref.shape
    Cout = o_ref.shape[-1]
    y = _gn_swish(x_ref[...], g_ref[...], b_ref[...], smat_ref[...], emat_ref[...])
    _pad_into_scratch(pad_ref, y.reshape(nb, H, W, Cin))
    acc = _conv3x3_taps(pad_ref, w_ref, nb, H, W, Cin, Cout)
    # temb projection fused: swish(temb) @ W_t; temb bias folded into bias_ref.
    t = temb_ref[...].reshape(nb, -1).astype(jnp.float32)
    t = t * jax.nn.sigmoid(t)
    tp = jnp.dot(t.astype(jnp.bfloat16), tw_ref[...],
                 preferred_element_type=jnp.float32)                 # (nb, Cout)
    acc = acc.reshape(nb, H * W, Cout) + bias_ref[...] + tp[:, None, :]
    o_ref[...] = acc.reshape(nb, H, W, Cout).astype(o_ref.dtype)


# ----------------------------------------------------------------------------
# Kernel 2a: GN2 + swish + conv2 (3x3) + fused nin_shortcut (1x1 on x) + add.
# ----------------------------------------------------------------------------
def _gn_conv2_nin_kernel(h_ref, g_ref, b_ref, smat_ref, emat_ref, w_ref, bias_ref,
                         x_ref, ninw_ref, ninb_ref, o_ref, pad_ref):
    nb, H, W, Cmid = h_ref.shape
    Cin = x_ref.shape[-1]
    Cout = o_ref.shape[-1]
    y = _gn_swish(h_ref[...], g_ref[...], b_ref[...], smat_ref[...], emat_ref[...])
    # TODO(synk): Dropout is identity in inference mode; no RNG masking applied.
    _pad_into_scratch(pad_ref, y.reshape(nb, H, W, Cmid))
    acc = _conv3x3_taps(pad_ref, w_ref, nb, H, W, Cmid, Cout)
    xs = jnp.dot(x_ref[...].reshape(nb * H * W, Cin).astype(jnp.bfloat16),
                 ninw_ref[...], preferred_element_type=jnp.float32) + ninb_ref[...]
    acc = acc + bias_ref[...] + xs
    o_ref[...] = acc.reshape(nb, H, W, Cout).astype(o_ref.dtype)


# ----------------------------------------------------------------------------
# Kernel 2b: GN2 + swish + conv2 (3x3) + precomputed / identity residual add.
# ----------------------------------------------------------------------------
def _gn_conv2_res_kernel(h_ref, g_ref, b_ref, smat_ref, emat_ref, w_ref, bias_ref,
                         res_ref, o_ref, pad_ref):
    nb, H, W, Cmid = h_ref.shape
    Cout = o_ref.shape[-1]
    y = _gn_swish(h_ref[...], g_ref[...], b_ref[...], smat_ref[...], emat_ref[...])
    _pad_into_scratch(pad_ref, y.reshape(nb, H, W, Cmid))
    acc = _conv3x3_taps(pad_ref, w_ref, nb, H, W, Cmid, Cout)
    res = res_ref[...].reshape(nb * H * W, Cout).astype(jnp.float32)
    acc = acc + bias_ref[...] + res
    o_ref[...] = acc.reshape(nb, H, W, Cout).astype(o_ref.dtype)


# ----------------------------------------------------------------------------
# Kernel 2c: GN2 + swish + conv2 (3x3) + fused conv_shortcut (3x3 on x) + add.
# ----------------------------------------------------------------------------
def _gn_conv2_convshort_kernel(h_ref, g_ref, b_ref, smat_ref, emat_ref, w_ref,
                               bias_ref, x_ref, sw_ref, sbias_ref, o_ref,
                               pad_h_ref, pad_x_ref):
    nb, H, W, Cmid = h_ref.shape
    Cin = x_ref.shape[-1]
    Cout = o_ref.shape[-1]
    y = _gn_swish(h_ref[...], g_ref[...], b_ref[...], smat_ref[...], emat_ref[...])
    _pad_into_scratch(pad_h_ref, y.reshape(nb, H, W, Cmid))
    acc = _conv3x3_taps(pad_h_ref, w_ref, nb, H, W, Cmid, Cout)
    _pad_into_scratch(pad_x_ref, x_ref[...])
    acc = acc + _conv3x3_taps(pad_x_ref, sw_ref, nb, H, W, Cin, Cout)
    acc = acc + bias_ref[...] + sbias_ref[...]
    o_ref[...] = acc.reshape(nb, H, W, Cout).astype(o_ref.dtype)


# ----------------------------------------------------------------------------
# Kernel 3: plain 3x3 conv (fallback for use_conv_shortcut when fusion OOMs).
# ----------------------------------------------------------------------------
def _conv3x3_kernel(x_ref, w_ref, bias_ref, o_ref, pad_ref):
    nb, H, W, Cin = x_ref.shape
    Cout = o_ref.shape[-1]
    _pad_into_scratch(pad_ref, x_ref[...])
    acc = _conv3x3_taps(pad_ref, w_ref, nb, H, W, Cin, Cout)
    acc = acc + bias_ref[...]
    o_ref[...] = acc.reshape(nb, H, W, Cout).astype(o_ref.dtype)


# ----------------------------------------------------------------------------
# Wrappers (BlockSpecs / grids).
# ----------------------------------------------------------------------------
def gn_swish_conv1_temb(x, prep, temb3, *, nb, vmem_limit, out_dtype):
    N, H, W, Cin = x.shape
    w9 = prep["conv1_w9"]
    Cout = w9.shape[-1]
    T = prep["temb_w"].shape[0]
    cost = pl.CostEstimate(
        flops=2 * N * H * W * 9 * Cin * Cout + 2 * N * T * Cout,
        transcendentals=N * H * W * Cin + N * T,
        bytes_accessed=_nbytes(x) + N * H * W * Cout * np.dtype(out_dtype).itemsize
                       + _nbytes(w9) + _nbytes(prep["temb_w"]))

    def build(buffered):
        cs = lambda shape, imap: _const_spec(shape, imap, buffered)
        return pl.pallas_call(
            _gn_conv1_kernel,
            out_shape=jax.ShapeDtypeStruct((N, H, W, Cout), out_dtype),
            grid=(N // nb,),
            in_specs=[
                pl.BlockSpec((nb, H, W, Cin), lambda n: (n, 0, 0, 0)),
                cs((1, Cin), lambda n: (0, 0)),
                cs((1, Cin), lambda n: (0, 0)),
                cs((Cin, NUM_GROUPS), lambda n: (0, 0)),
                cs((NUM_GROUPS, Cin), lambda n: (0, 0)),
                cs((9, Cin, Cout), lambda n: (0, 0, 0)),
                cs((1, Cout), lambda n: (0, 0)),
                pl.BlockSpec((nb, 1, T), lambda n: (n, 0, 0)),
                cs((T, Cout), lambda n: (0, 0)),
            ],
            out_specs=pl.BlockSpec((nb, H, W, Cout), lambda n: (n, 0, 0, 0)),
            scratch_shapes=[pltpu.VMEM((nb, H + 2, W + 2, Cin), jnp.bfloat16)],
            compiler_params=pltpu.CompilerParams(
                dimension_semantics=("parallel",), vmem_limit_bytes=vmem_limit),
            cost_estimate=cost,
        )

    args = (x, prep["norm1_gamma"], prep["norm1_beta"], prep["smat1"], prep["emat1"],
            w9, prep["conv1_bias"], temb3, prep["temb_w"])
    return _call_maybe_buffered(build, args)


def gn_swish_conv2_nin(h, prep, x, *, nb, vmem_limit):
    N, H, W, Cmid = h.shape
    Cin = x.shape[-1]
    w9 = prep["conv2_w9"]
    Cout = w9.shape[-1]
    cost = pl.CostEstimate(
        flops=2 * N * H * W * (9 * Cmid + Cin) * Cout,
        transcendentals=N * H * W * Cmid,
        bytes_accessed=_nbytes(h) + _nbytes(x) + N * H * W * Cout * 4 + _nbytes(w9))

    def build(buffered):
        cs = lambda shape, imap: _const_spec(shape, imap, buffered)
        return pl.pallas_call(
            _gn_conv2_nin_kernel,
            out_shape=jax.ShapeDtypeStruct((N, H, W, Cout), jnp.float32),
            grid=(N // nb,),
            in_specs=[
                pl.BlockSpec((nb, H, W, Cmid), lambda n: (n, 0, 0, 0)),
                cs((1, Cmid), lambda n: (0, 0)),
                cs((1, Cmid), lambda n: (0, 0)),
                cs((Cmid, NUM_GROUPS), lambda n: (0, 0)),
                cs((NUM_GROUPS, Cmid), lambda n: (0, 0)),
                cs((9, Cmid, Cout), lambda n: (0, 0, 0)),
                cs((1, Cout), lambda n: (0, 0)),
                pl.BlockSpec((nb, H, W, Cin), lambda n: (n, 0, 0, 0)),
                cs((Cin, Cout), lambda n: (0, 0)),
                cs((1, Cout), lambda n: (0, 0)),
            ],
            out_specs=pl.BlockSpec((nb, H, W, Cout), lambda n: (n, 0, 0, 0)),
            scratch_shapes=[pltpu.VMEM((nb, H + 2, W + 2, Cmid), jnp.bfloat16)],
            compiler_params=pltpu.CompilerParams(
                dimension_semantics=("parallel",), vmem_limit_bytes=vmem_limit),
            cost_estimate=cost,
        )

    args = (h, prep["norm2_gamma"], prep["norm2_beta"], prep["smat2"], prep["emat2"],
            w9, prep["conv2_bias"], x, prep["nin_w"], prep["nin_b"])
    return _call_maybe_buffered(build, args)


def gn_swish_conv2_res(h, prep, residual, *, nb, vmem_limit):
    N, H, W, Cmid = h.shape
    w9 = prep["conv2_w9"]
    Cout = w9.shape[-1]
    cost = pl.CostEstimate(
        flops=2 * N * H * W * 9 * Cmid * Cout,
        transcendentals=N * H * W * Cmid,
        bytes_accessed=_nbytes(h) + _nbytes(residual) + N * H * W * Cout * 4 + _nbytes(w9))

    def build(buffered):
        cs = lambda shape, imap: _const_spec(shape, imap, buffered)
        return pl.pallas_call(
            _gn_conv2_res_kernel,
            out_shape=jax.ShapeDtypeStruct((N, H, W, Cout), jnp.float32),
            grid=(N // nb,),
            in_specs=[
                pl.BlockSpec((nb, H, W, Cmid), lambda n: (n, 0, 0, 0)),
                cs((1, Cmid), lambda n: (0, 0)),
                cs((1, Cmid), lambda n: (0, 0)),
                cs((Cmid, NUM_GROUPS), lambda n: (0, 0)),
                cs((NUM_GROUPS, Cmid), lambda n: (0, 0)),
                cs((9, Cmid, Cout), lambda n: (0, 0, 0)),
                cs((1, Cout), lambda n: (0, 0)),
                pl.BlockSpec((nb, H, W, Cout), lambda n: (n, 0, 0, 0)),
            ],
            out_specs=pl.BlockSpec((nb, H, W, Cout), lambda n: (n, 0, 0, 0)),
            scratch_shapes=[pltpu.VMEM((nb, H + 2, W + 2, Cmid), jnp.bfloat16)],
            compiler_params=pltpu.CompilerParams(
                dimension_semantics=("parallel",), vmem_limit_bytes=vmem_limit),
            cost_estimate=cost,
        )

    args = (h, prep["norm2_gamma"], prep["norm2_beta"], prep["smat2"], prep["emat2"],
            w9, prep["conv2_bias"], residual)
    return _call_maybe_buffered(build, args)


def gn_swish_conv2_convshort(h, prep, x, *, nb, vmem_limit):
    N, H, W, Cmid = h.shape
    Cin = x.shape[-1]
    w9 = prep["conv2_w9"]
    sw9 = prep["short_w9"]
    Cout = w9.shape[-1]
    cost = pl.CostEstimate(
        flops=2 * N * H * W * 9 * (Cmid + Cin) * Cout,
        transcendentals=N * H * W * Cmid,
        bytes_accessed=_nbytes(h) + _nbytes(x) + N * H * W * Cout * 4
                       + _nbytes(w9) + _nbytes(sw9))

    def build(buffered):
        cs = lambda shape, imap: _const_spec(shape, imap, buffered)
        return pl.pallas_call(
            _gn_conv2_convshort_kernel,
            out_shape=jax.ShapeDtypeStruct((N, H, W, Cout), jnp.float32),
            grid=(N // nb,),
            in_specs=[
                pl.BlockSpec((nb, H, W, Cmid), lambda n: (n, 0, 0, 0)),
                cs((1, Cmid), lambda n: (0, 0)),
                cs((1, Cmid), lambda n: (0, 0)),
                cs((Cmid, NUM_GROUPS), lambda n: (0, 0)),
                cs((NUM_GROUPS, Cmid), lambda n: (0, 0)),
                cs((9, Cmid, Cout), lambda n: (0, 0, 0)),
                cs((1, Cout), lambda n: (0, 0)),
                pl.BlockSpec((nb, H, W, Cin), lambda n: (n, 0, 0, 0)),
                cs((9, Cin, Cout), lambda n: (0, 0, 0)),
                cs((1, Cout), lambda n: (0, 0)),
            ],
            out_specs=pl.BlockSpec((nb, H, W, Cout), lambda n: (n, 0, 0, 0)),
            scratch_shapes=[pltpu.VMEM((nb, H + 2, W + 2, Cmid), jnp.bfloat16),
                            pltpu.VMEM((nb, H + 2, W + 2, Cin), jnp.bfloat16)],
            compiler_params=pltpu.CompilerParams(
                dimension_semantics=("parallel",), vmem_limit_bytes=vmem_limit),
            cost_estimate=cost,
        )

    args = (h, prep["norm2_gamma"], prep["norm2_beta"], prep["smat2"], prep["emat2"],
            w9, prep["conv2_bias"], x, sw9, prep["short_bias"])
    return _call_maybe_buffered(build, args)


def conv3x3(x, w9, bias, *, nb, vmem_limit):
    N, H, W, Cin = x.shape
    Cout = w9.shape[-1]
    cost = pl.CostEstimate(
        flops=2 * N * H * W * 9 * Cin * Cout, transcendentals=0,
        bytes_accessed=_nbytes(x) + N * H * W * Cout * 4 + _nbytes(w9))

    def build(buffered):
        cs = lambda shape, imap: _const_spec(shape, imap, buffered)
        return pl.pallas_call(
            _conv3x3_kernel,
            out_shape=jax.ShapeDtypeStruct((N, H, W, Cout), jnp.float32),
            grid=(N // nb,),
            in_specs=[
                pl.BlockSpec((nb, H, W, Cin), lambda n: (n, 0, 0, 0)),
                cs((9, Cin, Cout), lambda n: (0, 0, 0)),
                cs((1, Cout), lambda n: (0, 0)),
            ],
            out_specs=pl.BlockSpec((nb, H, W, Cout), lambda n: (n, 0, 0, 0)),
            scratch_shapes=[pltpu.VMEM((nb, H + 2, W + 2, Cin), jnp.bfloat16)],
            compiler_params=pltpu.CompilerParams(
                dimension_semantics=("parallel",), vmem_limit_bytes=vmem_limit),
            cost_estimate=cost,
        )

    return _call_maybe_buffered(build, (x, w9, bias))


# ----------------------------------------------------------------------------
# Parameter preprocessing (done once, outside the forward pass).
# ----------------------------------------------------------------------------
def prepare_params(params, *, in_channels, out_channels, has_temb=True,
                   temb_dummy_dim=128):
    def gmats(C):
        cg = C // NUM_GROUPS
        grp = jnp.arange(C) // cg
        onehot = (grp[:, None] == jnp.arange(NUM_GROUPS)[None, :]).astype(jnp.float32)
        return onehot / float(cg), onehot.T        # (C, G), (G, C)

    smat1, emat1 = gmats(in_channels)
    smat2, emat2 = gmats(out_channels)
    if has_temb:
        temb_w = params["temb_w"].astype(jnp.bfloat16)
        conv1_bias = (params["conv1_b"] + params["temb_b"]).reshape(1, -1)
    else:
        temb_w = jnp.zeros((temb_dummy_dim, out_channels), jnp.bfloat16)
        conv1_bias = params["conv1_b"].reshape(1, -1)

    prep = {
        "norm1_gamma": params["norm1_gamma"].reshape(1, -1).astype(jnp.float32),
        "norm1_beta": params["norm1_beta"].reshape(1, -1).astype(jnp.float32),
        "smat1": smat1, "emat1": emat1,
        "conv1_w9": params["conv1_w"].reshape(9, in_channels, out_channels).astype(jnp.bfloat16),
        "conv1_bias": conv1_bias.astype(jnp.float32),
        "temb_w": temb_w,
        "norm2_gamma": params["norm2_gamma"].reshape(1, -1).astype(jnp.float32),
        "norm2_beta": params["norm2_beta"].reshape(1, -1).astype(jnp.float32),
        "smat2": smat2, "emat2": emat2,
        "conv2_w9": params["conv2_w"].reshape(9, out_channels, out_channels).astype(jnp.bfloat16),
        "conv2_bias": params["conv2_b"].reshape(1, -1).astype(jnp.float32),
    }
    if "nin_w" in params:
        prep["nin_w"] = params["nin_w"].astype(jnp.bfloat16)
        prep["nin_b"] = params["nin_b"].reshape(1, -1).astype(jnp.float32)
    if "short_w" in params:
        prep["short_w9"] = params["short_w"].reshape(9, in_channels, out_channels).astype(jnp.bfloat16)
        prep["short_bias"] = params["short_b"].reshape(1, -1).astype(jnp.float32)
    return prep


# ----------------------------------------------------------------------------
# ResnetBlock forward (inference).
# ----------------------------------------------------------------------------
def resnet_block_forward_nhwc(prep, x, temb, *, in_channels, out_channels,
                              use_conv_shortcut=False, h_dtype=jnp.bfloat16):
    N, H, W, _ = x.shape
    vmem_limit = _vmem_limit_bytes()
    budget = int(vmem_limit * 0.85)
    nb = _plan_nb(N, H, W, in_channels, out_channels, out_channels, budget,
                  h_bytes=np.dtype(h_dtype).itemsize)

    T = prep["temb_w"].shape[0]
    if temb is not None:
        temb3 = temb.reshape(N, 1, T).astype(jnp.float32)
    else:
        temb3 = jnp.zeros((N, 1, T), jnp.float32)

    h = gn_swish_conv1_temb(x, prep, temb3, nb=nb, vmem_limit=vmem_limit,
                            out_dtype=h_dtype)

    if in_channels != out_channels:
        if use_conv_shortcut:
            if _convshort_fits(nb, H, W, in_channels, out_channels,
                               np.dtype(h_dtype).itemsize, budget):
                out = gn_swish_conv2_convshort(h, prep, x, nb=nb, vmem_limit=vmem_limit)
            else:
                xs = conv3x3(x, prep["short_w9"], prep["short_bias"],
                             nb=nb, vmem_limit=vmem_limit)
                out = gn_swish_conv2_res(h, prep, xs, nb=nb, vmem_limit=vmem_limit)
        else:
            out = gn_swish_conv2_nin(h, prep, x, nb=nb, vmem_limit=vmem_limit)
    else:
        out = gn_swish_conv2_res(h, prep, x, nb=nb, vmem_limit=vmem_limit)
    return out


def resnet_block_forward(prep, x_nchw, temb, *, in_channels, out_channels,
                         use_conv_shortcut=False):
    # NCHW <-> NHWC only at the PyTorch-compatibility boundary.
    x = jnp.transpose(x_nchw, (0, 2, 3, 1))
    out = resnet_block_forward_nhwc(prep, x, temb, in_channels=in_channels,
                                    out_channels=out_channels,
                                    use_conv_shortcut=use_conv_shortcut)
    return jnp.transpose(out, (0, 3, 1, 2))


# ----------------------------------------------------------------------------
# Pure-JAX f32 reference (for correctness check).
# ----------------------------------------------------------------------------
def ref_forward(params, x, temb, *, in_channels, out_channels,
                use_conv_shortcut=False):
    def gn(v, g, b):
        N, C, H, W = v.shape
        G = NUM_GROUPS
        vr = v.reshape(N, G, C // G, H, W)
        mean = vr.mean(axis=(2, 3, 4), keepdims=True)
        var = vr.var(axis=(2, 3, 4), keepdims=True)
        vn = ((vr - mean) / jnp.sqrt(var + EPS)).reshape(N, C, H, W)
        return vn * g[None, :, None, None] + b[None, :, None, None]

    def swish(v):
        return v * jax.nn.sigmoid(v)

    def conv(v, w, b):
        y = lax.conv_general_dilated(v, w, (1, 1), "SAME",
                                     dimension_numbers=("NCHW", "HWIO", "NCHW"))
        return y + b[None, :, None, None]

    h = conv(swish(gn(x, params["norm1_gamma"], params["norm1_beta"])),
             params["conv1_w"], params["conv1_b"])
    if temb is not None:
        tp = swish(temb) @ params["temb_w"] + params["temb_b"]
        h = h + tp[:, :, None, None]
    h = swish(gn(h, params["norm2_gamma"], params["norm2_beta"]))
    h = conv(h, params["conv2_w"], params["conv2_b"])
    if in_channels != out_channels:
        if use_conv_shortcut:
            xs = conv(x, params["short_w"], params["short_b"])
        else:
            xs = jnp.einsum("nchw,co->nohw", x, params["nin_w"]) \
                 + params["nin_b"][None, :, None, None]
    else:
        xs = x
    return xs + h


def make_params(key, in_c, out_c, temb_c):
    ks = jax.random.split(key, 10)
    s = 0.05
    return {
        "norm1_gamma": jnp.ones((in_c,), jnp.float32),
        "norm1_beta": jnp.zeros((in_c,), jnp.float32),
        "conv1_w": s * jax.random.normal(ks[0], (3, 3, in_c, out_c), jnp.float32),
        "conv1_b": s * jax.random.normal(ks[1], (out_c,), jnp.float32),
        "temb_w": s * jax.random.normal(ks[2], (temb_c, out_c), jnp.float32),
        "temb_b": s * jax.random.normal(ks[3], (out_c,), jnp.float32),
        "norm2_gamma": jnp.ones((out_c,), jnp.float32),
        "norm2_beta": jnp.zeros((out_c,), jnp.float32),
        "conv2_w": s * jax.random.normal(ks[4], (3, 3, out_c, out_c), jnp.float32),
        "conv2_b": s * jax.random.normal(ks[5], (out_c,), jnp.float32),
        "nin_w": s * jax.random.normal(ks[6], (in_c, out_c), jnp.float32),
        "nin_b": s * jax.random.normal(ks[7], (out_c,), jnp.float32),
        "short_w": s * jax.random.normal(ks[8], (3, 3, in_c, out_c), jnp.float32),
        "short_b": s * jax.random.normal(ks[9], (out_c,), jnp.float32),
    }


if __name__ == "__main__":
    # GroupNorm(32) requires channels % 32 == 0. Cout=128 keeps the output
    # lane dimension dense (no masked partial stores).
    N, IN_C, OUT_C, H, W, TEMB_C = 2, 64, 128, 8, 8, 128

    key = jax.random.PRNGKey(0)
    kx, kt, kp = jax.random.split(key, 3)
    x = jax.random.normal(kx, (N, IN_C, H, W), jnp.float32)      # NCHW like PyTorch
    temb = jax.random.normal(kt, (N, TEMB_C), jnp.float32)
    params = make_params(kp, IN_C, OUT_C, TEMB_C)
    prep = prepare_params(params, in_channels=IN_C, out_channels=OUT_C, has_temb=True)

    # nin_shortcut path (in_channels != out_channels, conv_shortcut=False)
    out = resnet_block_forward(prep, x, temb,
                               in_channels=IN_C, out_channels=OUT_C)
    out = jax.block_until_ready(out)
    ref = ref_forward(params, x, temb, in_channels=IN_C, out_channels=OUT_C)
    assert out.shape == (N, OUT_C, H, W)
    err = jnp.max(jnp.abs(out - ref))
    # bf16 matmul operands + bf16 intermediate h (f32 accumulation) -> loose tol.
    assert jnp.allclose(out, ref, rtol=5e-2, atol=5e-2), \
        f"nin path max abs err {err}"

    # conv_shortcut path (exercises the fused conv2+conv_shortcut kernel)
    out_cs = resnet_block_forward(prep, x, temb, in_channels=IN_C,
                                  out_channels=OUT_C, use_conv_shortcut=True)
    out_cs = jax.block_until_ready(out_cs)
    ref_cs = ref_forward(params, x, temb, in_channels=IN_C, out_channels=OUT_C,
                         use_conv_shortcut=True)
    err_cs = jnp.max(jnp.abs(out_cs - ref_cs))
    assert jnp.allclose(out_cs, ref_cs, rtol=5e-2, atol=5e-2), \
        f"conv_shortcut path max abs err {err_cs}"

    print("KERNEL_OK")
</pallas_src>

<mosaic_0001>
module attributes {stable_mosaic.version = 11 : i64} {
  func.func @_gn_conv1_kernel(%arg0: i32, %arg1: memref<1x8x8x64xf32, #tpu.memory_space<vmem>>, %arg2: memref<1x64xf32, #tpu.memory_space<vmem>>, %arg3: memref<1x64xf32, #tpu.memory_space<vmem>>, %arg4: memref<64x32xf32, #tpu.memory_space<vmem>>, %arg5: memref<32x64xf32, #tpu.memory_space<vmem>>, %arg6: memref<9x64x128xbf16, #tpu.memory_space<vmem>>, %arg7: memref<1x128xf32, #tpu.memory_space<vmem>>, %arg8: memref<1x1x128xf32, #tpu.memory_space<vmem>>, %arg9: memref<128x128xbf16, #tpu.memory_space<vmem>>, %arg10: memref<1x8x8x128xbf16, #tpu.memory_space<vmem>>, %arg11: memref<1x10x10x64xbf16, #tpu.memory_space<vmem>>) attributes {dimension_semantics = [#tpu.dimension_semantics<parallel>], iteration_bounds = array<i64: 2>, scalar_prefetch = 0 : i64, scratch_operands = 1 : i64, tpu.core_type = #tpu.core_type<tc>, window_params = [{transform_indices = @transform_0, window_bounds = array<i64: 1, 8, 8, 64>}, {pipeline_mode = #tpu.pipeline_mode<synchronous>, transform_indices = @transform_1, window_bounds = array<i64: 1, 64>}, {pipeline_mode = #tpu.pipeline_mode<synchronous>, transform_indices = @transform_2, window_bounds = array<i64: 1, 64>}, {pipeline_mode = #tpu.pipeline_mode<synchronous>, transform_indices = @transform_3, window_bounds = array<i64: 64, 32>}, {pipeline_mode = #tpu.pipeline_mode<synchronous>, transform_indices = @transform_4, window_bounds = array<i64: 32, 64>}, {pipeline_mode = #tpu.pipeline_mode<synchronous>, transform_indices = @transform_5, window_bounds = array<i64: 9, 64, 128>}, {pipeline_mode = #tpu.pipeline_mode<synchronous>, transform_indices = @transform_6, window_bounds = array<i64: 1, 128>}, {transform_indices = @transform_7, window_bounds = array<i64: 1, 1, 128>}, {pipeline_mode = #tpu.pipeline_mode<synchronous>, transform_indices = @transform_8, window_bounds = array<i64: 128, 128>}, {transform_indices = @transform_9, window_bounds = array<i64: 1, 8, 8, 128>}]} {
    %c0 = arith.constant 0 : index
    %c0_0 = arith.constant 0 : index
    %c0_1 = arith.constant 0 : index
    %c0_2 = arith.constant 0 : index
    %0 = vector.load %arg1[%c0, %c0_0, %c0_1, %c0_2] : memref<1x8x8x64xf32, #tpu.memory_space<vmem>>, vector<1x8x8x64xf32>
    %c0_3 = arith.constant 0 : index
    %c0_4 = arith.constant 0 : index
    %1 = vector.load %arg2[%c0_3, %c0_4] : memref<1x64xf32, #tpu.memory_space<vmem>>, vector<1x64xf32>
    %c0_5 = arith.constant 0 : index
    %c0_6 = arith.constant 0 : index
    %2 = vector.load %arg3[%c0_5, %c0_6] : memref<1x64xf32, #tpu.memory_space<vmem>>, vector<1x64xf32>
    %c0_7 = arith.constant 0 : index
    %c0_8 = arith.constant 0 : index
    %3 = vector.load %arg4[%c0_7, %c0_8] : memref<64x32xf32, #tpu.memory_space<vmem>>, vector<64x32xf32>
    %c0_9 = arith.constant 0 : index
    %c0_10 = arith.constant 0 : index
    %4 = vector.load %arg5[%c0_9, %c0_10] : memref<32x64xf32, #tpu.memory_space<vmem>>, vector<32x64xf32>
    %5 = vector.shape_cast %0 : vector<1x8x8x64xf32> to vector<1x64x64xf32>
    %cst = arith.constant dense<0.000000e+00> : vector<1x64xf32>
    %6 = vector.multi_reduction <add>, %5, %cst [1] : vector<1x64x64xf32> to vector<1x64xf32>
    %7 = arith.mulf %5, %5 : vector<1x64x64xf32>
    %cst_11 = arith.constant dense<0.000000e+00> : vector<1x64xf32>
    %8 = vector.multi_reduction <add>, %7, %cst_11 [1] : vector<1x64x64xf32> to vector<1x64xf32>
    %cst_12 = arith.constant dense<0.000000e+00> : vector<1x32xf32>
    %9 = tpu.matmul %6, %3, %cst_12 {dimension_numbers = #tpu.dot_dimension_numbers<[1], [0], [0], [1], [0, 0, 1, 1], [], []>} : vector<1x64xf32>, vector<64x32xf32>, vector<1x32xf32> -> vector<1x32xf32>
    %cst_13 = arith.constant dense<0.000000e+00> : vector<1x64xf32>
    %10 = tpu.matmul %9, %4, %cst_13 {dimension_numbers = #tpu.dot_dimension_numbers<[1], [0], [0], [1], [0, 0, 1, 1], [], []>} : vector<1x32xf32>, vector<32x64xf32>, vector<1x64xf32> -> vector<1x64xf32>
    %cst_14 = arith.constant 1.562500e-02 : f32
    %11 = vector.broadcast %cst_14 : f32 to vector<1x64xf32>
    %12 = arith.mulf %10, %11 : vector<1x64xf32>
    %cst_15 = arith.constant dense<0.000000e+00> : vector<1x32xf32>
    %13 = tpu.matmul %8, %3, %cst_15 {dimension_numbers = #tpu.dot_dimension_numbers<[1], [0], [0], [1], [0, 0, 1, 1], [], []>} : vector<1x64xf32>, vector<64x32xf32>, vector<1x32xf32> -> vector<1x32xf32>
    %cst_16 = arith.constant dense<0.000000e+00> : vector<1x64xf32>
    %14 = tpu.matmul %13, %4, %cst_16 {dimension_numbers = #tpu.dot_dimension_numbers<[1], [0], [0], [1], [0, 0, 1, 1], [], []>} : vector<1x32xf32>, vector<32x64xf32>, vector<1x64xf32> -> vector<1x64xf32>
    %cst_17 = arith.constant 1.562500e-02 : f32
    %15 = vector.broadcast %cst_17 : f32 to vector<1x64xf32>
    %16 = arith.mulf %14, %15 : vector<1x64xf32>
    %17 = arith.mulf %12, %12 : vector<1x64xf32>
    %18 = arith.subf %16, %17 : vector<1x64xf32>
    %cst_18 = arith.constant 0.000000e+00 : f32
    %19 = vector.broadcast %cst_18 : f32 to vector<1x64xf32>
    %20 = arith.maximumf %18, %19 : vector<1x64xf32>
    %cst_19 = arith.constant 9.99999997E-7 : f32
    %21 = vector.broadcast %cst_19 : f32 to vector<1x64xf32>
    %22 = arith.addf %20, %21 : vector<1x64xf32>
    %23 = math.rsqrt %22 : vector<1x64xf32>
    %24 = vector.shape_cast %12 : vector<1x64xf32> to vector<1x1x64xf32>
    %25 = vector.broadcast %24 : vector<1x1x64xf32> to vector<1x64x64xf32>
    %26 = arith.subf %5, %25 : vector<1x64x64xf32>
    %27 = vector.shape_cast %23 : vector<1x64xf32> to vector<1x1x64xf32>
    %28 = vector.broadcast %27 : vector<1x1x64xf32> to vector<1x64x64xf32>
    %29 = arith.mulf %26, %28 : vector<1x64x64xf32>
    %30 = vector.shape_cast %1 : vector<1x64xf32> to vector<1x1x64xf32>
    %31 = vector.broadcast %30 : vector<1x1x64xf32> to vector<1x64x64xf32>
    %32 = arith.mulf %29, %31 : vector<1x64x64xf32>
    %33 = vector.shape_cast %2 : vector<1x64xf32> to vector<1x1x64xf32>
    %34 = vector.broadcast %33 : vector<1x1x64xf32> to vector<1x64x64xf32>
    %35 = arith.addf %32, %34 : vector<1x64x64xf32>
    %36 = arith.negf %35 : vector<1x64x64xf32>
    %37 = math.exp %36 : vector<1x64x64xf32>
    %cst_20 = arith.constant 1.000000e+00 : f32
    %38 = vector.broadcast %cst_20 : f32 to vector<1x64x64xf32>
    %39 = arith.addf %38, %37 : vector<1x64x64xf32>
    %40 = arith.divf %38, %39 : vector<1x64x64xf32>
    %41 = arith.mulf %35, %40 : vector<1x64x64xf32>
    %42 = vector.shape_cast %41 : vector<1x64x64xf32> to vector<1x8x8x64xf32>
    %c0_i32 = arith.constant 0 : i32
    %43 = arith.cmpi eq, %arg0, %c0_i32 : i32
    %44 = arith.extui %43 : i1 to i32
    %c0_i32_21 = arith.constant 0 : i32
    %45 = arith.cmpi ne, %44, %c0_i32_21 : i32
    scf.if %45 {
      %cst_104 = arith.constant 0.000000e+00 : bf16
      %125 = vector.broadcast %cst_104 : bf16 to vector<1x10x10x64xbf16>
      %c0_105 = arith.constant 0 : index
      %c0_106 = arith.constant 0 : index
      %c0_107 = arith.constant 0 : index
      %c0_108 = arith.constant 0 : index
      %126 = vector.load %arg11[%c0_105, %c0_106, %c0_107, %c0_108] : memref<1x10x10x64xbf16, #tpu.memory_space<vmem>>, vector<1x10x10x64xbf16>
      tpu.vector_store %arg11[%c0_105, %c0_106, %c0_107, %c0_108], %125 {strides = array<i32>} : memref<1x10x10x64xbf16, #tpu.memory_space<vmem>>, vector<1x10x10x64xbf16>,
    } else {
    }
    %46 = arith.truncf %42 : vector<1x8x8x64xf32> to vector<1x8x8x64xbf16>
    %c0_22 = arith.constant 0 : index
    %c1 = arith.constant 1 : index
    %c1_23 = arith.constant 1 : index
    %c0_24 = arith.constant 0 : index
    %47 = vector.load %arg11[%c0_22, %c1, %c1_23, %c0_24] : memref<1x10x10x64xbf16, #tpu.memory_space<vmem>>, vector<1x8x8x64xbf16>
    tpu.vector_store %arg11[%c0_22, %c1, %c1_23, %c0_24], %46 {strides = array<i32>} : memref<1x10x10x64xbf16, #tpu.memory_space<vmem>>, vector<1x8x8x64xbf16>,
    %cst_25 = arith.constant 0.000000e+00 : f32
    %48 = vector.broadcast %cst_25 : f32 to vector<64x128xf32>
    %c0_26 = arith.constant 0 : index
    %c0_27 = arith.constant 0 : index
    %c0_28 = arith.constant 0 : index
    %c0_29 = arith.constant 0 : index
    %49 = vector.load %arg11[%c0_26, %c0_27, %c0_28, %c0_29] : memref<1x10x10x64xbf16, #tpu.memory_space<vmem>>, vector<1x8x8x64xbf16>
    %50 = vector.shape_cast %49 : vector<1x8x8x64xbf16> to vector<64x64xbf16>
    %c0_30 = arith.constant 0 : index
    %c0_31 = arith.constant 0 : index
    %c0_32 = arith.constant 0 : index
    %51 = vector.load %arg6[%c0_30, %c0_31, %c0_32] : memref<9x64x128xbf16, #tpu.memory_space<vmem>>, vector<1x64x128xbf16>
    %52 = vector.shape_cast %51 : vector<1x64x128xbf16> to vector<64x128xbf16>
    %cst_33 = arith.constant dense<0.000000e+00> : vector<64x128xf32>
    %53 = tpu.matmul %50, %52, %cst_33 {dimension_numbers = #tpu.dot_dimension_numbers<[1], [0], [0], [1], [0, 0, 1, 1], [], []>} : vector<64x64xbf16>, vector<64x128xbf16>, vector<64x128xf32> -> vector<64x128xf32>
    %54 = arith.addf %48, %53 : vector<64x128xf32>
    %c0_34 = arith.constant 0 : index
    %c0_35 = arith.constant 0 : index
    %c1_36 = arith.constant 1 : index
    %c0_37 = arith.constant 0 : index
    %55 = vector.load %arg11[%c0_34, %c0_35, %c1_36, %c0_37] : memref<1x10x10x64xbf16, #tpu.memory_space<vmem>>, vector<1x8x8x64xbf16>
    %56 = vector.shape_cast %55 : vector<1x8x8x64xbf16> to vector<64x64xbf16>
    %c1_38 = arith.constant 1 : index
    %c0_39 = arith.constant 0 : index
    %c0_40 = arith.constant 0 : index
    %57 = vector.load %arg6[%c1_38, %c0_39, %c0_40] : memref<9x64x128xbf16, #tpu.memory_space<vmem>>, vector<1x64x128xbf16>
    %58 = vector.shape_cast %57 : vector<1x64x128xbf16> to vector<64x128xbf16>
    %cst_41 = arith.constant dense<0.000000e+00> : vector<64x128xf32>
    %59 = tpu.matmul %56, %58, %cst_41 {dimension_numbers = #tpu.dot_dimension_numbers<[1], [0], [0], [1], [0, 0, 1, 1], [], []>} : vector<64x64xbf16>, vector<64x128xbf16>, vector<64x128xf32> -> vector<64x128xf32>
    %60 = arith.addf %54, %59 : vector<64x128xf32>
    %c0_42 = arith.constant 0 : index
    %c0_43 = arith.constant 0 : index
    %c2 = arith.constant 2 : index
    %c0_44 = arith.constant 0 : index
    %61 = vector.load %arg11[%c0_42, %c0_43, %c2, %c0_44] : memref<1x10x10x64xbf16, #tpu.memory_space<vmem>>, vector<1x8x8x64xbf16>
    %62 = vector.shape_cast %61 : vector<1x8x8x64xbf16> to vector<64x64xbf16>
    %c2_45 = arith.constant 2 : index
    %c0_46 = arith.constant 0 : index
    %c0_47 = arith.constant 0 : index
    %63 = vector.load %arg6[%c2_45, %c0_46, %c0_47] : memref<9x64x128xbf16, #tpu.memory_space<vmem>>, vector<1x64x128xbf16>
    %64 = vector.shape_cast %63 : vector<1x64x128xbf16> to vector<64x128xbf16>
    %cst_48 = arith.constant dense<0.000000e+00> : vector<64x128xf32>
    %65 = tpu.matmul %62, %64, %cst_48 {dimension_numbers = #tpu.dot_dimension_numbers<[1], [0], [0], [1], [0, 0, 1, 1], [], []>} : vector<64x64xbf16>, vector<64x128xbf16>, vector<64x128xf32> -> vector<64x128xf32>
    %66 = arith.addf %60, %65 : vector<64x128xf32>
    %c0_49 = arith.constant 0 : index
    %c1_50 = arith.constant 1 : index
    %c0_51 = arith.constant 0 : index
    %c0_52 = arith.constant 0 : index
    %67 = vector.load %arg11[%c0_49, %c1_50, %c0_51, %c0_52] : memref<1x10x10x64xbf16, #tpu.memory_space<vmem>>, vector<1x8x8x64xbf16>
    %68 = vector.shape_cast %67 : vector<1x8x8x64xbf16> to vector<64x64xbf16>
    %c3 = arith.constant 3 : index
    %c0_53 = arith.constant 0 : index
    %c0_54 = arith.constant 0 : index
    %69 = vector.load %arg6[%c3, %c0_53, %c0_54] : memref<9x64x128xbf16, #tpu.memory_space<vmem>>, vector<1x64x128xbf16>
    %70 = vector.shape_cast %69 : vector<1x64x128xbf16> to vector<64x128xbf16>
    %cst_55 = arith.constant dense<0.000000e+00> : vector<64x128xf32>
    %71 = tpu.matmul %68, %70, %cst_55 {dimension_numbers = #tpu.dot_dimension_numbers<[1], [0], [0], [1], [0, 0, 1, 1], [], []>} : vector<64x64xbf16>, vector<64x128xbf16>, vector<64x128xf32> -> vector<64x128xf32>
    %72 = arith.addf %66, %71 : vector<64x128xf32>
    %c0_56 = arith.constant 0 : index
    %c1_57 = arith.constant 1 : index
    %c1_58 = arith.constant 1 : index
    %c0_59 = arith.constant 0 : index
    %73 = vector.load %arg11[%c0_56, %c1_57, %c1_58, %c0_59] : memref<1x10x10x64xbf16, #tpu.memory_space<vmem>>, vector<1x8x8x64xbf16>
    %74 = vector.shape_cast %73 : vector<1x8x8x64xbf16> to vector<64x64xbf16>
    %c4 = arith.constant 4 : index
    %c0_60 = arith.constant 0 : index
    %c0_61 = arith.constant 0 : index
    %75 = vector.load %arg6[%c4, %c0_60, %c0_61] : memref<9x64x128xbf16, #tpu.memory_space<vmem>>, vector<1x64x128xbf16>
    %76 = vector.shape_cast %75 : vector<1x64x128xbf16> to vector<64x128xbf16>
    %cst_62 = arith.constant dense<0.000000e+00> : vector<64x128xf32>
    %77 = tpu.matmul %74, %76, %cst_62 {dimension_numbers = #tpu.dot_dimension_numbers<[1], [0], [0], [1], [0, 0, 1, 1], [], []>} : vector<64x64xbf16>, vector<64x128xbf16>, vector<64x128xf32> -> vector<64x128xf32>
    %78 = arith.addf %72, %77 : vector<64x128xf32>
    %c0_63 = arith.constant 0 : index
    %c1_64 = arith.constant 1 : index
    %c2_65 = arith.constant 2 : index
    %c0_66 = arith.constant 0 : index
    %79 = vector.load %arg11[%c0_63, %c1_64, %c2_65, %c0_66] : memref<1x10x10x64xbf16, #tpu.memory_space<vmem>>, vector<1x8x8x64xbf16>
    %80 = vector.shape_cast %79 : vector<1x8x8x64xbf16> to vector<64x64xbf16>
    %c5 = arith.constant 5 : index
    %c0_67 = arith.constant 0 : index
    %c0_68 = arith.constant 0 : index
    %81 = vector.load %arg6[%c5, %c0_67, %c0_68] : memref<9x64x128xbf16, #tpu.memory_space<vmem>>, vector<1x64x128xbf16>
    %82 = vector.shape_cast %81 : vector<1x64x128xbf16> to vector<64x128xbf16>
    %cst_69 = arith.constant dense<0.000000e+00> : vector<64x128xf32>
    %83 = tpu.matmul %80, %82, %cst_69 {dimension_numbers = #tpu.dot_dimension_numbers<[1], [0], [0], [1], [0, 0, 1, 1], [], []>} : vector<64x64xbf16>, vector<64x128xbf16>, vector<64x128xf32> -> vector<64x128xf32>
    %84 = arith.addf %78, %83 : vector<64x128xf32>
    %c0_70 = arith.constant 0 : index
    %c2_71 = arith.constant 2 : index
    %c0_72 = arith.constant 0 : index
    %c0_73 = arith.constant 0 : index
    %85 = vector.load %arg11[%c0_70, %c2_71, %c0_72, %c0_73] : memref<1x10x10x64xbf16, #tpu.memory_space<vmem>>, vector<1x8x8x64xbf16>
    %86 = vector.shape_cast %85 : vector<1x8x8x64xbf16> to vector<64x64xbf16>
    %c6 = arith.constant 6 : index
    %c0_74 = arith.constant 0 : index
    %c0_75 = arith.constant 0 : index
    %87 = vector.load %arg6[%c6, %c0_74, %c0_75] : memref<9x64x128xbf16, #tpu.memory_space<vmem>>, vector<1x64x128xbf16>
    %88 = vector.shape_cast %87 : vector<1x64x128xbf16> to vector<64x128xbf16>
    %cst_76 = arith.constant dense<0.000000e+00> : vector<64x128xf32>
    %89 = tpu.matmul %86, %88, %cst_76 {dimension_numbers = #tpu.dot_dimension_numbers<[1], [0], [0], [1], [0, 0, 1, 1], [], []>} : vector<64x64xbf16>, vector<64x128xbf16>, vector<64x128xf32> -> vector<64x128xf32>
    %90 = arith.addf %84, %89 : vector<64x128xf32>
    %c0_77 = arith.constant 0 : index
    %c2_78 = arith.constant 2 : index
    %c1_79 = arith.constant 1 : index
    %c0_80 = arith.constant 0 : index
    %91 = vector.load %arg11[%c0_77, %c2_78, %c1_79, %c0_80] : memref<1x10x10x64xbf16, #tpu.memory_space<vmem>>, vector<1x8x8x64xbf16>
    %92 = vector.shape_cast %91 : vector<1x8x8x64xbf16> to vector<64x64xbf16>
    %c7 = arith.constant 7 : index
    %c0_81 = arith.constant 0 : index
    %c0_82 = arith.constant 0 : index
    %93 = vector.load %arg6[%c7, %c0_81, %c0_82] : memref<9x64x128xbf16, #tpu.memory_space<vmem>>, vector<1x64x128xbf16>
    %94 = vector.shape_cast %93 : vector<1x64x128xbf16> to vector<64x128xbf16>
    %cst_83 = arith.constant dense<0.000000e+00> : vector<64x128xf32>
    %95 = tpu.matmul %92, %94, %cst_83 {dimension_numbers = #tpu.dot_dimension_numbers<[1], [0], [0], [1], [0, 0, 1, 1], [], []>} : vector<64x64xbf16>, vector<64x128xbf16>, vector<64x128xf32> -> vector<64x128xf32>
    %96 = arith.addf %90, %95 : vector<64x128xf32>
    %c0_84 = arith.constant 0 : index
    %c2_85 = arith.constant 2 : index
    %c2_86 = arith.constant 2 : index
    %c0_87 = arith.constant 0 : index
    %97 = vector.load %arg11[%c0_84, %c2_85, %c2_86, %c0_87] : memref<1x10x10x64xbf16, #tpu.memory_space<vmem>>, vector<1x8x8x64xbf16>
    %98 = vector.shape_cast %97 : vector<1x8x8x64xbf16> to vector<64x64xbf16>
    %c8 = arith.constant 8 : index
    %c0_88 = arith.constant 0 : index
    %c0_89 = arith.constant 0 : index
    %99 = vector.load %arg6[%c8, %c0_88, %c0_89] : memref<9x64x128xbf16, #tpu.memory_space<vmem>>, vector<1x64x128xbf16>
    %100 = vector.shape_cast %99 : vector<1x64x128xbf16> to vector<64x128xbf16>
    %cst_90 = arith.constant dense<0.000000e+00> : vector<64x128xf32>
    %101 = tpu.matmul %98, %100, %cst_90 {dimension_numbers = #tpu.dot_dimension_numbers<[1], [0], [0], [1], [0, 0, 1, 1], [], []>} : vector<64x64xbf16>, vector<64x128xbf16>, vector<64x128xf32> -> vector<64x128xf32>
    %102 = arith.addf %96, %101 : vector<64x128xf32>
    %c0_91 = arith.constant 0 : index
    %c0_92 = arith.constant 0 : index
    %c0_93 = arith.constant 0 : index
    %103 = vector.load %arg8[%c0_91, %c0_92, %c0_93] : memref<1x1x128xf32, #tpu.memory_space<vmem>>, vector<1x1x128xf32>
    %104 = vector.shape_cast %103 : vector<1x1x128xf32> to vector<1x128xf32>
    %105 = arith.negf %104 : vector<1x128xf32>
    %106 = math.exp %105 : vector<1x128xf32>
    %cst_94 = arith.constant 1.000000e+00 : f32
    %107 = vector.broadcast %cst_94 : f32 to vector<1x128xf32>
    %108 = arith.addf %107, %106 : vector<1x128xf32>
    %109 = arith.divf %107, %108 : vector<1x128xf32>
    %110 = arith.mulf %104, %109 : vector<1x128xf32>
    %111 = arith.truncf %110 : vector<1x128xf32> to vector<1x128xbf16>
    %c0_95 = arith.constant 0 : index
    %c0_96 = arith.constant 0 : index
    %112 = vector.load %arg9[%c0_95, %c0_96] : memref<128x128xbf16, #tpu.memory_space<vmem>>, vector<128x128xbf16>
    %cst_97 = arith.constant dense<0.000000e+00> : vector<1x128xf32>
    %113 = tpu.matmul %111, %112, %cst_97 {dimension_numbers = #tpu.dot_dimension_numbers<[1], [0], [0], [1], [0, 0, 1, 1], [], []>} : vector<1x128xbf16>, vector<128x128xbf16>, vector<1x128xf32> -> vector<1x128xf32>
    %114 = vector.shape_cast %102 : vector<64x128xf32> to vector<1x64x128xf32>
    %c0_98 = arith.constant 0 : index
    %c0_99 = arith.constant 0 : index
    %115 = vector.load %arg7[%c0_98, %c0_99] : memref<1x128xf32, #tpu.memory_space<vmem>>, vector<1x128xf32>
    %116 = vector.shape_cast %115 : vector<1x128xf32> to vector<1x1x128xf32>
    %117 = vector.broadcast %116 : vector<1x1x128xf32> to vector<1x64x128xf32>
    %118 = arith.addf %114, %117 : vector<1x64x128xf32>
    %119 = vector.shape_cast %113 : vector<1x128xf32> to vector<1x1x128xf32>
    %120 = vector.broadcast %119 : vector<1x1x128xf32> to vector<1x64x128xf32>
    %121 = arith.addf %118, %120 : vector<1x64x128xf32>
    %122 = vector.shape_cast %121 : vector<1x64x128xf32> to vector<1x8x8x128xf32>
    %123 = arith.truncf %122 : vector<1x8x8x128xf32> to vector<1x8x8x128xbf16>
    %c0_100 = arith.constant 0 : index
    %c0_101 = arith.constant 0 : index
    %c0_102 = arith.constant 0 : index
    %c0_103 = arith.constant 0 : index
    %124 = vector.load %arg10[%c0_100, %c0_101, %c0_102, %c0_103] : memref<1x8x8x128xbf16, #tpu.memory_space<vmem>>, vector<1x8x8x128xbf16>
    tpu.vector_store %arg10[%c0_100, %c0_101, %c0_102, %c0_103], %123 {strides = array<i32>} : memref<1x8x8x128xbf16, #tpu.memory_space<vmem>>, vector<1x8x8x128xbf16>,
    return
  }
  func.func @transform_0(%arg0: i32) -> (i32, i32, i32, i32) {
    %c0_i32 = arith.constant 0 : i32
    %c0_i32_0 = arith.constant 0 : i32
    %c0_i32_1 = arith.constant 0 : i32
    %c0_i32_2 = arith.constant 0 : i32
    return %arg0, %c0_i32, %c0_i32_0, %c0_i32_1 : i32, i32, i32, i32
  }
  func.func @transform_1(%arg0: i32) -> (i32, i32) {
    %c0_i32 = arith.constant 0 : i32
    %c0_i32_0 = arith.constant 0 : i32
    %c0_i32_1 = arith.constant 0 : i32
    return %c0_i32, %c0_i32_0 : i32, i32
  }
  func.func @transform_2(%arg0: i32) -> (i32, i32) {
    %c0_i32 = arith.constant 0 : i32
    %c0_i32_0 = arith.constant 0 : i32
    %c0_i32_1 = arith.constant 0 : i32
    return %c0_i32, %c0_i32_0 : i32, i32
  }
  func.func @transform_3(%arg0: i32) -> (i32, i32) {
    %c0_i32 = arith.constant 0 : i32
    %c0_i32_0 = arith.constant 0 : i32
    %c0_i32_1 = arith.constant 0 : i32
    return %c0_i32, %c0_i32_0 : i32, i32
  }
  func.func @transform_4(%arg0: i32) -> (i32, i32) {
    %c0_i32 = arith.constant 0 : i32
    %c0_i32_0 = arith.constant 0 : i32
    %c0_i32_1 = arith.constant 0 : i32
    return %c0_i32, %c0_i32_0 : i32, i32
  }
  func.func @transform_5(%arg0: i32) -> (i32, i32, i32) {
    %c0_i32 = arith.constant 0 : i32
    %c0_i32_0 = arith.constant 0 : i32
    %c0_i32_1 = arith.constant 0 : i32
    %c0_i32_2 = arith.constant 0 : i32
    return %c0_i32, %c0_i32_0, %c0_i32_1 : i32, i32, i32
  }
  func.func @transform_6(%arg0: i32) -> (i32, i32) {
    %c0_i32 = arith.constant 0 : i32
    %c0_i32_0 = arith.constant 0 : i32
    %c0_i32_1 = arith.constant 0 : i32
    return %c0_i32, %c0_i32_0 : i32, i32
  }
  func.func @transform_7(%arg0: i32) -> (i32, i32, i32) {
    %c0_i32 = arith.constant 0 : i32
    %c0_i32_0 = arith.constant 0 : i32
    %c0_i32_1 = arith.constant 0 : i32
    return %arg0, %c0_i32, %c0_i32_0 : i32, i32, i32
  }
  func.func @transform_8(%arg0: i32) -> (i32, i32) {
    %c0_i32 = arith.constant 0 : i32
    %c0_i32_0 = arith.constant 0 : i32
    %c0_i32_1 = arith.constant 0 : i32
    return %c0_i32, %c0_i32_0 : i32, i32
  }
  func.func @transform_9(%arg0: i32) -> (i32, i32, i32, i32) {
    %c0_i32 = arith.constant 0 : i32
    %c0_i32_0 = arith.constant 0 : i32
    %c0_i32_1 = arith.constant 0 : i32
    %c0_i32_2 = arith.constant 0 : i32
    return %arg0, %c0_i32, %c0_i32_0, %c0_i32_1 : i32, i32, i32, i32
  }
}

module attributes {stable_mosaic.version = 11 : i64} {
  func.func @_gn_conv1_kernel(%arg0: i32, %arg1: memref<1x8x8x64xf32, #tpu.memory_space<vmem>>, %arg2: memref<1x64xf32, #tpu.memory_space<vmem>>, %arg3: memref<1x64xf32, #tpu.memory_space<vmem>>, %arg4: memref<64x32xf32, #tpu.memory_space<vmem>>, %arg5: memref<32x64xf32, #tpu.memory_space<vmem>>, %arg6: memref<9x64x128xbf16, #tpu.memory_space<vmem>>, %arg7: memref<1x128xf32, #tpu.memory_space<vmem>>, %arg8: memref<1x1x128xf32, #tpu.memory_space<vmem>>, %arg9: memref<128x128xbf16, #tpu.memory_space<vmem>>, %arg10: memref<1x8x8x128xbf16, #tpu.memory_space<vmem>>, %arg11: memref<1x10x10x64xbf16, #tpu.memory_space<vmem>>) attributes {dimension_semantics = [#tpu.dimension_semantics<parallel>], iteration_bounds = array<i64: 2>, scalar_prefetch = 0 : i64, scratch_operands = 1 : i64, tpu.core_type = #tpu.core_type<tc>, window_params = [{transform_indices = @transform_0, window_bounds = array<i64: 1, 8, 8, 64>}, {pipeline_mode = #tpu.pipeline_mode<synchronous>, transform_indices = @transform_1, window_bounds = array<i64: 1, 64>}, {pipeline_mode = #tpu.pipeline_mode<synchronous>, transform_indices = @transform_2, window_bounds = array<i64: 1, 64>}, {pipeline_mode = #tpu.pipeline_mode<synchronous>, transform_indices = @transform_3, window_bounds = array<i64: 64, 32>}, {pipeline_mode = #tpu.pipeline_mode<synchronous>, transform_indices = @transform_4, window_bounds = array<i64: 32, 64>}, {pipeline_mode = #tpu.pipeline_mode<synchronous>, transform_indices = @transform_5, window_bounds = array<i64: 9, 64, 128>}, {pipeline_mode = #tpu.pipeline_mode<synchronous>, transform_indices = @transform_6, window_bounds = array<i64: 1, 128>}, {transform_indices = @transform_7, window_bounds = array<i64: 1, 1, 128>}, {pipeline_mode = #tpu.pipeline_mode<synchronous>, transform_indices = @transform_8, window_bounds = array<i64: 128, 128>}, {transform_indices = @transform_9, window_bounds = array<i64: 1, 8, 8, 128>}]} {
    %c0 = arith.constant 0 : index
    %c0_0 = arith.constant 0 : index
    %c0_1 = arith.constant 0 : index
    %c0_2 = arith.constant 0 : index
    %0 = vector.load %arg1[%c0, %c0_0, %c0_1, %c0_2] : memref<1x8x8x64xf32, #tpu.memory_space<vmem>>, vector<1x8x8x64xf32>
    %c0_3 = arith.constant 0 : index
    %c0_4 = arith.constant 0 : index
    %1 = vector.load %arg2[%c0_3, %c0_4] : memref<1x64xf32, #tpu.memory_space<vmem>>, vector<1x64xf32>
    %c0_5 = arith.constant 0 : index
    %c0_6 = arith.constant 0 : index
    %2 = vector.load %arg3[%c0_5, %c0_6] : memref<1x64xf32, #tpu.memory_space<vmem>>, vector<1x64xf32>
    %c0_7 = arith.constant 0 : index
    %c0_8 = arith.constant 0 : index
    %3 = vector.load %arg4[%c0_7, %c0_8] : memref<64x32xf32, #tpu.memory_space<vmem>>, vector<64x32xf32>
    %c0_9 = arith.constant 0 : index
    %c0_10 = arith.constant 0 : index
    %4 = vector.load %arg5[%c0_9, %c0_10] : memref<32x64xf32, #tpu.memory_space<vmem>>, vector<32x64xf32>
    %5 = vector.shape_cast %0 : vector<1x8x8x64xf32> to vector<1x64x64xf32>
    %cst = arith.constant dense<0.000000e+00> : vector<1x64xf32>
    %6 = vector.multi_reduction <add>, %5, %cst [1] : vector<1x64x64xf32> to vector<1x64xf32>
    %7 = arith.mulf %5, %5 : vector<1x64x64xf32>
    %cst_11 = arith.constant dense<0.000000e+00> : vector<1x64xf32>
    %8 = vector.multi_reduction <add>, %7, %cst_11 [1] : vector<1x64x64xf32> to vector<1x64xf32>
    %cst_12 = arith.constant dense<0.000000e+00> : vector<1x32xf32>
    %9 = tpu.matmul %6, %3, %cst_12 {dimension_numbers = #tpu.dot_dimension_numbers<[1], [0], [0], [1], [0, 0, 1, 1], [], []>} : vector<1x64xf32>, vector<64x32xf32>, vector<1x32xf32> -> vector<1x32xf32>
    %cst_13 = arith.constant dense<0.000000e+00> : vector<1x64xf32>
    %10 = tpu.matmul %9, %4, %cst_13 {dimension_numbers = #tpu.dot_dimension_numbers<[1], [0], [0], [1], [0, 0, 1, 1], [], []>} : vector<1x32xf32>, vector<32x64xf32>, vector<1x64xf32> -> vector<1x64xf32>
    %cst_14 = arith.constant 1.562500e-02 : f32
    %11 = vector.broadcast %cst_14 : f32 to vector<1x64xf32>
    %12 = arith.mulf %10, %11 : vector<1x64xf32>
    %cst_15 = arith.constant dense<0.000000e+00> : vector<1x32xf32>
    %13 = tpu.matmul %8, %3, %cst_15 {dimension_numbers = #tpu.dot_dimension_numbers<[1], [0], [0], [1], [0, 0, 1, 1], [], []>} : vector<1x64xf32>, vector<64x32xf32>, vector<1x32xf32> -> vector<1x32xf32>
    %cst_16 = arith.constant dense<0.000000e+00> : vector<1x64xf32>
    %14 = tpu.matmul %13, %4, %cst_16 {dimension_numbers = #tpu.dot_dimension_numbers<[1], [0], [0], [1], [0, 0, 1, 1], [], []>} : vector<1x32xf32>, vector<32x64xf32>, vector<1x64xf32> -> vector<1x64xf32>
    %cst_17 = arith.constant 1.562500e-02 : f32
    %15 = vector.broadcast %cst_17 : f32 to vector<1x64xf32>
    %16 = arith.mulf %14, %15 : vector<1x64xf32>
    %17 = arith.mulf %12, %12 : vector<1x64xf32>
    %18 = arith.subf %16, %17 : vector<1x64xf32>
    %cst_18 = arith.constant 0.000000e+00 : f32
    %19 = vector.broadcast %cst_18 : f32 to vector<1x64xf32>
    %20 = arith.maximumf %18, %19 : vector<1x64xf32>
    %cst_19 = arith.constant 9.99999997E-7 : f32
    %21 = vector.broadcast %cst_19 : f32 to vector<1x64xf32>
    %22 = arith.addf %20, %21 : vector<1x64xf32>
    %23 = math.rsqrt %22 : vector<1x64xf32>
    %24 = vector.shape_cast %12 : vector<1x64xf32> to vector<1x1x64xf32>
    %25 = vector.broadcast %24 : vector<1x1x64xf32> to vector<1x64x64xf32>
    %26 = arith.subf %5, %25 : vector<1x64x64xf32>
    %27 = vector.shape_cast %23 : vector<1x64xf32> to vector<1x1x64xf32>
    %28 = vector.broadcast %27 : vector<1x1x64xf32> to vector<1x64x64xf32>
    %29 = arith.mulf %26, %28 : vector<1x64x64xf32>
    %30 = vector.shape_cast %1 : vector<1x64xf32> to vector<1x1x64xf32>
    %31 = vector.broadcast %30 : vector<1x1x64xf32> to vector<1x64x64xf32>
    %32 = arith.mulf %29, %31 : vector<1x64x64xf32>
    %33 = vector.shape_cast %2 : vector<1x64xf32> to vector<1x1x64xf32>
    %34 = vector.broadcast %33 : vector<1x1x64xf32> to vector<1x64x64xf32>
    %35 = arith.addf %32, %34 : vector<1x64x64xf32>
    %36 = arith.negf %35 : vector<1x64x64xf32>
    %37 = math.exp %36 : vector<1x64x64xf32>
    %cst_20 = arith.constant 1.000000e+00 : f32
    %38 = vector.broadcast %cst_20 : f32 to vector<1x64x64xf32>
    %39 = arith.addf %38, %37 : vector<1x64x64xf32>
    %40 = arith.divf %38, %39 : vector<1x64x64xf32>
    %41 = arith.mulf %35, %40 : vector<1x64x64xf32>
    %42 = vector.shape_cast %41 : vector<1x64x64xf32> to vector<1x8x8x64xf32>
    %c0_i32 = arith.constant 0 : i32
    %43 = arith.cmpi eq, %arg0, %c0_i32 : i32
    %44 = arith.extui %43 : i1 to i32
    %c0_i32_21 = arith.constant 0 : i32
    %45 = arith.cmpi ne, %44, %c0_i32_21 : i32
    scf.if %45 {
      %cst_104 = arith.constant 0.000000e+00 : bf16
      %125 = vector.broadcast %cst_104 : bf16 to vector<1x10x10x64xbf16>
      %c0_105 = arith.constant 0 : index
      %c0_106 = arith.constant 0 : index
      %c0_107 = arith.constant 0 : index
      %c0_108 = arith.constant 0 : index
      %126 = vector.load %arg11[%c0_105, %c0_106, %c0_107, %c0_108] : memref<1x10x10x64xbf16, #tpu.memory_space<vmem>>, vector<1x10x10x64xbf16>
      tpu.vector_store %arg11[%c0_105, %c0_106, %c0_107, %c0_108], %125 {strides = array<i32>} : memref<1x10x10x64xbf16, #tpu.memory_space<vmem>>, vector<1x10x10x64xbf16>,
    } else {
    }
    %46 = arith.truncf %42 : vector<1x8x8x64xf32> to vector<1x8x8x64xbf16>
    %c0_22 = arith.constant 0 : index
    %c1 = arith.constant 1 : index
    %c1_23 = arith.constant 1 : index
    %c0_24 = arith.constant 0 : index
    %47 = vector.load %arg11[%c0_22, %c1, %c1_23, %c0_24] : memref<1x10x10x64xbf16, #tpu.memory_space<vmem>>, vector<1x8x8x64xbf16>
    tpu.vector_store %arg11[%c0_22, %c1, %c1_23, %c0_24], %46 {strides = array<i32>} : memref<1x10x10x64xbf16, #tpu.memory_space<vmem>>, vector<1x8x8x64xbf16>,
    %cst_25 = arith.constant 0.000000e+00 : f32
    %48 = vector.broadcast %cst_25 : f32 to vector<64x128xf32>
    %c0_26 = arith.constant 0 : index
    %c0_27 = arith.constant 0 : index
    %c0_28 = arith.constant 0 : index
    %c0_29 = arith.constant 0 : index
    %49 = vector.load %arg11[%c0_26, %c0_27, %c0_28, %c0_29] : memref<1x10x10x64xbf16, #tpu.memory_space<vmem>>, vector<1x8x8x64xbf16>
    %50 = vector.shape_cast %49 : vector<1x8x8x64xbf16> to vector<64x64xbf16>
    %c0_30 = arith.constant 0 : index
    %c0_31 = arith.constant 0 : index
    %c0_32 = arith.constant 0 : index
    %51 = vector.load %arg6[%c0_30, %c0_31, %c0_32] : memref<9x64x128xbf16, #tpu.memory_space<vmem>>, vector<1x64x128xbf16>
    %52 = vector.shape_cast %51 : vector<1x64x128xbf16> to vector<64x128xbf16>
    %cst_33 = arith.constant dense<0.000000e+00> : vector<64x128xf32>
    %53 = tpu.matmul %50, %52, %cst_33 {dimension_numbers = #tpu.dot_dimension_numbers<[1], [0], [0], [1], [0, 0, 1, 1], [], []>} : vector<64x64xbf16>, vector<64x128xbf16>, vector<64x128xf32> -> vector<64x128xf32>
    %54 = arith.addf %48, %53 : vector<64x128xf32>
    %c0_34 = arith.constant 0 : index
    %c0_35 = arith.constant 0 : index
    %c1_36 = arith.constant 1 : index
    %c0_37 = arith.constant 0 : index
    %55 = vector.load %arg11[%c0_34, %c0_35, %c1_36, %c0_37] : memref<1x10x10x64xbf16, #tpu.memory_space<vmem>>, vector<1x8x8x64xbf16>
    %56 = vector.shape_cast %55 : vector<1x8x8x64xbf16> to vector<64x64xbf16>
    %c1_38 = arith.constant 1 : index
    %c0_39 = arith.constant 0 : index
    %c0_40 = arith.constant 0 : index
    %57 = vector.load %arg6[%c1_38, %c0_39, %c0_40] : memref<9x64x128xbf16, #tpu.memory_space<vmem>>, vector<1x64x128xbf16>
    %58 = vector.shape_cast %57 : vector<1x64x128xbf16> to vector<64x128xbf16>
    %cst_41 = arith.constant dense<0.000000e+00> : vector<64x128xf32>
    %59 = tpu.matmul %56, %58, %cst_41 {dimension_numbers = #tpu.dot_dimension_numbers<[1], [0], [0], [1], [0, 0, 1, 1], [], []>} : vector<64x64xbf16>, vector<64x128xbf16>, vector<64x128xf32> -> vector<64x128xf32>
    %60 = arith.addf %54, %59 : vector<64x128xf32>
    %c0_42 = arith.constant 0 : index
    %c0_43 = arith.constant 0 : index
    %c2 = arith.constant 2 : index
    %c0_44 = arith.constant 0 : index
    %61 = vector.load %arg11[%c0_42, %c0_43, %c2, %c0_44] : memref<1x10x10x64xbf16, #tpu.memory_space<vmem>>, vector<1x8x8x64xbf16>
    %62 = vector.shape_cast %61 : vector<1x8x8x64xbf16> to vector<64x64xbf16>
    %c2_45 = arith.constant 2 : index
    %c0_46 = arith.constant 0 : index
    %c0_47 = arith.constant 0 : index
    %63 = vector.load %arg6[%c2_45, %c0_46, %c0_47] : memref<9x64x128xbf16, #tpu.memory_space<vmem>>, vector<1x64x128xbf16>
    %64 = vector.shape_cast %63 : vector<1x64x128xbf16> to vector<64x128xbf16>
    %cst_48 = arith.constant dense<0.000000e+00> : vector<64x128xf32>
    %65 = tpu.matmul %62, %64, %cst_48 {dimension_numbers = #tpu.dot_dimension_numbers<[1], [0], [0], [1], [0, 0, 1, 1], [], []>} : vector<64x64xbf16>, vector<64x128xbf16>, vector<64x128xf32> -> vector<64x128xf32>
    %66 = arith.addf %60, %65 : vector<64x128xf32>
    %c0_49 = arith.constant 0 : index
    %c1_50 = arith.constant 1 : index
    %c0_51 = arith.constant 0 : index
    %c0_52 = arith.constant 0 : index
    %67 = vector.load %arg11[%c0_49, %c1_50, %c0_51, %c0_52] : memref<1x10x10x64xbf16, #tpu.memory_space<vmem>>, vector<1x8x8x64xbf16>
    %68 = vector.shape_cast %67 : vector<1x8x8x64xbf16> to vector<64x64xbf16>
    %c3 = arith.constant 3 : index
    %c0_53 = arith.constant 0 : index
    %c0_54 = arith.constant 0 : index
    %69 = vector.load %arg6[%c3, %c0_53, %c0_54] : memref<9x64x128xbf16, #tpu.memory_space<vmem>>, vector<1x64x128xbf16>
    %70 = vector.shape_cast %69 : vector<1x64x128xbf16> to vector<64x128xbf16>
    %cst_55 = arith.constant dense<0.000000e+00> : vector<64x128xf32>
    %71 = tpu.matmul %68, %70, %cst_55 {dimension_numbers = #tpu.dot_dimension_numbers<[1], [0], [0], [1], [0, 0, 1, 1], [], []>} : vector<64x64xbf16>, vector<64x128xbf16>, vector<64x128xf32> -> vector<64x128xf32>
    %72 = arith.addf %66, %71 : vector<64x128xf32>
    %c0_56 = arith.constant 0 : index
    %c1_57 = arith.constant 1 : index
    %c1_58 = arith.constant 1 : index
    %c0_59 = arith.constant 0 : index
    %73 = vector.load %arg11[%c0_56, %c1_57, %c1_58, %c0_59] : memref<1x10x10x64xbf16, #tpu.memory_space<vmem>>, vector<1x8x8x64xbf16>
    %74 = vector.shape_cast %73 : vector<1x8x8x64xbf16> to vector<64x64xbf16>
    %c4 = arith.constant 4 : index
    %c0_60 = arith.constant 0 : index
    %c0_61 = arith.constant 0 : index
    %75 = vector.load %arg6[%c4, %c0_60, %c0_61] : memref<9x64x128xbf16, #tpu.memory_space<vmem>>, vector<1x64x128xbf16>
    %76 = vector.shape_cast %75 : vector<1x64x128xbf16> to vector<64x128xbf16>
    %cst_62 = arith.constant dense<0.000000e+00> : vector<64x128xf32>
    %77 = tpu.matmul %74, %76, %cst_62 {dimension_numbers = #tpu.dot_dimension_numbers<[1], [0], [0], [1], [0, 0, 1, 1], [], []>} : vector<64x64xbf16>, vector<64x128xbf16>, vector<64x128xf32> -> vector<64x128xf32>
    %78 = arith.addf %72, %77 : vector<64x128xf32>
    %c0_63 = arith.constant 0 : index
    %c1_64 = arith.constant 1 : index
    %c2_65 = arith.constant 2 : index
    %c0_66 = arith.constant 0 : index
    %79 = vector.load %arg11[%c0_63, %c1_64, %c2_65, %c0_66] : memref<1x10x10x64xbf16, #tpu.memory_space<vmem>>, vector<1x8x8x64xbf16>
    %80 = vector.shape_cast %79 : vector<1x8x8x64xbf16> to vector<64x64xbf16>
    %c5 = arith.constant 5 : index
    %c0_67 = arith.constant 0 : index
    %c0_68 = arith.constant 0 : index
    %81 = vector.load %arg6[%c5, %c0_67, %c0_68] : memref<9x64x128xbf16, #tpu.memory_space<vmem>>, vector<1x64x128xbf16>
    %82 = vector.shape_cast %81 : vector<1x64x128xbf16> to vector<64x128xbf16>
    %cst_69 = arith.constant dense<0.000000e+00> : vector<64x128xf32>
    %83 = tpu.matmul %80, %82, %cst_69 {dimension_numbers = #tpu.dot_dimension_numbers<[1], [0], [0], [1], [0, 0, 1, 1], [], []>} : vector<64x64xbf16>, vector<64x128xbf16>, vector<64x128xf32> -> vector<64x128xf32>
    %84 = arith.addf %78, %83 : vector<64x128xf32>
    %c0_70 = arith.constant 0 : index
    %c2_71 = arith.constant 2 : index
    %c0_72 = arith.constant 0 : index
    %c0_73 = arith.constant 0 : index
    %85 = vector.load %arg11[%c0_70, %c2_71, %c0_72, %c0_73] : memref<1x10x10x64xbf16, #tpu.memory_space<vmem>>, vector<1x8x8x64xbf16>
    %86 = vector.shape_cast %85 : vector<1x8x8x64xbf16> to vector<64x64xbf16>
    %c6 = arith.constant 6 : index
    %c0_74 = arith.constant 0 : index
    %c0_75 = arith.constant 0 : index
    %87 = vector.load %arg6[%c6, %c0_74, %c0_75] : memref<9x64x128xbf16, #tpu.memory_space<vmem>>, vector<1x64x128xbf16>
    %88 = vector.shape_cast %87 : vector<1x64x128xbf16> to vector<64x128xbf16>
    %cst_76 = arith.constant dense<0.000000e+00> : vector<64x128xf32>
    %89 = tpu.matmul %86, %88, %cst_76 {dimension_numbers = #tpu.dot_dimension_numbers<[1], [0], [0], [1], [0, 0, 1, 1], [], []>} : vector<64x64xbf16>, vector<64x128xbf16>, vector<64x128xf32> -> vector<64x128xf32>
    %90 = arith.addf %84, %89 : vector<64x128xf32>
    %c0_77 = arith.constant 0 : index
    %c2_78 = arith.constant 2 : index
    %c1_79 = arith.constant 1 : index
    %c0_80 = arith.constant 0 : index
    %91 = vector.load %arg11[%c0_77, %c2_78, %c1_79, %c0_80] : memref<1x10x10x64xbf16, #tpu.memory_space<vmem>>, vector<1x8x8x64xbf16>
    %92 = vector.shape_cast %91 : vector<1x8x8x64xbf16> to vector<64x64xbf16>
    %c7 = arith.constant 7 : index
    %c0_81 = arith.constant 0 : index
    %c0_82 = arith.constant 0 : index
    %93 = vector.load %arg6[%c7, %c0_81, %c0_82] : memref<9x64x128xbf16, #tpu.memory_space<vmem>>, vector<1x64x128xbf16>
    %94 = vector.shape_cast %93 : vector<1x64x128xbf16> to vector<64x128xbf16>
    %cst_83 = arith.constant dense<0.000000e+00> : vector<64x128xf32>
    %95 = tpu.matmul %92, %94, %cst_83 {dimension_numbers = #tpu.dot_dimension_numbers<[1], [0], [0], [1], [0, 0, 1, 1], [], []>} : vector<64x64xbf16>, vector<64x128xbf16>, vector<64x128xf32> -> vector<64x128xf32>
    %96 = arith.addf %90, %95 : vector<64x128xf32>
    %c0_84 = arith.constant 0 : index
    %c2_85 = arith.constant 2 : index
    %c2_86 = arith.constant 2 : index
    %c0_87 = arith.constant 0 : index
    %97 = vector.load %arg11[%c0_84, %c2_85, %c2_86, %c0_87] : memref<1x10x10x64xbf16, #tpu.memory_space<vmem>>, vector<1x8x8x64xbf16>
    %98 = vector.shape_cast %97 : vector<1x8x8x64xbf16> to vector<64x64xbf16>
    %c8 = arith.constant 8 : index
    %c0_88 = arith.constant 0 : index
    %c0_89 = arith.constant 0 : index
    %99 = vector.load %arg6[%c8, %c0_88, %c0_89] : memref<9x64x128xbf16, #tpu.memory_space<vmem>>, vector<1x64x128xbf16>
    %100 = vector.shape_cast %99 : vector<1x64x128xbf16> to vector<64x128xbf16>
    %cst_90 = arith.constant dense<0.000000e+00> : vector<64x128xf32>
    %101 = tpu.matmul %98, %100, %cst_90 {dimension_numbers = #tpu.dot_dimension_numbers<[1], [0], [0], [1], [0, 0, 1, 1], [], []>} : vector<64x64xbf16>, vector<64x128xbf16>, vector<64x128xf32> -> vector<64x128xf32>
    %102 = arith.addf %96, %101 : vector<64x128xf32>
    %c0_91 = arith.constant 0 : index
    %c0_92 = arith.constant 0 : index
    %c0_93 = arith.constant 0 : index
    %103 = vector.load %arg8[%c0_91, %c0_92, %c0_93] : memref<1x1x128xf32, #tpu.memory_space<vmem>>, vector<1x1x128xf32>
    %104 = vector.shape_cast %103 : vector<1x1x128xf32> to vector<1x128xf32>
    %105 = arith.negf %104 : vector<1x128xf32>
    %106 = math.exp %105 : vector<1x128xf32>
    %cst_94 = arith.constant 1.000000e+00 : f32
    %107 = vector.broadcast %cst_94 : f32 to vector<1x128xf32>
    %108 = arith.addf %107, %106 : vector<1x128xf32>
    %109 = arith.divf %107, %108 : vector<1x128xf32>
    %110 = arith.mulf %104, %109 : vector<1x128xf32>
    %111 = arith.truncf %110 : vector<1x128xf32> to vector<1x128xbf16>
    %c0_95 = arith.constant 0 : index
    %c0_96 = arith.constant 0 : index
    %112 = vector.load %arg9[%c0_95, %c0_96] : memref<128x128xbf16, #tpu.memory_space<vmem>>, vector<128x128xbf16>
    %cst_97 = arith.constant dense<0.000000e+00> : vector<1x128xf32>
    %113 = tpu.matmul %111, %112, %cst_97 {dimension_numbers = #tpu.dot_dimension_numbers<[1], [0], [0], [1], [0, 0, 1, 1], [], []>} : vector<1x128xbf16>, vector<128x128xbf16>, vector<1x128xf32> -> vector<1x128xf32>
    %114 = vector.shape_cast %102 : vector<64x128xf32> to vector<1x64x128xf32>
    %c0_98 = arith.constant 0 : index
    %c0_99 = arith.constant 0 : index
    %115 = vector.load %arg7[%c0_98, %c0_99] : memref<1x128xf32, #tpu.memory_space<vmem>>, vector<1x128xf32>
    %116 = vector.shape_cast %115 : vector<1x128xf32> to vector<1x1x128xf32>
    %117 = vector.broadcast %116 : vector<1x1x128xf32> to vector<1x64x128xf32>
    %118 = arith.addf %114, %117 : vector<1x64x128xf32>
    %119 = vector.shape_cast %113 : vector<1x128xf32> to vector<1x1x128xf32>
    %120 = vector.broadcast %119 : vector<1x1x128xf32> to vector<1x64x128xf32>
    %121 = arith.addf %118, %120 : vector<1x64x128xf32>
    %122 = vector.shape_cast %121 : vector<1x64x128xf32> to vector<1x8x8x128xf32>
    %123 = arith.truncf %122 : vector<1x8x8x128xf32> to vector<1x8x8x128xbf16>
    %c0_100 = arith.constant 0 : index
    %c0_101 = arith.constant 0 : index
    %c0_102 = arith.constant 0 : index
    %c0_103 = arith.constant 0 : index
    %124 = vector.load %arg10[%c0_100, %c0_101, %c0_102, %c0_103] : memref<1x8x8x128xbf16, #tpu.memory_space<vmem>>, vector<1x8x8x128xbf16>
    tpu.vector_store %arg10[%c0_100, %c0_101, %c0_102, %c0_103], %123 {strides = array<i32>} : memref<1x8x8x128xbf16, #tpu.memory_space<vmem>>, vector<1x8x8x128xbf16>,
    return
  }
  func.func @transform_0(%arg0: i32) -> (i32, i32, i32, i32) {
    %c0_i32 = arith.constant 0 : i32
    %c0_i32_0 = arith.constant 0 : i32
    %c0_i32_1 = arith.constant 0 : i32
    %c0_i32_2 = arith.constant 0 : i32
    return %arg0, %c0_i32, %c0_i32_0, %c0_i32_1 : i32, i32, i32, i32
  }
  func.func @transform_1(%arg0: i32) -> (i32, i32) {
    %c0_i32 = arith.constant 0 : i32
    %c0_i32_0 = arith.constant 0 : i32
    %c0_i32_1 = arith.constant 0 : i32
    return %c0_i32, %c0_i32_0 : i32, i32
  }
  func.func @transform_2(%arg0: i32) -> (i32, i32) {
    %c0_i32 = arith.constant 0 : i32
    %c0_i32_0 = arith.constant 0 : i32
    %c0_i32_1 = arith.constant 0 : i32
    return %c0_i32, %c0_i32_0 : i32, i32
  }
  func.func @transform_3(%arg0: i32) -> (i32, i32) {
    %c0_i32 = arith.constant 0 : i32
    %c0_i32_0 = arith.constant 0 : i32
    %c0_i32_1 = arith.constant 0 : i32
    return %c0_i32, %c0_i32_0 : i32, i32
  }
  func.func @transform_4(%arg0: i32) -> (i32, i32) {
    %c0_i32 = arith.constant 0 : i32
    %c0_i32_0 = arith.constant 0 : i32
    %c0_i32_1 = arith.constant 0 : i32
    return %c0_i32, %c0_i32_0 : i32, i32
  }
  func.func @transform_5(%arg0: i32) -> (i32, i32, i32) {
    %c0_i32 = arith.constant 0 : i32
    %c0_i32_0 = arith.constant 0 : i32
    %c0_i32_1 = arith.constant 0 : i32
    %c0_i32_2 = arith.constant 0 : i32
    return %c0_i32, %c0_i32_0, %c0_i32_1 : i32, i32, i32
  }
  func.func @transform_6(%arg0: i32) -> (i32, i32) {
    %c0_i32 = arith.constant 0 : i32
    %c0_i32_0 = arith.constant 0 : i32
    %c0_i32_1 = arith.constant 0 : i32
    return %c0_i32, %c0_i32_0 : i32, i32
  }
  func.func @transform_7(%arg0: i32) -> (i32, i32, i32) {
    %c0_i32 = arith.constant 0 : i32
    %c0_i32_0 = arith.constant 0 : i32
    %c0_i32_1 = arith.constant 0 : i32
    return %arg0, %c0_i32, %c0_i32_0 : i32, i32, i32
  }
  func.func @transform_8(%arg0: i32) -> (i32, i32) {
    %c0_i32 = arith.constant 0 : i32
    %c0_i32_0 = arith.constant 0 : i32
    %c0_i32_1 = arith.constant 0 : i32
    return %c0_i32, %c0_i32_0 : i32, i32
  }
  func.func @transform_9(%arg0: i32) -> (i32, i32, i32, i32) {
    %c0_i32 = arith.constant 0 : i32
    %c0_i32_0 = arith.constant 0 : i32
    %c0_i32_1 = arith.constant 0 : i32
    %c0_i32_2 = arith.constant 0 : i32
    return %arg0, %c0_i32, %c0_i32_0, %c0_i32_1 : i32, i32, i32, i32
  }
}

</mosaic_0001>

<bundles_post_ra>
// kernel: tpu_custom_call.1
= control target key start
LH: loop header
LB: loop body
LE: loop exit
PB: predicated region body
PF: predicated region fallthrough
CT: control target
= control target key end

     0   :  { %14 = vsyncpa [#allocation4], 0  ;;  %s4866_s0 = inlined_call_operand.hbm [shape: f32[2,8,8,64], index: 0, kind: input, shape index: {}]   ;;  %s4867_s1 = inlined_call_operand.vmem [shape: f32[1,64], index: 1, kind: input, shape index: {}]   ;;  %s4868_s2 = inlined_call_operand.vmem [shape: f32[1,64], index: 2, kind: input, shape index: {}]   ;;  %s4869_s3 = inlined_call_operand.vmem [shape: f32[64,32], index: 3, kind: input, shape index: {}]   ;;  %s4870_s4 = inlined_call_operand.vmem [shape: f32[32,64], index: 4, kind: input, shape index: {}]   ;;  %s4871_s5 = inlined_call_operand.hbm [shape: bf16[9,64,128], index: 5, kind: input, shape index: {}]   ;;  %s4872_s6 = inlined_call_operand.vmem [shape: f32[1,128], index: 6, kind: input, shape index: {}]   ;;  %s4873_s7 = inlined_call_operand.vmem [shape: f32[2,1,128], index: 7, kind: input, shape index: {}]   ;;  %s4874_s8 = inlined_call_operand.vmem [shape: bf16[128,128], index: 8, kind: input, shape index: {}]   ;;  %s4875_s9 = inlined_call_operand.hbm [shape: bf16[2,8,8,128], index: 9, kind: output, shape index: {}]  }
   0x1   :  { %16 = vsyncpa [#allocation4 + $0x1], 0 }
   0x2   :  { %17 = vsyncpa [#allocation7], 0 }
   0x3   :  { %18 = vsyncpa [#allocation5], 0 }
   0x4   :  { %20 = vsyncpa [#allocation5 + $0x1], 0  ;;  %s4070_s30 = smov 0   ;;  %s4072_s10 = smov 0  }
   0x5   :  { %s4074_s11 = smov 0   ;;  %s4076_s12 = smov 0  }
   0x6 LB: > { %s4091_s13 = sadd.s32 4294967295, %s4005_s12   ;;  %s3069_s14 = sadd.s32 4294967294, %s4005_s12   ;;  %s4005_s12 = sphi %s4076_s12, %s4908_s12   ;;  %s4001_s11 = sphi %s4074_s11, %s4911_s11   ;;  %s3997_s10 = sphi %s4072_s10, %s4910_s10   ;;  %s3993_s30 = sphi %s4070_s30, %s4909_s30  }
   0x7   : > { %p46_p0 = scmp.ne.s32.totalorder %s3997_s10, %s3993_s30  ;;  %p4876_p1 = scmp.eq.s32.totalorder %s4091_s13, 0 }
   0x8   : > { %p249_p3 = scmp.eq.s32.totalorder %s3069_s14, 1  ;;  %p3070_p5 = scmp.ge.s32.totalorder %s4005_s12, 1 }
   0x9   : > { %p4100_p4 = por %p4876_p1, %p46_p0  ;;  %p256_p7 = scmp.lt.s32.totalorder %s4005_s12, 3 }
   0xa   : > { %p4105_p6 = por %p249_p3, %p46_p0  ;;  %s4007_s18 = smov [#allocation6]  }
   0xb   : > { %s4882_s15 = scalar_select %p4100_p4, 1, 0 }
   0xc   : > { %s4883_s16 = scalar_select %p4105_p6, 1, 0 }
   0xd   : > { %p4111_p9 = pnand %p3070_p5, %p256_p7  ;;  %s280_s19 = sshll.u32 %s4007_s18, 4  ;;  %s4115_s19 = int_to_ptr.vmem [resolvable:$true] %s280_s19 }
   0xe   : > { %4884 = sst [smem:[#allocation12_spill]] %s4883_s16  ;;  %s4127_s21 = sadd.s32 1, %s4005_s12  }
   0xf   : > { %s4885_s17 = scalar_select %p4111_p9, 1, 0 }
  0x10   : > { %p3724_p10 = pneg %p4111_p9  ;;  %4887 = sst [smem:[#allocation13_spill]] %s4127_s21 }
  0x11   : > { %s33_s22 = sadd.s32 1, %s4001_s11  ;;  %s30_s23 = ssub.s32 %s4005_s12, %s4127_s21 }
  0x12   : > { %p4122_p12 = pnand %p3724_p10, %p4876_p1  ;;  %s3877_s26 = scalar_lea.hbm %s4871_s5, 4608 }
  0x13   : > { %p3878_p13 = scmp.ne.s32.totalorder %s4871_s5, %s3877_s26  ;;  %p3884_p7 = scmp.lt.u32.totalorder %s3877_s26, %s4871_s5 }
  0x14   : > { %p3879_p0 = pneg %p4122_p12 }
  0x16   : > { %p3880_p3 = pnand %p3879_p0, %p3878_p13 }
  0x18   : > { %p3881_p5 = pneg %p3880_p3 }
  0x1a   : > { %p3886_p10 = pnand %p3884_p7, %p3881_p5 }
  0x1c   : > { %3889 = shalt.err (!%p3886_p10)
}
  0x1d   : > { %s3890_s18 = scalar_lea.vmem %s4115_s19, 4608  ;;  %p3898_p2 = scmp.lt.s32.totalorder %s4115_s19, %s4115_s19 }
  0x1e   : > { %p3891_p11 = scmp.ne.s32.totalorder %s4115_s19, %s3890_s18  ;;  %p3899_p6 = scmp.lt.s32.totalorder %s3890_s18, %s3890_s18 }
  0x20   : > { %p3893_p8 = pnand %p3891_p11, %p3879_p0  ;;  %p3900_p4 = por %p3899_p6, %p3898_p2 }
  0x22   : > { %p3894_p1 = pneg %p3893_p8 }
  0x24   : > { %p3901_p9 = pnand %p3900_p4, %p3894_p1 }
  0x26   : > { %3904 = shalt.err (!%p3901_p9)
}
  0x27   : > { %s4008_s24 = smov 64   ;;  %s4009_s25 = smov 4  }
  0x28   : > { %3727 = dma.hbm_to_vmem [thread:$0]  (!%p4122_p12), %s4871_s5, 4608, %s4115_s19, [#allocation7], %s4008_s24, %s4008_s24, %s4009_s25  }
  0x29   : > { %p31_p2 = scmp.eq.s32.totalorder %s30_s23, 0  ;;  %p40_p1 = scmp.ne.s32.totalorder %s4001_s11, %s3997_s10 }
  0x2a   : > { %p41_p4 = scmp.eq.s32.totalorder %s4005_s12, 0  ;;  %p3737_p6 = scmp.lt.s32.totalorder %s4005_s12, 2 }
  0x2b   : > { %s4158_s28 = scalar_select %p31_p2, %s4001_s11, %s33_s22  }
  0x2c   : > { %p42_p8 = por %p41_p4, %p40_p1  ;;  %p4888_p9 = scmp.eq.s32.totalorder %s4091_s13, 1 }
  0x2d   : > { %s300_s14 = sand.u32 1, %s4001_s11   ;;  %s3250_s18 = sshll.u32 %s4005_s12, 10 }
  0x2e   : > { %p4162_p11 = por %p4888_p9, %p40_p1  ;;  %s3073_s21 = sshll.u32 %s300_s14, 6 }
  0x2f   : > { %s4171_s26 = scalar_lea.hbm %s4866_s0, %s3250_s18  ;;  %s304_s19 = scalar_lea.vmem [#allocation3], %s3073_s21 }
  0x30   : > { %s311_s22 = sshll.u32 %s304_s19, 4  ;;  %p4173_p12 = pnand %p3737_p6, %p42_p8  ;;  %s4177_s22 = int_to_ptr.vmem [resolvable:$true] %s311_s22 }
  0x31   : > { %s4179_s24 = scalar_lea.sflag [#allocation4], %s300_s14  ;;  %s3905_s25 = scalar_lea.hbm %s4171_s26, 1024 }
  0x32   : > { %p3906_p13 = scmp.ne.s32.totalorder %s4171_s26, %s3905_s25  ;;  %p3907_p0 = pneg %p4173_p12 }
  0x33   : > { %s3910_s27 = scalar_lea.hbm %s4866_s0, 2048  ;;  %p3911_p7 = scmp.lt.u32.totalorder %s4171_s26, %s4866_s0 }
  0x34   : > { %p3908_p3 = pnand %p3907_p0, %p3906_p13  ;;  %p3912_p10 = scmp.lt.u32.totalorder %s3910_s27, %s3905_s25 }
  0x35   : > { %p3914_p1 = scmp.lt.u32.totalorder %s3905_s25, %s4171_s26 }
  0x36   : > { %p3909_p5 = pneg %p3908_p3  ;;  %p3913_p2 = por %p3912_p10, %p3911_p7 }
  0x38   : > { %p3915_p4 = por %p3914_p1, %p3913_p2 }
  0x3a   : > { %p3916_p6 = pnand %p3915_p4, %p3909_p5 }
  0x3c   : > { %3919 = shalt.err (!%p3916_p6)
}
  0x3d   : > { %s3920_s14 = scalar_lea.vmem %s4177_s22, 1024  ;;  %s4010_s19 = smov [#allocation3]  }
  0x3e   : > { %p3921_p8 = scmp.ne.s32.totalorder %s4177_s22, %s3920_s14  ;;  %s3925_s16 = sshll.u32 %s4010_s19, 4  ;;  %s3926_s16 = int_to_ptr.vmem [resolvable:$false] %s3925_s16 }
  0x3f   : > { %s3927_s21 = scalar_lea.vmem %s3926_s16, 2048  ;;  %p3928_p3 = scmp.lt.s32.totalorder %s4177_s22, %s3926_s16 }
  0x40   : > { %p3923_p9 = pnand %p3921_p8, %p3907_p0  ;;  %p3929_p7 = scmp.lt.s32.totalorder %s3927_s21, %s3920_s14 }
  0x42   : > { %p3924_p13 = pneg %p3923_p9  ;;  %p3930_p10 = por %p3929_p7, %p3928_p3 }
  0x44   : > { %p3931_p2 = pnand %p3930_p10, %p3924_p13 }
  0x46   : > { %3934 = shalt.err (!%p3931_p2)
}
  0x47   : > { %s4011_s25 = smov 128   ;;  %s4012_s27 = smov 8  }
  0x48   : > { %3731 = dma.hbm_to_vmem [thread:$0]  (!%p4173_p12), %s4171_s26, 1024, %s4177_s22, %s4179_s24, %s4011_s25, %s4011_s25, %s4012_s27  }
  0x49   : > { %p4891_p0 = scmp.ne.s32.totalorder %s4885_s17, 0 }
  0x4a   : > { %s4210_s18 = sand.u32 (!%p4891_p0), 1, %s3997_s10   ;;  %p4892_p5 = scmp.ne.s32.totalorder (!%p4891_p0), %s4882_s15, 0 }
  0x4b   : > { %329 = sbr.rel (%p4891_p0) target bundleno = 1198 (0x4ae), region = 56  ;;  %s3077_s20 = sshll.u32 (!%p4891_p0), %s4210_s18, 6 }
  0x4c   : > { %s332_s14 = scalar_lea.sflag (!%p4891_p0), [#allocation4], %s4210_s18  ;;  %s4214_s19 = scalar_lea.vmem (!%p4891_p0), [#allocation3], %s3077_s20 }
  0x52   : > { %3980 = dma.done.wait (%p4892_p5), %s332_s14, 1024  }
  0x53   : > { %3982 = vsyncadd (%p4892_p5), %s332_s14, 4294966272  ;;  %p4893_p12 = scmp.eq.s32.totalorder %s4091_s13, 0 }
  0x55   : > { %3984 = dma.done.wait (%p4893_p12), [#allocation7], 4608   ;;  %p4894_p1 = pmov %p4893_p12 }
  0x56   : > { %p377_p4 = scmp.lt.s32.totalorder %s4091_s13, 1  ;;  %v4013_v0 = vmov 0.0|0.0   ;;  %vm4014_vm0 = vmmov 0   ;;  %v4015_v1 = vmov 0.0   ;;  %v391_v2 = vld [vmem:[%s4869_s3] sm:$0xff]  ;;  %v392_v3 = vld [vmem:[%s4869_s3 + $0x8] sm:$0xff] }
  0x57   : > { %3986 = vsyncadd (%p4894_p1), [#allocation7], 4294962688  ;;  %3616 = vmatprep.subr.bf16.mxu1 %v4013_v0  ;;  %3408 = vmatprep.mubr.msk.f32.mxu1 %vm4014_vm0, %v4015_v1  ;;  %v393_v4 = vld [vmem:[%s4869_s3 + $0x10] sm:$0xff]  ;;  %vm403_vm1 = vcmask 523264   ;;  %v4245_v5 = vpack.c.bf16 %v392_v3, %v391_v2  ;;  %v394_v6 = vld [vmem:[%s4869_s3 + $0x18] sm:$0xff]  ;;  %vm527_vm2 = vcmask 261120  }
  0x58   : > { %s4228_s26 = scalar_select %p377_p4, %s4091_s13, 1  ;;  %v4251_v7 = vld [vmem:[%s4214_s19] sm:$0xff]  ;;  %v4254_v8 = vpack.c.bf16 %v394_v6, %v393_v4  ;;  %v4257_v9 = vld [vmem:[%s4214_s19 + $0x8] sm:$0xff]  ;;  %v4260_v10 = vld [vmem:[%s4214_s19 + $0x10] sm:$0xff] }
  0x59   : > { %3618 = vmatpush3.bf16.msra.mxu1 %v4245_v5  ;;  %v4263_v11 = vld [vmem:[%s4214_s19 + $0x18] sm:$0xff]  ;;  %v404_v12 = vsel %vm403_vm1, %v4251_v7, 0.0  ;;  %v395_v13 = vld [vmem:[%s4869_s3 + $0x20] sm:$0xff]  ;;  %v405_v15 = vsel %vm403_vm1, %v4257_v9, 0.0  ;;  %v407_v16 = vsel %vm403_vm1, %v4260_v10, 0.0  ;;  %v4279_v17 = vld [vmem:[%s4214_s19 + $0x20] sm:$0xff]  ;;  %v425_v49 = vmul.f32 %v4251_v7, %v4251_v7 }
  0x5a   : > { %s379_s23 = scalar_lea.vmem %s4873_s7, %s4228_s26  ;;  %3619 = vmatprep.subr.bf16.mxu1 %v4013_v0  ;;  %v396_v14 = vld [vmem:[%s4869_s3 + $0x28] sm:$0xff]  ;;  %v406_v18 = vadd.f32 %v405_v15, %v404_v12  ;;  %v409_v19 = vsel %vm403_vm1, %v4263_v11, 0.0  ;;  %v4287_v21 = vld [vmem:[%s4214_s19 + $0x28] sm:$0xff]  ;;  %v397_v23 = vld [vmem:[%s4869_s3 + $0x30] sm:$0xff]  ;;  %v411_v25 = vsel %vm403_vm1, %v4279_v17, 0.0  ;;  %v426_v50 = vmul.f32 %v4257_v9, %v4257_v9  ;;  %s4895_s20 = sshll.u32 %s4210_s18, 5 }
  0x5b   : > { %v4284_v20 = vpack.c.bf16 %v396_v14, %v395_v13  ;;  %v398_v24 = vld [vmem:[%s4869_s3 + $0x38] sm:$0xff]  ;;  %v4299_v26 = vld [vmem:[%s4214_s19 + $0x30] sm:$0xff]  ;;  %v413_v28 = vsel %vm403_vm1, %v4287_v21, 0.0  ;;  %v4307_v30 = vld [vmem:[%s4214_s19 + $0x38] sm:$0xff]  ;;  %v427_v51 = vmul.f32 %v4260_v10, %v4260_v10  ;;  %v433_v52 = vsel %vm403_vm1, %v425_v49, 0.0  ;;  %s4399_s14 = scalar_lea.vmem [#allocation8], %s4895_s20 }
  0x5c   : > { %v408_v22 = vadd.f32 %v407_v16, %v406_v18  ;;  %v4304_v29 = vpack.c.bf16 %v398_v24, %v397_v23  ;;  %v415_v32 = vsel %vm403_vm1, %v4299_v26, 0.0  ;;  %v417_v34 = vsel %vm403_vm1, %v4307_v30, 0.0  ;;  %v399_v41 = vld [vmem:[%s4870_s4] sm:$0xff]  ;;  %v400_v42 = vld [vmem:[%s4870_s4 + $0x8] sm:$0xff]  ;;  %v401_v46 = vld [vmem:[%s4870_s4 + $0x10] sm:$0xff]  ;;  %p4896_p6 = scmp.ne.s32.totalorder %s4091_s13, 0 }
  0x5d   : > { %3621 = vmatpush3.bf16.msra.mxu1 %v4254_v8  ;;  %v3629_v44 = vpack.c.bf16 %v400_v42, %v399_v41  ;;  %v402_v47 = vld [vmem:[%s4870_s4 + $0x18] sm:$0xff]  ;;  %v434_v53 = vsel %vm403_vm1, %v426_v50, 0.0  ;;  %v428_v55 = vmul.f32 %v4263_v11, %v4263_v11  ;;  %v436_v56 = vsel %vm403_vm1, %v427_v51, 0.0 }
  0x5e   : > { %3622 = vmatprep.subr.bf16.mxu1 %v4013_v0  ;;  %v410_v27 = vadd.f32 %v409_v19, %v408_v22  ;;  %v3632_v48 = vpack.c.bf16 %v402_v47, %v401_v46  ;;  %v435_v54 = vadd.f32 %v434_v53, %v433_v52  ;;  %v429_v58 = vmul.f32 %v4279_v17, %v4279_v17 }
  0x5f   : > { %v438_v59 = vsel %vm403_vm1, %v428_v55, 0.0  ;;  %v430_v61 = vmul.f32 %v4287_v21, %v4287_v21  ;;  %v431_v2 = vmul.f32 %v4299_v26, %v4299_v26  ;;  %v432_v6 = vmul.f32 %v4307_v30, %v4307_v30 }
  0x60   : > { %v412_v31 = vadd.f32 %v411_v25, %v410_v27  ;;  %v437_v57 = vadd.f32 %v436_v56, %v435_v54  ;;  %v440_v62 = vsel %vm403_vm1, %v429_v58, 0.0  ;;  %vm866_vm3 = vcmask (!%p4896_p6), 519168  }
  0x61   : > { %3624 = vmatpush3.bf16.msra.mxu1 %v4284_v20  ;;  %v442_v3 = vsel %vm403_vm1, %v430_v61, 0.0  ;;  %v444_v12 = vsel %vm403_vm1, %v431_v2, 0.0  ;;  %v446_v14 = vsel %vm403_vm1, %v432_v6, 0.0  ;;  %vm868_vm4 = vcmask (!%p4896_p6), 516096  }
  0x62   : > { %3625 = vmatprep.subr.bf16.mxu1 %v4013_v0  ;;  %v414_v33 = vadd.f32 %v413_v28, %v412_v31  ;;  %v439_v60 = vadd.f32 %v438_v59, %v437_v57 }
  0x64   : > { %v416_v35 = vadd.f32 %v415_v32, %v414_v33  ;;  %v441_v63 = vadd.f32 %v440_v62, %v439_v60 }
  0x65   : > { %3627 = vmatpush3.bf16.msra.mxu1 %v4304_v29 }
  0x66   : > { %3628 = vmatprep.subr.bf16.mxu1 %v4013_v0  ;;  %v418_v36 = vadd.f32 %v417_v34, %v416_v35  ;;  %v443_v4 = vadd.f32 %v442_v3, %v441_v63  ;;  %v754_v35 = vlaneseq }
  0x68   : > { %v419_v37 = vrot.slane %v418_v36, 4  ;;  %v445_v13 = vadd.f32 %v444_v12, %v443_v4 }
  0x6a   : > { %v420_v38 = vadd.f32 %v419_v37, %v418_v36  ;;  %v447_v15 = vadd.f32 %v446_v14, %v445_v13 }
  0x6c   : > { %v421_v39 = vrot.slane %v420_v38, 2  ;;  %v448_v16 = vrot.slane %v447_v15, 4 }
  0x6e   : > { %v422_v40 = vadd.f32 %v421_v39, %v420_v38  ;;  %v449_v18 = vadd.f32 %v448_v16, %v447_v15  ;;  %v755_v38 = vshrl.u32 %v754_v35, 7 }
  0x70   : > { %v423_v43 = vrot.slane %v422_v40, 1  ;;  %v450_v23 = vrot.slane %v449_v18, 2 }
  0x72   : > { %v424_v45 = vadd.f32 %v423_v43, %v422_v40  ;;  %v451_v24 = vadd.f32 %v450_v23, %v449_v18  ;;  %v4373_v40 = vsub.s32 0, %v755_v38 }
  0x74   : > { %3409 = vmatmul.mubr.msk.f32.vlgmr.msra.gmra.mrb[0].mxu1 %vm403_vm1, %v424_v45  ;;  %v452_v25 = vrot.slane %v451_v24, 1 }
  0x75   : > { %3630 = vmatpush3.bf16.msra.mxu1 %v3629_v44  ;;  %3419 = vmatprep.mubr.msk.f32.mxu1 %vm4014_vm0, %v4015_v1 }
  0x76   : > { %3631 = vmatprep.subr.bf16.mxu1 %v4013_v0  ;;  %v453_v27 = vadd.f32 %v452_v25, %v451_v24 }
  0x79   : > { %3633 = vmatpush3.bf16.msra.mxu1 %v3632_v48 }
  0x7a   : > { %3634 = vmatprep.subr.bf16.mxu1 %v4013_v0 }
 0x147   : > { %v523_v19 = vpop.f32.mrb[0].mxu1 }
 0x148   : > { %v3410_v22 = vpop.f32.mrb[1].mxu1  ;;  %3420 = vmatmul.mubr.msk.f32.vlgmr.msra.gmra.mrb[2].mxu1 %vm527_vm2, %v523_v19 }
 0x149   : > { %3636 = vmatpush3.bf16.msra.mxu1 %v4245_v5  ;;  %3438 = vmatprep.mubr.msk.f32.mxu1 %vm4014_vm0, %v4015_v1 }
 0x14a   : > { %3637 = vmatprep.subr.bf16.mxu1 %v4013_v0 }
 0x14d   : > { %3639 = vmatpush3.bf16.msra.mxu1 %v4254_v8 }
 0x14e   : > { %3640 = vmatprep.subr.bf16.mxu1 %v4013_v0 }
 0x151   : > { %3642 = vmatpush3.bf16.msra.mxu1 %v4284_v20 }
 0x152   : > { %3643 = vmatprep.subr.bf16.mxu1 %v4013_v0 }
 0x155   : > { %3645 = vmatpush3.bf16.msra.mxu1 %v4304_v29 }
 0x156   : > { %3646 = vmatprep.subr.bf16.mxu1 %v4013_v0 }
 0x158   : > { %3439 = vmatmul.mubr.msk.f32.vlgmr.msra.gmra.mrb[4].mxu1 %vm403_vm1, %v453_v27 }
 0x159   : > { %3648 = vmatpush3.bf16.msra.mxu1 %v3629_v44  ;;  %3449 = vmatprep.mubr.msk.f32.mxu1 %vm4014_vm0, %v4015_v1 }
 0x15a   : > { %3649 = vmatprep.subr.bf16.mxu1 %v4013_v0 }
 0x15d   : > { %3651 = vmatpush3.bf16.msra.mxu1 %v3632_v48 }
 0x21b   : > { %v597_v5 = vpop.f32.mrb[2].mxu1 }
 0x21c   : > { %v3421_v8 = vpop.f32.mrb[3].mxu1  ;;  %v601_v31 = vmul.f32 0.015625, %v597_v5 }
 0x21e   : > { %v749_v29 = vmul.f32 %v601_v31, %v601_v31  ;;  %v757_v0 = vrot.slane %v601_v31, %v4373_v40 }
 0x220   : > { %v758_v42 = vsub.f32 %v4251_v7, %v757_v0  ;;  %v759_v43 = vsub.f32 %v4257_v9, %v757_v0  ;;  %v760_v44 = vsub.f32 %v4260_v10, %v757_v0  ;;  %v761_v45 = vsub.f32 %v4263_v11, %v757_v0  ;;  %v3084_v7 = vld [vmem:[%s4867_s1] ss:$0 sm:$0xff] }
 0x221   : > { %v762_v47 = vsub.f32 %v4279_v17, %v757_v0  ;;  %v763_v48 = vsub.f32 %v4287_v21, %v757_v0  ;;  %v764_v49 = vsub.f32 %v4299_v26, %v757_v0  ;;  %v765_v50 = vsub.f32 %v4307_v30, %v757_v0  ;;  %v3085_v11 = vld [vmem:[%s4868_s2] ss:$0 sm:$0xff] }
 0x22b   : > { %v671_v28 = vpop.f32.mrb[4].mxu1 }
 0x22c   : > { %v3440_v20 = vpop.f32.mrb[5].mxu1  ;;  %3450 = vmatmul.mubr.msk.f32.vlgmr.msra.gmra.mrb[6].mxu1 %vm527_vm2, %v671_v28 }
 0x2ff   : > { %v744_v32 = vpop.f32.mrb[6].mxu1 }
 0x300   : > { %v748_v33 = vmul.f32 0.015625, %v744_v32  ;;  %v3451_v34 = vpop.f32.mrb[7].mxu1 }
 0x302   : > { %v750_v36 = vsub.f32 %v748_v33, %v749_v29 }
 0x304   : > { %v751_v37 = vmax.f32 %v750_v36, 0.0 }
 0x306   : > { %v752_v39 = vadd.f32 1e-06, %v751_v37 }
 0x308   : > { %3783 = vrsqrt.f32 %v752_v39 }
 0x312   : > { %v3784_v41 = vpop.eup %3783 }
 0x313   : > { %v769_v46 = vrot.slane %v3784_v41, %v4373_v40 }
 0x315   : > { %v770_v51 = vmul.f32 %v769_v46, %v758_v42  ;;  %v771_v9 = vmul.f32 %v769_v46, %v759_v43  ;;  %v772_v52 = vmul.f32 %v769_v46, %v760_v44  ;;  %v773_v10 = vmul.f32 %v769_v46, %v761_v45 }
 0x316   : > { %v774_v53 = vmul.f32 %v769_v46, %v762_v47  ;;  %v775_v17 = vmul.f32 %v769_v46, %v763_v48  ;;  %v776_v54 = vmul.f32 %v769_v46, %v764_v49  ;;  %v777_v21 = vmul.f32 %v769_v46, %v765_v50 }
 0x317   : > { %v784_v55 = vmul.f32 %v3084_v7, %v770_v51  ;;  %v785_v26 = vmul.f32 %v3084_v7, %v771_v9  ;;  %v786_v56 = vmul.f32 %v3084_v7, %v772_v52  ;;  %v787_v30 = vmul.f32 %v3084_v7, %v773_v10 }
 0x318   : > { %v788_v57 = vmul.f32 %v3084_v7, %v774_v53  ;;  %v789_v58 = vmul.f32 %v3084_v7, %v775_v17  ;;  %v790_v59 = vmul.f32 %v3084_v7, %v776_v54  ;;  %v791_v60 = vmul.f32 %v3084_v7, %v777_v21 }
 0x319   : > { %v798_v61 = vadd.f32 %v3085_v11, %v784_v55  ;;  %v799_v62 = vadd.f32 %v3085_v11, %v785_v26  ;;  %v800_v63 = vadd.f32 %v3085_v11, %v786_v56  ;;  %v801_v2 = vadd.f32 %v3085_v11, %v787_v30 }
 0x31a   : > { %v802_v3 = vadd.f32 %v3085_v11, %v788_v57  ;;  %v803_v4 = vadd.f32 %v3085_v11, %v789_v58  ;;  %v804_v6 = vadd.f32 %v3085_v11, %v790_v59  ;;  %v805_v15 = vadd.f32 %v3085_v11, %v791_v60 }
 0x31b   : > { %v3086_v12 = vmul.f32 -1.442695, %v798_v61  ;;  %v3087_v13 = vmul.f32 -1.442695, %v799_v62  ;;  %v3088_v14 = vmul.f32 -1.442695, %v800_v63 }
 0x31c   : > { %v3089_v16 = vmul.f32 -1.442695, %v801_v2  ;;  %v3090_v18 = vmul.f32 -1.442695, %v802_v3  ;;  %v3091_v19 = vmul.f32 -1.442695, %v803_v4 }
 0x31d   : > { %3785 = vpow2.f32 %v3086_v12  ;;  %v3092_v22 = vmul.f32 -1.442695, %v804_v6  ;;  %v3093_v23 = vmul.f32 -1.442695, %v805_v15  ;;  %v4016_v10 = vmov (!%p4896_p6), 0  }
 0x31e   : > { %3787 = vpow2.f32 %v3087_v13  ;;  %867 = vst.msk [vmem:[#allocation2] sm:$0xf] (!%p4896_p6), %vm866_vm3, %v4016_v10  ;;  %870 = vst.msk [vmem:[#allocation2 + $0x8] sm:$0xf] (!%p4896_p6), %vm866_vm3, %v4016_v10 }
 0x31f   : > { %3789 = vpow2.f32 %v3088_v14  ;;  %872 = vst.msk [vmem:[#allocation2 + $0x10] sm:$0xf] (!%p4896_p6), %vm866_vm3, %v4016_v10  ;;  %874 = vst.msk [vmem:[#allocation2 + $0x18] sm:$0xf] (!%p4896_p6), %vm866_vm3, %v4016_v10 }
 0x320   : > { %3791 = vpow2.f32 %v3089_v16  ;;  %876 = vst.msk [vmem:[#allocation2 + $0x20] sm:$0xf] (!%p4896_p6), %vm866_vm3, %v4016_v10  ;;  %878 = vst.msk [vmem:[#allocation2 + $0x28] sm:$0xf] (!%p4896_p6), %vm866_vm3, %v4016_v10 }
 0x321   : > { %3793 = vpow2.f32 %v3090_v18  ;;  %880 = vst.msk [vmem:[#allocation2 + $0x30] sm:$0xf] (!%p4896_p6), %vm866_vm3, %v4016_v10  ;;  %882 = vst.msk [vmem:[#allocation2 + $0x38] sm:$0xf] (!%p4896_p6), %vm866_vm3, %v4016_v10 }
 0x322   : > { %3795 = vpow2.f32 %v3091_v19  ;;  %884 = vst.msk [vmem:[#allocation2 + $0x40] sm:$0xf] (!%p4896_p6), %vm866_vm3, %v4016_v10  ;;  %886 = vst.msk [vmem:[#allocation2 + $0x48] sm:$0xf] (!%p4896_p6), %vm866_vm3, %v4016_v10 }
 0x323   : > { %3797 = vpow2.f32 %v3092_v22  ;;  %869 = vst.msk [vmem:[#allocation2 + $0x4] sm:$0x1] (!%p4896_p6), %vm868_vm4, %v4016_v10  ;;  %871 = vst.msk [vmem:[#allocation2 + $0xc] sm:$0x1] (!%p4896_p6), %vm868_vm4, %v4016_v10 }
 0x324   : > { %3799 = vpow2.f32 %v3093_v23  ;;  %873 = vst.msk [vmem:[#allocation2 + $0x14] sm:$0x1] (!%p4896_p6), %vm868_vm4, %v4016_v10  ;;  %875 = vst.msk [vmem:[#allocation2 + $0x1c] sm:$0x1] (!%p4896_p6), %vm868_vm4, %v4016_v10 }
 0x325   : > { %877 = vst.msk [vmem:[#allocation2 + $0x24] sm:$0x1] (!%p4896_p6), %vm868_vm4, %v4016_v10  ;;  %879 = vst.msk [vmem:[#allocation2 + $0x2c] sm:$0x1] (!%p4896_p6), %vm868_vm4, %v4016_v10 }
 0x326   : > { %881 = vst.msk [vmem:[#allocation2 + $0x34] sm:$0x1] (!%p4896_p6), %vm868_vm4, %v4016_v10  ;;  %883 = vst.msk [vmem:[#allocation2 + $0x3c] sm:$0x1] (!%p4896_p6), %vm868_vm4, %v4016_v10 }
 0x327   : > { %v3786_v24 = vpop.eup %3785  ;;  %885 = vst.msk [vmem:[#allocation2 + $0x44] sm:$0x1] (!%p4896_p6), %vm868_vm4, %v4016_v10  ;;  %887 = vst.msk [vmem:[#allocation2 + $0x4c] sm:$0x1] (!%p4896_p6), %vm868_vm4, %v4016_v10 }
 0x328   : > { %v3788_v25 = vpop.eup %3787  ;;  %v830_v27 = vadd.f32 1.0, %v3786_v24 }
 0x329   : > { %v3790_v5 = vpop.eup %3789  ;;  %v831_v8 = vadd.f32 1.0, %v3788_v25 }
 0x32a   : > { %v3792_v28 = vpop.eup %3791  ;;  %v832_v20 = vadd.f32 1.0, %v3790_v5  ;;  %3801 = vrcp.f32 %v830_v27 }
 0x32b   : > { %v3794_v31 = vpop.eup %3793  ;;  %v833_v32 = vadd.f32 1.0, %v3792_v28  ;;  %3803 = vrcp.f32 %v831_v8 }
 0x32c   : > { %v3796_v29 = vpop.eup %3795  ;;  %v834_v33 = vadd.f32 1.0, %v3794_v31  ;;  %3805 = vrcp.f32 %v832_v20 }
 0x32d   : > { %v3798_v34 = vpop.eup %3797  ;;  %v835_v35 = vadd.f32 1.0, %v3796_v29  ;;  %3807 = vrcp.f32 %v833_v32 }
 0x32e   : > { %v3800_v36 = vpop.eup %3799  ;;  %v836_v37 = vadd.f32 1.0, %v3798_v34  ;;  %3809 = vrcp.f32 %v834_v33 }
 0x32f   : > { %v837_v38 = vadd.f32 1.0, %v3800_v36  ;;  %3811 = vrcp.f32 %v835_v35 }
 0x330   : > { %3813 = vrcp.f32 %v836_v37 }
 0x331   : > { %3815 = vrcp.f32 %v837_v38 }
 0x334   : > { %v3802_v39 = vpop.eup %3801 }
 0x335   : > { %v3804_v0 = vpop.eup %3803  ;;  %v854_v41 = vmul.f32 %v3802_v39, %v798_v61 }
 0x336   : > { %v3806_v42 = vpop.eup %3805  ;;  %v855_v43 = vmul.f32 %v3804_v0, %v799_v62  ;;  %865 = sbr.rel (%p4896_p6) target bundleno = 829 (0x33d), region = 68 }
 0x337   : > { %v3808_v44 = vpop.eup %3807  ;;  %v856_v45 = vmul.f32 %v3806_v42, %v800_v63 }
 0x338   : > { %v3810_v46 = vpop.eup %3809  ;;  %v857_v47 = vmul.f32 %v3808_v44, %v801_v2 }
 0x339   : > { %v3812_v48 = vpop.eup %3811  ;;  %v858_v49 = vmul.f32 %v3810_v46, %v802_v3 }
 0x33a   : > { %v3814_v50 = vpop.eup %3813  ;;  %v4391_v7 = vmul.f32 %v3812_v48, %v803_v4 }
 0x33b   : > { %v3816_v51 = vpop.eup %3815  ;;  %v4393_v9 = vmul.f32 %v3814_v50, %v804_v6 }
 0x33c   : > { %v4395_v52 = vmul.f32 %v3816_v51, %v805_v15 }
 0x33d PF: > { %v3817_v11 = vld [vmem:[#allocation6 + $0x40] sm:$0xff]   ;;  %v3251_v53 = vpack.c.bf16 %v854_v41, %v854_v41  ;;  %v3818_v17 = vld [vmem:[#allocation6 + $0x48] sm:$0xff]   ;;  %vm1001_vm5 = vcmask 519168   ;;  %vm1007_vm6 = vcmask 516096   ;;  %v3252_v55 = vpack.c.bf16 %v855_v43, %v855_v43  ;;  %v3819_v26 = vld [vmem:[#allocation6 + $0x50] sm:$0xff]   ;;  %s3259_s19 = sshll.u32 %s4091_s13, 9 }
 0x33e   : > { %3484 = vmatprep.subr.bf16.mxu0 %v3817_v11  ;;  %vm1002_vm7 = vsmask.f32 7938  ;;  %v1004_v30 = vld [vmem:[#allocation2 + $0x8] sm:$0xf]  ;;  %v3253_v57 = vpack.c.bf16 %v856_v45, %v856_v45  ;;  %vm1008_vm9 = vsmask.f32 256  ;;  %v3254_v6 = vpack.c.bf16 %v857_v47, %v857_v47  ;;  %s4816_s13 = scalar_lea.hbm %s4875_s9, %s3259_s19 }
 0x33f   : > { %v921_v54 = vshrl.u32 %v3251_v53, 16  ;;  %3485 = vmatpush3.bf16.msra.mxu0 %v3817_v11  ;;  %v924_v21 = vshll.u32 %v3251_v53, 16  ;;  %vm4413_vm8 = vmand %vm1001_vm5, %vm1002_vm7  ;;  %v1010_v59 = vld [vmem:[#allocation2 + $0xc] sm:$0x1]  ;;  %v4417_v60 = vld [vmem:[#allocation2 + $0x4] sm:$0x1]  ;;  %v3255_v12 = vpack.c.bf16 %v858_v49, %v858_v49  ;;  %v3256_v27 = vpack.c.bf16 %v4391_v7, %v4391_v7 }
 0x340   : > { %3486 = vmatprep.subr.bf16.mxu0 %v3818_v17  ;;  %vm4419_vm10 = vmand %vm1007_vm6, %vm1008_vm9  ;;  %v4423_v2 = vld [vmem:[#allocation2] sm:$0xe]  ;;  %vm1461_vm11 = vcmask 1042432   ;;  %vm1462_vm12 = vcmask 1046532   ;;  %v1466_v3 = vrot.slane %v4417_v60, 5  ;;  %v929_v4 = vshrl.u32 %v3252_v55, 16 }
 0x341   : > { %v923_v56 = vrot.slane %v921_v54, 7  ;;  %v3820_v13 = vld [vmem:[#allocation6 + $0x58] sm:$0xff]   ;;  %v932_v16 = vshll.u32 %v3252_v55, 16  ;;  %v937_v18 = vshrl.u32 %v3253_v57, 16  ;;  %v1013_v19 = vld [vmem:[#allocation2 + $0x10] sm:$0xf]  ;;  %v4435_v28 = vpack.c.bf16 %v4393_v9, %v4393_v9  ;;  %vm4445_vm13 = vmor %vm1461_vm11, %vm1462_vm12 }
 0x342   : > { %v931_v22 = vrot.slane %v929_v4, 7  ;;  %v940_v23 = vshll.u32 %v3253_v57, 16  ;;  %v1016_v24 = vld [vmem:[#allocation2 + $0x14] sm:$0x1]  ;;  %v1019_v25 = vld [vmem:[#allocation2 + $0x18] sm:$0xf]  ;;  %v4439_v20 = vpack.c.bf16 %v4395_v52, %v4395_v52 }
 0x343   : > { %v926_v61 = vor.u32 %v924_v21, %v923_v56  ;;  %v927_v62 = vrot.slane %v923_v56, 4  ;;  %3487 = vmatpush3.bf16.msra.mxu0 %v3818_v17  ;;  %v3127_v5 = vrot.slane %v4423_v2, 9  ;;  %v939_v8 = vrot.slane %v937_v18, 7  ;;  %v1022_v29 = vld [vmem:[#allocation2 + $0x1c] sm:$0x1]  ;;  %v4441_v35 = vld [vmem:[#allocation6 + $0x60] sm:$0xff]  }
 0x344   : > { %3488 = vmatprep.subr.bf16.mxu0 %v3819_v26  ;;  %v934_v31 = vor.u32 %v932_v16, %v931_v22  ;;  %v935_v32 = vrot.slane %v931_v22, 4  ;;  %v945_v33 = vshrl.u32 %v3254_v6, 16  ;;  %v948_v34 = vshll.u32 %v3254_v6, 16  ;;  %v1025_v0 = vld [vmem:[#allocation2 + $0x20] sm:$0xf]  ;;  %s2977_s20 = sshll.u32 %s4399_s14, 4  ;;  %s4818_s20 = int_to_ptr.vmem [resolvable:$true] %s2977_s20 }
 0x345   : > { %v1005_v14 = vsel %vm4413_vm8, %v926_v61, %v1004_v30  ;;  %v1011_v15 = vsel %vm4419_vm10, %v927_v62, %v1010_v59  ;;  %v942_v36 = vor.u32 %v940_v23, %v939_v8  ;;  %v943_v37 = vrot.slane %v939_v8, 4  ;;  %v1028_v45 = vld [vmem:[#allocation2 + $0x24] sm:$0x1]  ;;  %v1031_v46 = vld [vmem:[#allocation2 + $0x28] sm:$0xf]  ;;  %s2964_s22 = scalar_lea.sflag [#allocation5], %s4210_s18 }
 0x346   : > { %1006 = vst [vmem:[#allocation2 + $0x8] sm:$0xf] %v1005_v14  ;;  %1012 = vst [vmem:[#allocation2 + $0xc] sm:$0x1] %v1011_v15  ;;  %v953_v38 = vshrl.u32 %v3255_v12, 16  ;;  %v956_v39 = vshll.u32 %v3255_v12, 16  ;;  %v1014_v42 = vsel %vm4413_vm8, %v934_v31, %v1013_v19  ;;  %v1017_v43 = vsel %vm4419_vm10, %v935_v32, %v1016_v24 }
 0x347   : > { %3489 = vmatpush3.bf16.msra.mxu0 %v3819_v26  ;;  %v947_v44 = vrot.slane %v945_v33, 7  ;;  %v961_v47 = vshrl.u32 %v3256_v27, 16  ;;  %1015 = vst [vmem:[#allocation2 + $0x10] sm:$0xf] %v1014_v42  ;;  %1018 = vst [vmem:[#allocation2 + $0x14] sm:$0x1] %v1017_v43  ;;  %v1020_v48 = vsel %vm4413_vm8, %v942_v36, %v1019_v25  ;;  %v1023_v49 = vsel %vm4419_vm10, %v943_v37, %v1022_v29 }
 0x348   : > { %3490 = vmatprep.subr.bf16.mxu0 %v3820_v13  ;;  %v955_v50 = vrot.slane %v953_v38, 7  ;;  %v964_v7 = vshll.u32 %v3256_v27, 16  ;;  %1021 = vst [vmem:[#allocation2 + $0x18] sm:$0xf] %v1020_v48  ;;  %1024 = vst [vmem:[#allocation2 + $0x1c] sm:$0x1] %v1023_v49  ;;  %v1467_v54 = vsel %vm4445_vm13, %v3127_v5, %v1466_v3 }
 0x349   : > { %v950_v51 = vor.u32 %v948_v34, %v947_v44  ;;  %v951_v9 = vrot.slane %v947_v44, 4  ;;  %v1034_v52 = vld [vmem:[#allocation2 + $0x2c] sm:$0x1]  ;;  %v963_v10 = vrot.slane %v961_v47, 7  ;;  %v969_v11 = vshrl.u32 %v4435_v28, 16  ;;  %v3822_v37 = vld [vmem:[#allocation6 + $0x68] sm:$0xff]  }
 0x34a   : > { %v958_v21 = vor.u32 %v956_v39, %v955_v50  ;;  %v959_v55 = vrot.slane %v955_v50, 4  ;;  %v972_v26 = vshll.u32 %v4435_v28, 16  ;;  %v1037_v61 = vld [vmem:[#allocation2 + $0x30] sm:$0xf]  ;;  %v1040_v62 = vld [vmem:[#allocation2 + $0x34] sm:$0x1] }
 0x34b   : > { %3491 = vmatpush3.bf16.msra.mxu0 %v3820_v13  ;;  %v1026_v57 = vsel %vm4413_vm8, %v950_v51, %v1025_v0  ;;  %v1029_v59 = vsel %vm4419_vm10, %v951_v9, %v1028_v45  ;;  %v966_v4 = vor.u32 %v964_v7, %v963_v10  ;;  %v967_v6 = vrot.slane %v963_v10, 4  ;;  %v1043_v12 = vld [vmem:[#allocation2 + $0x38] sm:$0xf]  ;;  %v1046_v13 = vld [vmem:[#allocation2 + $0x3c] sm:$0x1]  ;;  %v3823_v9 = vld [vmem:[#allocation6 + $0x70] sm:$0xff]  }
 0x34c   : > { %3500 = vmatprep.subr.bf16.mxu0 %v4441_v35  ;;  %1027 = vst [vmem:[#allocation2 + $0x20] sm:$0xf] %v1026_v57  ;;  %1030 = vst [vmem:[#allocation2 + $0x24] sm:$0x1] %v1029_v59  ;;  %v1032_v2 = vsel %vm4413_vm8, %v958_v21, %v1031_v46  ;;  %v1035_v3 = vsel %vm4419_vm10, %v959_v55, %v1034_v52  ;;  %v971_v15 = vrot.slane %v969_v11, 7  ;;  %v977_v27 = vshrl.u32 %v4439_v20, 16 }
 0x34d   : > { %v4458_v53 = vld [vmem:[#allocation2 + $0xc] sm:$0x1]  ;;  %v1438_v17 = vld [vmem:[#allocation2 + $0x8] sm:$0xe]  ;;  %1033 = vst [vmem:[#allocation2 + $0x28] sm:$0xf] %v1032_v2  ;;  %v1038_v18 = vsel %vm4413_vm8, %v966_v4, %v1037_v61  ;;  %v1041_v19 = vsel %vm4419_vm10, %v967_v6, %v1040_v62 }
 0x34e   : > { %v3128_v56 = vrot.slane %v1438_v17, 9  ;;  %v1470_v30 = vrot.slane %v4458_v53, 5  ;;  %1036 = vst [vmem:[#allocation2 + $0x2c] sm:$0x1] %v1035_v3  ;;  %v4479_v22 = vld [vmem:[#allocation2 + $0x14] sm:$0x1]  ;;  %v974_v24 = vor.u32 %v972_v26, %v971_v15 }
 0x34f   : > { %v1439_v23 = vld [vmem:[#allocation2 + $0x10] sm:$0xe]  ;;  %v975_v25 = vrot.slane %v971_v15, 4  ;;  %1039 = vst [vmem:[#allocation2 + $0x30] sm:$0xf] %v1038_v18  ;;  %v1474_v31 = vrot.slane %v4479_v22, 5 }
 0x350   : > { %v1471_v14 = vsel %vm4445_vm13, %v3128_v56, %v1470_v30  ;;  %1042 = vst [vmem:[#allocation2 + $0x34] sm:$0x1] %v1041_v19  ;;  %v4483_v5 = vld [vmem:[#allocation2 + $0x1c] sm:$0x1]  ;;  %v1440_v8 = vld [vmem:[#allocation2 + $0x18] sm:$0xe]  ;;  %v1044_v33 = vsel %vm4413_vm8, %v974_v24, %v1043_v12 }
 0x351   : > { %v3135_v16 = vcombine.low %v1467_v54, %v1471_v14  ;;  %v3129_v28 = vrot.slane %v1439_v23, 9  ;;  %v3130_v32 = vrot.slane %v1440_v8, 9  ;;  %v1478_v29 = vrot.slane %v4483_v5, 5  ;;  %1045 = vst [vmem:[#allocation2 + $0x38] sm:$0xf] %v1044_v33  ;;  %v3832_v59 = vld [vmem:[#allocation6 + $0x20] sm:$0xff]  }
 0x352   : > { %v1047_v34 = vsel %vm4419_vm10, %v975_v25, %v1046_v13  ;;  %v4510_v17 = vrot.slane %v977_v27, 7  ;;  %v980_v54 = vshll.u32 %v4439_v20, 16  ;;  %v1049_v21 = vld [vmem:[#allocation2 + $0x40] sm:$0xf]  ;;  %v3824_v61 = vld [vmem:[#allocation6 + $0x78] sm:$0xff]   ;;  %3452 = vmatprep.subr.bf16.mxu1 %v3832_v59  ;;  %v3834_v3 = vld [vmem:[#allocation6 + $0x28] sm:$0xff]  }
 0x353   : > { %3492 = vmatprep.mubr.msk.bf16.mxu0 %vm403_vm1, %v3135_v16  ;;  %v1475_v36 = vsel %vm4445_vm13, %v3129_v28, %v1474_v31  ;;  %1048 = vst [vmem:[#allocation2 + $0x3c] sm:$0x1] %v1047_v34  ;;  %v1479_v38 = vsel %vm4445_vm13, %v3130_v32, %v1478_v29  ;;  %v4495_v39 = vld [vmem:[#allocation2 + $0x24] sm:$0x1]  ;;  %v1441_v0 = vld [vmem:[#allocation2 + $0x20] sm:$0xe]  ;;  %3453 = vmatpush3.bf16.msra.mxu1 %v3832_v59 }
 0x354   : > { %v3136_v42 = vcombine.low %v1475_v36, %v1479_v38  ;;  %v1442_v44 = vld [vmem:[#allocation2 + $0x28] sm:$0xe]  ;;  %v3131_v45 = vrot.slane %v1441_v0, 9  ;;  %v1482_v46 = vrot.slane %v4495_v39, 5  ;;  %v982_v57 = vor.u32 %v980_v54, %v4510_v17  ;;  %3454 = vmatprep.subr.bf16.mxu1 %v3834_v3  ;;  %v4524_v12 = vld [vmem:[#allocation2 + $0xc] sm:$0x1] }
 0x355   : > { %v4497_v43 = vld [vmem:[#allocation2 + $0x2c] sm:$0x1]  ;;  %v3132_v47 = vrot.slane %v1442_v44, 9  ;;  %v3825_v62 = vld [vmem:[#allocation2 + $0x8] ss:$8 sps:$4 sm:$0xff]   ;;  %v1798_v58 = vshll.u32 %v4524_v12, 16 }
 0x356   : > { %v1486_v48 = vrot.slane %v4497_v43, 5  ;;  %3493 = vmatmul.mubr.msk.bf16.vlgmr.msra.gmra.mrb[0].mxu0 %vm403_vm1, %v3136_v42  ;;  %v1483_v49 = vsel %vm4445_vm13, %v3131_v45, %v1482_v46  ;;  %v1443_v7 = vld [vmem:[#allocation2 + $0x30] sm:$0xe]  ;;  %v1050_v2 = vsel %vm4413_vm8, %v982_v57, %v1049_v21  ;;  %vm1079_vm14 = vsmask.f32 3328  ;;  %v3836_v8 = vld [vmem:[#allocation6 + $0x30] sm:$0xff]  }
 0x357   : > { %v4504_v50 = vld [vmem:[#allocation2 + $0x34] sm:$0x1]  ;;  %3501 = vmatpush3.bf16.msra.mxu0 %v4441_v35  ;;  %v3133_v52 = vrot.slane %v1443_v7, 9  ;;  %1051 = vst [vmem:[#allocation2 + $0x40] sm:$0xf] %v1050_v2  ;;  %v1800_v31 = vrot.slane %v1798_v58, 5  ;;  %3455 = vmatpush3.bf16.msra.mxu1 %v3834_v3 }
 0x358   : > { %v1487_v51 = vsel %vm4445_vm13, %v3132_v47, %v1486_v48  ;;  %v1490_v10 = vrot.slane %v4504_v50, 5  ;;  %3502 = vmatprep.subr.bf16.mxu0 %v3822_v37  ;;  %v1444_v26 = vld [vmem:[#allocation2 + $0x38] sm:$0xe]  ;;  %vm1080_vm15 = vsmask.f32 7440  ;;  %v3826_v16 = vld [vmem:[#allocation6 + $0x80] sm:$0xff]   ;;  %3456 = vmatprep.subr.bf16.mxu1 %v3836_v8 }
 0x359   : > { %v3137_v11 = vcombine.low %v1483_v49, %v1487_v51  ;;  %v3134_v56 = vrot.slane %v1444_v26, 9  ;;  %v1772_v6 = vld [vmem:[#allocation2 + $0x8] sm:$0xf]  ;;  %v1774_v13 = vld [vmem:[#allocation2 + $0x10] sm:$0xf]  ;;  %v1092_v33 = vshll.u32 %v4417_v60, 16  ;;  %vm4537_vm2 = vmor %vm1079_vm14, %vm1080_vm15 }
 0x35a   : > { %v4513_v55 = vld [vmem:[#allocation2 + $0x3c] sm:$0x1]  ;;  %v1491_v35 = vsel %vm4445_vm13, %v3133_v52, %v1490_v10  ;;  %v1789_v14 = vshrl.u32 %v1772_v6, 16  ;;  %v1792_v15 = vshll.u32 %v1772_v6, 16  ;;  %v4527_v18 = vld [vmem:[#allocation2 + $0x14] sm:$0x1] }
 0x35b   : > { %3496 = vmatprep.mubr.msk.bf16.mxu0 %vm403_vm1, %v3137_v11  ;;  %v1494_v30 = vrot.slane %v4513_v55, 5  ;;  %3503 = vmatpush3.bf16.msra.mxu0 %v3822_v37  ;;  %v1803_v19 = vshrl.u32 %v1774_v13, 16  ;;  %v1806_v23 = vshll.u32 %v1774_v13, 16  ;;  %v1812_v27 = vshll.u32 %v4527_v18, 16  ;;  %v3827_v28 = vld [vmem:[#allocation2 + $0x18] ss:$8 sps:$4 sm:$0xff]  }
 0x35c   : > { %3504 = vmatprep.subr.bf16.mxu0 %v3823_v9  ;;  %v1791_v24 = vrot.slane %v1789_v14, 4  ;;  %v1794_v25 = vrot.slane %v1792_v15, 5  ;;  %v3829_v34 = vld [vmem:[#allocation2 + $0x28] ss:$8 sps:$4 sm:$0xff]   ;;  %v1776_v38 = vld [vmem:[#allocation2 + $0x18] sm:$0xf]  ;;  %3457 = vmatpush3.bf16.msra.mxu1 %v3836_v8 }
 0x35d   : > { %v1495_v20 = vsel %vm4445_vm13, %v3134_v56, %v1494_v30  ;;  %v1805_v32 = vrot.slane %v1803_v19, 4  ;;  %v1808_v29 = vrot.slane %v1806_v23, 5  ;;  %v1814_v37 = vrot.slane %v1812_v27, 5  ;;  %v4533_v0 = vld [vmem:[#allocation2 + $0x1c] sm:$0x1]  ;;  %v3838_v42 = vld [vmem:[#allocation6 + $0x38] sm:$0xff]  }
 0x35e   : > { %v3138_v4 = vcombine.low %v1491_v35, %v1495_v20  ;;  %v1795_v36 = vor.u32 %v1794_v25, %v1791_v24  ;;  %v3828_v44 = vld [vmem:[#allocation6 + $0x88] sm:$0xff]   ;;  %v1778_v47 = vld [vmem:[#allocation2 + $0x20] sm:$0xf]  ;;  %v4541_v48 = vld [vmem:[#allocation2 + $0x24] sm:$0x1]  ;;  %v1817_v60 = vshrl.u32 %v1776_v38, 16  ;;  %3458 = vmatprep.subr.bf16.mxu1 %v3838_v42 }
 0x35f   : > { %3505 = vmatpush3.bf16.msra.mxu0 %v3823_v9  ;;  %v1809_v46 = vor.u32 %v1808_v29, %v1805_v32  ;;  %v1820_v49 = vshll.u32 %v1776_v38, 16  ;;  %v983_v7 = vrot.slane %v4510_v17, 4  ;;  %v1826_v9 = vshll.u32 %v4533_v0, 16  ;;  %v3830_v17 = vld [vmem:[#allocation6 + $0x90] sm:$0xff]   ;;  %v4555_v6 = vld [vmem:[#allocation2 + $0x2c] sm:$0x1] }
 0x360   : > { %3497 = vmatmul.mubr.msk.bf16.gmra.mrb[4].mxu0 %vm403_vm1, %v3138_v4  ;;  %3506 = vmatprep.subr.bf16.mxu0 %v3824_v61  ;;  %v1796_v51 = vrot.slane %v1795_v36, 4  ;;  %v1106_v52 = vshll.u32 %v4458_v53, 16  ;;  %v1819_v11 = vrot.slane %v1817_v60, 4  ;;  %v1831_v21 = vshrl.u32 %v1778_v47, 16  ;;  %v3831_v2 = vld [vmem:[#allocation2 + $0x38] ss:$8 sps:$4 sm:$0xff]  }
 0x361   : > { %3508 = vmatprep.mubr.msk.bf16.mxu0 %vm403_vm1, %v3825_v62  ;;  %v1810_v10 = vrot.slane %v1809_v46, 4  ;;  %v1822_v54 = vrot.slane %v1820_v49, 5  ;;  %v1828_v35 = vrot.slane %v1826_v9, 5  ;;  %v1834_v56 = vshll.u32 %v1778_v47, 16  ;;  %v1780_v4 = vld [vmem:[#allocation2 + $0x28] sm:$0xf]  ;;  %3459 = vmatpush3.bf16.msra.mxu1 %v3838_v42 }
 0x362   : > { %v1801_v26 = vsel %vm4537_vm2, %v1796_v51, %v1800_v31  ;;  %v1840_v30 = vshll.u32 %v4541_v48, 16  ;;  %v1833_v59 = vrot.slane %v1831_v21, 4  ;;  %v4557_v13 = vrot.slane %v1106_v52, 5  ;;  %v1782_v58 = vld [vmem:[#allocation2 + $0x30] sm:$0xf]  ;;  %v3833_v24 = vld [vmem:[#allocation6 + $0x98] sm:$0xff]  }
 0x363   : > { %3507 = vmatpush3.bf16.msra.mxu0 %v3824_v61  ;;  %v1815_v53 = vsel %vm4537_vm2, %v1810_v10, %v1814_v37  ;;  %v1823_v57 = vor.u32 %v1822_v54, %v1819_v11  ;;  %v4552_v61 = vrot.slane %v1092_v33, 5  ;;  %v1836_v62 = vrot.slane %v1834_v56, 5  ;;  %v4559_v19 = vld [vmem:[#allocation2 + $0x34] sm:$0x1]  ;;  %v1052_v42 = vld [vmem:[#allocation2 + $0x44] sm:$0x1] }
 0x364   : > { %3516 = vmatprep.subr.bf16.mxu0 %v3826_v16  ;;  %v1842_v20 = vrot.slane %v1840_v30, 5  ;;  %v3159_v14 = vcombine.low %v1801_v26, %v1815_v53  ;;  %v1845_v23 = vshrl.u32 %v1780_v4, 16  ;;  %v1854_v27 = vshll.u32 %v4555_v6, 16  ;;  %v4564_v31 = vld [vmem:[#allocation6] sm:$0xff]   ;;  %v1784_v51 = vld [vmem:[#allocation2 + $0x38] sm:$0xf] }
 0x365   : > { %v1824_v3 = vrot.slane %v1823_v57, 4  ;;  %v1837_v15 = vor.u32 %v1836_v62, %v1833_v59  ;;  %v1859_v8 = vshrl.u32 %v1782_v58, 16  ;;  %v1120_v46 = vshll.u32 %v4479_v22, 16  ;;  %3468 = vmatprep.subr.bf16.mxu1 %v4564_v31  ;;  %v4573_v9 = vld [vmem:[#allocation2 + $0x3c] sm:$0x1]  ;;  %v3835_v26 = vld [vmem:[#allocation6 + $0xa0] sm:$0xff]  }
 0x366   : > { %v1847_v29 = vrot.slane %v1845_v23, 4  ;;  %v1856_v36 = vrot.slane %v1854_v27, 5  ;;  %v1786_v11 = vld [vmem:[#allocation2 + $0x40] sm:$0xf]  ;;  %v1873_v22 = vshrl.u32 %v1784_v51, 16  ;;  %v1876_v54 = vshll.u32 %v1784_v51, 16 }
 0x367   : > { %v1829_v25 = vsel %vm4537_vm2, %v1824_v3, %v1828_v35  ;;  %v1838_v32 = vrot.slane %v1837_v15, 4  ;;  %v1861_v37 = vrot.slane %v1859_v8, 4  ;;  %v4576_v21 = vld [vmem:[#allocation2] sm:$0xf]  ;;  %v1882_v63 = vshll.u32 %v4573_v9, 16  ;;  %s3935_s24 = scalar_lea.vmem %s4818_s20, 512 }
 0x368   : > { %3509 = vmatmul.mubr.msk.bf16.vlgmr.msra.gmra.mrb[0].mxu0 %vm403_vm1, %v3827_v28  ;;  %v1862_v28 = vshll.u32 %v1782_v58, 16  ;;  %v1890_v56 = vshll.u32 %v1786_v11, 16  ;;  %v1875_v53 = vrot.slane %v1873_v22, 4  ;;  %v1878_v57 = vrot.slane %v1876_v54, 5  ;;  %v4580_v59 = vld [vmem:[#allocation2 + $0x8] sm:$0xf]  ;;  %p3936_p8 = scmp.ne.s32.totalorder %s4818_s20, %s3935_s24 }
 0x369   : > { %3517 = vmatpush3.bf16.msra.mxu0 %v3826_v16  ;;  %3512 = vmatprep.mubr.msk.bf16.mxu0 %vm403_vm1, %v3829_v34  ;;  %v1848_v16 = vshll.u32 %v1780_v4, 16  ;;  %v1868_v34 = vshll.u32 %v4559_v19, 16  ;;  %v1843_v47 = vsel %vm4537_vm2, %v1838_v32, %v1842_v20  ;;  %v1083_v62 = vshrl.u32 %v4576_v21, 16  ;;  %v4585_v4 = vld [vmem:[#allocation2 + $0x10] sm:$0xf]  ;;  %s4017_s26 = smov [#allocation8]  }
 0x36a   : > { %3518 = vmatprep.subr.bf16.mxu0 %v3828_v44  ;;  %v1864_v38 = vrot.slane %v1862_v28, 5  ;;  %v3160_v52 = vcombine.low %v1829_v25, %v1843_v47  ;;  %v1892_v3 = vrot.slane %v1890_v56, 5  ;;  %v1879_v58 = vor.u32 %v1878_v57, %v1875_v53  ;;  %v4590_v25 = vld [vmem:[#allocation2 + $0x18] sm:$0xf]  ;;  %p3937_p9 = pnand %p3936_p8, %p4162_p11 }
 0x36b   : > { %v1850_v33 = vrot.slane %v1848_v16, 5  ;;  %v1870_v49 = vrot.slane %v1868_v34, 5  ;;  %v1085_v23 = vrot.slane %v1083_v62, 4  ;;  %v1086_v16 = vshll.u32 %v4576_v21, 16 }
 0x36c   : > { %v1865_v10 = vor.u32 %v1864_v38, %v1861_v37  ;;  %v1097_v28 = vshrl.u32 %v4580_v59, 16  ;;  %v1100_v32 = vshll.u32 %v4580_v59, 16  ;;  %v1111_v34 = vshrl.u32 %v4585_v4, 16  ;;  %p3938_p13 = pneg %p3937_p9 }
 0x36d   : > { %3519 = vmatpush3.bf16.msra.mxu0 %v3828_v44  ;;  %v1851_v60 = vor.u32 %v1850_v33, %v1847_v29  ;;  %v1053_v44 = vsel %vm4419_vm10, %v983_v7, %v1052_v42  ;;  %v1887_v7 = vshrl.u32 %v1786_v11, 16  ;;  %v1880_v29 = vrot.slane %v1879_v58, 4  ;;  %v3839_v11 = vld [vmem:[#allocation6 + $0xb0] sm:$0xff]  }
 0x36e   : > { %3520 = vmatprep.subr.bf16.mxu0 %v3830_v17  ;;  %1054 = vst [vmem:[#allocation2 + $0x44] sm:$0x1] %v1053_v44  ;;  %v1866_v30 = vrot.slane %v1865_v10, 4  ;;  %v1088_v33 = vrot.slane %v1086_v16, 5  ;;  %v1099_v42 = vrot.slane %v1097_v28, 4  ;;  %v1102_v47 = vrot.slane %v1100_v32, 5 }
 0x36f   : > { %v1852_v35 = vrot.slane %v1851_v60, 4  ;;  %v1122_v60 = vrot.slane %v1120_v46, 5  ;;  %v1113_v51 = vrot.slane %v1111_v34, 4  ;;  %v2030_v10 = vld [vmem:[#allocation2 + $0x8] sm:$0xe]  ;;  %v1128_v46 = vshll.u32 %v4590_v25, 16 }
 0x370   : > { %3513 = vmatmul.mubr.msk.bf16.gmra.mrb[4].mxu0 %vm403_vm1, %v3831_v2  ;;  %v1889_v2 = vrot.slane %v1887_v7, 4  ;;  %v1871_v15 = vsel %vm4537_vm2, %v1866_v30, %v1870_v49  ;;  %v1089_v44 = vor.u32 %v1088_v33, %v1085_v23  ;;  %v1103_v22 = vor.u32 %v1102_v47, %v1099_v42  ;;  %v3841_v32 = vld [vmem:[#allocation6 + $0xb8] sm:$0xff]   ;;  %v3842_v42 = vld [vmem:[#allocation6 + $0x8] sm:$0xff]  }
 0x371   : > { %3521 = vmatpush3.bf16.msra.mxu0 %v3830_v17  ;;  %3524 = vmatprep.mubr.msk.bf16.mxu0 %vm403_vm1, %v3159_v14  ;;  %v1857_v20 = vsel %vm4537_vm2, %v1852_v35, %v1856_v36  ;;  %v1884_v17 = vrot.slane %v1882_v63, 5  ;;  %v3837_v14 = vld [vmem:[#allocation6 + $0xa8] sm:$0xff]   ;;  %v1114_v36 = vshll.u32 %v4585_v4, 16  ;;  %v1125_v35 = vshrl.u32 %v4590_v25, 16  ;;  %v2031_v63 = vld [vmem:[#allocation2 + $0x10] sm:$0xe] }
 0x372   : > { %3522 = vmatprep.subr.bf16.mxu0 %v3833_v24  ;;  %v3161_v27 = vcombine.low %v1857_v20, %v1871_v15  ;;  %v1893_v8 = vor.u32 %v1892_v3, %v1889_v2  ;;  %v1090_v7 = vrot.slane %v1089_v44, 4  ;;  %v1134_v56 = vshll.u32 %v4483_v5, 16  ;;  %v2032_v15 = vld [vmem:[#allocation2 + $0x18] sm:$0xe]  ;;  %v3843_v44 = vld [vmem:[#allocation6 + $0xc0] sm:$0xff]  }
 0x373   : > { %v1116_v54 = vrot.slane %v1114_v36, 5  ;;  %v3171_v30 = vrot.slane %v2030_v10, 9  ;;  %v1104_v53 = vrot.slane %v1103_v22, 4  ;;  %v1127_v62 = vrot.slane %v1125_v35, 4 }
 0x374   : > { %v1894_v38 = vrot.slane %v1893_v8, 4  ;;  %v1136_v2 = vrot.slane %v1134_v56, 5  ;;  %v2056_v3 = vrot.slane %v4524_v12, 5  ;;  %v4615_v8 = vld [vmem:[#allocation2 + $0x20] sm:$0xf]  ;;  %v2060_v12 = vrot.slane %v4527_v18, 5 }
 0x375   : > { %3523 = vmatpush3.bf16.msra.mxu0 %v3833_v24  ;;  %v4596_v37 = vld [vmem:[#allocation2 + $0x44] sm:$0x1]  ;;  %v1885_v24 = vsel %vm4537_vm2, %v1880_v29, %v1884_v17  ;;  %v1117_v57 = vor.u32 %v1116_v54, %v1113_v51  ;;  %v1095_v17 = vsel %vm4537_vm2, %v1090_v7, %v4552_v61  ;;  %v1109_v5 = vsel %vm4537_vm2, %v1104_v53, %v4557_v13  ;;  %v4644_v7 = vld [vmem:[#allocation2 + $0x38] sm:$0xf] }
 0x376   : > { %3532 = vmatprep.subr.bf16.mxu0 %v3835_v26  ;;  %v1896_v49 = vshll.u32 %v4596_v37, 16  ;;  %v3103_v28 = vcombine.low %v1095_v17, %v1109_v5  ;;  %v2057_v61 = vsel %vm4445_vm13, %v3171_v30, %v2056_v3  ;;  %v3172_v29 = vrot.slane %v2031_v63, 9  ;;  %v3845_v3 = vld [vmem:[#allocation6 + $0xc8] sm:$0xff]  }
 0x377   : > { %v1118_v23 = vrot.slane %v1117_v57, 4  ;;  %v3173_v34 = vrot.slane %v2032_v15, 9  ;;  %v2064_v36 = vrot.slane %v4533_v0, 5  ;;  %v1142_v10 = vshll.u32 %v4615_v8, 16  ;;  %v2035_v15 = vld [vmem:[#allocation2 + $0x30] sm:$0xe] }
 0x378   : > { %3525 = vmatmul.mubr.msk.bf16.vlgmr.msra.gmra.mrb[0].mxu0 %vm403_vm1, %v3160_v52  ;;  %v1898_v52 = vrot.slane %v1896_v49, 5  ;;  %3460 = vmatprep.mubr.msk.bf16.mxu1 %vm403_vm1, %v3103_v28  ;;  %v2061_v47 = vsel %vm4445_vm13, %v3172_v29, %v2060_v12  ;;  %v1139_v49 = vshrl.u32 %v4615_v8, 16  ;;  %v1162_v30 = vshll.u32 %v4497_v43, 16 }
 0x379   : > { %3533 = vmatpush3.bf16.msra.mxu0 %v3835_v26  ;;  %3528 = vmatprep.mubr.msk.bf16.mxu0 %vm403_vm1, %v3161_v27  ;;  %v1130_v26 = vrot.slane %v1128_v46, 5  ;;  %v2033_v27 = vld [vmem:[#allocation2 + $0x20] sm:$0xe]  ;;  %v1123_v33 = vsel %vm4537_vm2, %v1118_v23, %v1122_v60  ;;  %v3179_v0 = vcombine.low %v2057_v61, %v2061_v47  ;;  %v2065_v51 = vsel %vm4445_vm13, %v3173_v34, %v2064_v36  ;;  %v3846_v47 = vld [vmem:[#allocation6 + $0x18] sm:$0xff]  }
 0x37a   : > { %3534 = vmatprep.subr.bf16.mxu0 %v3837_v14  ;;  %v1899_v20 = vsel %vm4537_vm2, %v1894_v38, %v1898_v52  ;;  %v4625_v38 = vld [vmem:[#allocation2 + $0x30] sm:$0xf]  ;;  %v3174_v18 = vrot.slane %v2033_v27, 9  ;;  %v1141_v35 = vrot.slane %v1139_v49, 4  ;;  %v1144_v46 = vrot.slane %v1142_v10, 5 }
 0x37b   : > { %v3162_v58 = vcombine.low %v1885_v24, %v1899_v20  ;;  %v1131_v16 = vor.u32 %v1130_v26, %v1127_v62  ;;  %v2068_v24 = vrot.slane %v4541_v48, 5  ;;  %v1148_v48 = vshll.u32 %v4495_v39, 16  ;;  %v3844_v39 = vld [vmem:[#allocation6 + $0x10] sm:$0xff]   ;;  %v2034_v62 = vld [vmem:[#allocation2 + $0x28] sm:$0xe] }
 0x37c   : > { %v1167_v53 = vshrl.u32 %v4625_v38, 16  ;;  %v1170_v57 = vshll.u32 %v4625_v38, 16  ;;  %v1145_v26 = vor.u32 %v1144_v46, %v1141_v35  ;;  %v1181_v23 = vshrl.u32 %v4644_v7, 16 }
 0x37d   : > { %3535 = vmatpush3.bf16.msra.mxu0 %v3837_v14  ;;  %v4620_v14 = vld [vmem:[#allocation2 + $0x28] sm:$0xf]  ;;  %v1132_v13 = vrot.slane %v1131_v16, 4  ;;  %v2069_v54 = vsel %vm4445_vm13, %v3174_v18, %v2068_v24  ;;  %v1150_v56 = vrot.slane %v1148_v48, 5  ;;  %v3175_v12 = vrot.slane %v2034_v62, 9 }
 0x37e   : > { %3536 = vmatprep.subr.bf16.mxu0 %v3839_v11  ;;  %v1153_v63 = vshrl.u32 %v4620_v14, 16  ;;  %v1156_v52 = vshll.u32 %v4620_v14, 16  ;;  %v1169_v43 = vrot.slane %v1167_v53, 4  ;;  %v1172_v5 = vrot.slane %v1170_v57, 5  ;;  %v3853_v62 = vld [vmem:[#allocation2 + $0x20] ss:$8 sps:$4 sm:$0xff]  }
 0x37f   : > { %v1137_v60 = vsel %vm4537_vm2, %v1132_v13, %v1136_v2  ;;  %v1176_v2 = vshll.u32 %v4504_v50, 16  ;;  %v1146_v16 = vrot.slane %v1145_v26, 4  ;;  %v1183_v29 = vrot.slane %v1181_v23, 4  ;;  %v4687_v26 = vld [vmem:[#allocation2 + $0x14] sm:$0x1] }
 0x380   : > { %3529 = vmatmul.mubr.msk.bf16.gmra.mrb[4].mxu0 %vm403_vm1, %v3162_v58  ;;  %v3104_v22 = vcombine.low %v1123_v33, %v1137_v60  ;;  %v1155_v20 = vrot.slane %v1153_v63, 4  ;;  %v1158_v17 = vrot.slane %v1156_v52, 5  ;;  %v1164_v58 = vrot.slane %v1162_v30, 5  ;;  %v2037_v33 = vld [vmem:[#allocation2 + $0x40] sm:$0xe]  ;;  %v3850_v63 = vld [vmem:[#allocation6 + $0xd8] sm:$0xff]  }
 0x381   : > { %3537 = vmatpush3.bf16.msra.mxu0 %v3839_v11  ;;  %3540 = vmatprep.mubr.msk.bf16.mxu0 %vm403_vm1, %v3179_v0  ;;  %v3180_v11 = vcombine.low %v2065_v51, %v2069_v54  ;;  %v1178_v28 = vrot.slane %v1176_v2, 5  ;;  %v1173_v61 = vor.u32 %v1172_v5, %v1169_v43  ;;  %v1190_v50 = vshll.u32 %v4513_v55, 16  ;;  %v3847_v51 = vld [vmem:[#allocation6 + $0xd0] sm:$0xff]   ;;  %v4689_v2 = vld [vmem:[#allocation2 + $0x1c] sm:$0x1] }
 0x382   : > { %3538 = vmatprep.subr.bf16.mxu0 %v3841_v32  ;;  %3461 = vmatmul.mubr.msk.bf16.vlgmr.msra.gmra.mrb[8].mxu1 %vm403_vm1, %v3104_v22  ;;  %v1159_v27 = vor.u32 %v1158_v17, %v1155_v20  ;;  %v1151_v13 = vsel %vm4537_vm2, %v1146_v16, %v1150_v56  ;;  %v2072_v18 = vrot.slane %v4555_v6, 5  ;;  %v3176_v60 = vrot.slane %v2035_v15, 9  ;;  %v3851_v56 = vld [vmem:[#allocation2 + $0x10] ss:$8 sps:$4 sm:$0xff]  }
 0x383   : > { %3469 = vmatpush3.bf16.msra.mxu1 %v4564_v31  ;;  %v1184_v31 = vshll.u32 %v4644_v7, 16  ;;  %v1174_v24 = vrot.slane %v1173_v61, 4  ;;  %v1192_v49 = vrot.slane %v1190_v50, 5  ;;  %v2076_v0 = vrot.slane %v4559_v19, 5  ;;  %v2365_v20 = vld [vmem:[#allocation2 + $0x18] sm:$0xf] }
 0x384   : > { %3470 = vmatprep.subr.bf16.mxu1 %v3842_v42  ;;  %v1160_v34 = vrot.slane %v1159_v27, 4  ;;  %v2080_v35 = vrot.slane %v4573_v9, 5  ;;  %v2084_v46 = vrot.slane %v4596_v37, 5  ;;  %v3115_v37 = vcombine.low %v4576_v21, %v4580_v59  ;;  %v2363_v59 = vld [vmem:[#allocation2 + $0x10] sm:$0xf]  ;;  %v3856_v17 = vld [vmem:[#allocation6 + $0xe8] sm:$0xff]  }
 0x385   : > { %3539 = vmatpush3.bf16.msra.mxu0 %v3841_v32  ;;  %v2036_v32 = vld [vmem:[#allocation2 + $0x38] sm:$0xe]  ;;  %v1186_v36 = vrot.slane %v1184_v31, 5  ;;  %v1179_v6 = vsel %vm4537_vm2, %v1174_v24, %v1178_v28  ;;  %v2077_v54 = vsel %vm4445_vm13, %v3176_v60, %v2076_v0  ;;  %v3116_v21 = vcombine.low %v4585_v4, %v4590_v25  ;;  %v3857_v25 = vld [vmem:[%s4874_s8] sm:$0xff]  }
 0x386   : > { %3548 = vmatprep.subr.bf16.mxu0 %v3843_v44  ;;  %v1165_v55 = vsel %vm4537_vm2, %v1160_v34, %v1164_v58  ;;  %v3177_v10 = vrot.slane %v2036_v32, 9  ;;  %v2383_v15 = vshll.u32 %v2363_v59, 16  ;;  %v2389_v58 = vshll.u32 %v4687_v26, 16  ;;  %v3858_v23 = vld [vmem:[#allocation2 + $0x30] ss:$8 sps:$4 sm:$0xff]   ;;  %v3860_v34 = vld [vmem:[%s4874_s8 + $0x8] sm:$0xff]  }
 0x387   : > { %3471 = vmatpush3.bf16.msra.mxu1 %v3842_v42  ;;  %v1187_v42 = vor.u32 %v1186_v36, %v1183_v29  ;;  %v3105_v22 = vcombine.low %v1151_v13, %v1165_v55  ;;  %v2394_v43 = vshrl.u32 %v2365_v20, 16  ;;  %v3117_v5 = vcombine.low %v4615_v8, %v4620_v14  ;;  %v3859_v14 = vld [vmem:[#allocation6 + $0xf0] sm:$0xff]   ;;  %v2369_v13 = vld [vmem:[#allocation2 + $0x28] sm:$0xf] }
 0x388   : > { %3541 = vmatmul.mubr.msk.bf16.vlgmr.msra.gmra.mrb[0].mxu0 %vm403_vm1, %v3180_v11  ;;  %3472 = vmatprep.subr.bf16.mxu1 %v3844_v39  ;;  %v3178_v11 = vrot.slane %v2037_v33, 9  ;;  %v2081_v52 = vsel %vm4445_vm13, %v3177_v10, %v2080_v35  ;;  %v2397_v16 = vshll.u32 %v2365_v20, 16  ;;  %v2403_v4 = vshll.u32 %v4689_v2, 16  ;;  %v4702_v33 = vld [vmem:[#allocation2 + $0x24] sm:$0x1] }
 0x389   : > { %3549 = vmatpush3.bf16.msra.mxu0 %v3843_v44  ;;  %v2073_v44 = vsel %vm4445_vm13, %v3175_v12, %v2072_v18  ;;  %v1188_v48 = vrot.slane %v1187_v42, 4  ;;  %3464 = vmatprep.mubr.msk.bf16.mxu1 %vm403_vm1, %v3105_v22  ;;  %v2385_v28 = vrot.slane %v2383_v15, 5  ;;  %v2396_v31 = vrot.slane %v2394_v43, 4  ;;  %v2367_v12 = vld [vmem:[#allocation2 + $0x20] sm:$0xf]  ;;  %v3862_v22 = vld [vmem:[#allocation6 + $0xf8] sm:$0xff]  }
 0x38a   : > { %3550 = vmatprep.subr.bf16.mxu0 %v3845_v3  ;;  %v3181_v19 = vcombine.low %v2073_v44, %v2077_v54  ;;  %v2085_v9 = vsel %vm4445_vm13, %v3178_v11, %v2084_v46  ;;  %v2391_v32 = vrot.slane %v2389_v58, 5  ;;  %v2399_v61 = vrot.slane %v2397_v16, 5  ;;  %v3864_v58 = vld [vmem:[#allocation6 + $0x100] sm:$0xff]   ;;  %v3865_v43 = vld [vmem:[%s4874_s8 + $0x18] sm:$0xff]  }
 0x38b   : > { %3473 = vmatpush3.bf16.msra.mxu1 %v3844_v39  ;;  %v1193_v30 = vsel %vm4537_vm2, %v1188_v48, %v1192_v49  ;;  %v3182_v57 = vcombine.low %v2081_v52, %v2085_v9  ;;  %v3852_v39 = vld [vmem:[#allocation6 + $0xe0] sm:$0xff]   ;;  %v2405_v29 = vrot.slane %v2403_v4, 5  ;;  %v3118_v8 = vcombine.low %v4625_v38, %v4644_v7  ;;  %v3861_v7 = vld [vmem:[#allocation2 + $0x40] ss:$8 sps:$4 sm:$0xff]   ;;  %v2373_v9 = vld [vmem:[#allocation2 + $0x38] sm:$0xf] }
 0x38c   : > { %3474 = vmatprep.subr.bf16.mxu1 %v3846_v47  ;;  %3544 = vmatprep.mubr.msk.bf16.mxu0 %vm403_vm1, %v3181_v19  ;;  %v3106_v53 = vcombine.low %v1179_v6, %v1193_v30  ;;  %v2400_v36 = vor.u32 %v2399_v61, %v2396_v31  ;;  %v2408_v18 = vshrl.u32 %v2367_v12, 16  ;;  %v2411_v24 = vshll.u32 %v2367_v12, 16  ;;  %v3863_v6 = vld [vmem:[%s4874_s8 + $0x10] sm:$0xff]   ;;  %v2375_v31 = vld [vmem:[#allocation2 + $0x40] sm:$0xf] }
 0x38d   : > { %3551 = vmatpush3.bf16.msra.mxu0 %v3845_v3  ;;  %v2380_v3 = vshrl.u32 %v2363_v59, 16  ;;  %v2417_v38 = vshll.u32 %v4702_v33, 16  ;;  %v2422_v60 = vshrl.u32 %v2369_v13, 16  ;;  %v2425_v0 = vshll.u32 %v2369_v13, 16  ;;  %v4721_v52 = vld [vmem:[#allocation2 + $0x34] sm:$0x1] }
 0x38e   : > { %3552 = vmatprep.subr.bf16.mxu0 %v3847_v51  ;;  %3465 = vmatmul.mubr.msk.bf16.gmra.mrb[12].mxu1 %vm403_vm1, %v3106_v53  ;;  %v2401_v42 = vrot.slane %v2400_v36, 4  ;;  %v2410_v44 = vrot.slane %v2408_v18, 4  ;;  %v2453_v59 = vshll.u32 %v2373_v9, 16  ;;  %v2464_v13 = vshrl.u32 %v2375_v31, 16 }
 0x38f   : > { %3475 = vmatpush3.bf16.msra.mxu1 %v3846_v47  ;;  %3476 = vmatprep.mubr.msk.bf16.mxu1 %vm403_vm1, %v3115_v37  ;;  %v2382_v27 = vrot.slane %v2380_v3, 4  ;;  %v4708_v47 = vld [vmem:[#allocation2 + $0x2c] sm:$0x1]  ;;  %v2419_v10 = vrot.slane %v2417_v38, 5  ;;  %v2424_v35 = vrot.slane %v2422_v60, 4  ;;  %v2427_v48 = vrot.slane %v2425_v0, 5 }
 0x390   : > { %3545 = vmatmul.mubr.msk.bf16.gmra.mrb[4].mxu0 %vm403_vm1, %v3182_v57  ;;  %3596 = vmatprep.subr.bf16.mxu1 %v4015_v1  ;;  %v2431_v55 = vshll.u32 %v4708_v47, 16  ;;  %v2406_v11 = vsel %vm4537_vm2, %v2401_v42, %v2405_v29  ;;  %v4723_v37 = vld [vmem:[#allocation2 + $0x3c] sm:$0x1]  ;;  %v2455_v16 = vrot.slane %v2453_v59, 5  ;;  %v4739_v29 = vld [vmem:[#allocation2 + $0x44] sm:$0x1] }
 0x391   : > { %3553 = vmatpush3.bf16.msra.mxu0 %v3847_v51  ;;  %3556 = vmatprep.mubr.msk.bf16.mxu0 %vm403_vm1, %v3851_v56  ;;  %v2386_v50 = vor.u32 %v2385_v28, %v2382_v27  ;;  %v2413_v51 = vrot.slane %v2411_v24, 5  ;;  %v2428_v30 = vor.u32 %v2427_v48, %v2424_v35  ;;  %v2459_v15 = vshll.u32 %v4723_v37, 16  ;;  %v2621_v48 = vld [vmem:[#allocation2 + $0x10] sm:$0xe] }
 0x392   : > { %3554 = vmatprep.subr.bf16.mxu0 %v3850_v63  ;;  %v2433_v19 = vrot.slane %v2431_v55, 5  ;;  %v2473_v36 = vshll.u32 %v4739_v29, 16  ;;  %v2466_v0 = vrot.slane %v2464_v13, 4  ;;  %v2625_v59 = vld [vmem:[#allocation2 + $0x30] sm:$0xe]  ;;  %v2667_v45 = vrot.slane %v4723_v37, 5 }
 0x393   : > { %v2387_v49 = vrot.slane %v2386_v50, 4  ;;  %v2414_v46 = vor.u32 %v2413_v51, %v2410_v44  ;;  %v2429_v20 = vrot.slane %v2428_v30, 4  ;;  %v2461_v28 = vrot.slane %v2459_v15, 5  ;;  %v3866_v50 = vld [vmem:[#allocation6 + $0x108] sm:$0xff]  }
 0x394   : > { %v2475_v42 = vrot.slane %v2473_v36, 5  ;;  %v2655_v15 = vrot.slane %v4702_v33, 5  ;;  %v2663_v33 = vrot.slane %v4721_v52, 5  ;;  %v2671_v36 = vrot.slane %v4739_v29, 5 }
 0x395   : > { %3555 = vmatpush3.bf16.msra.mxu0 %v3850_v63  ;;  %v2392_v54 = vsel %vm4537_vm2, %v2387_v49, %v2391_v32  ;;  %v2371_v63 = vld [vmem:[#allocation2 + $0x30] sm:$0xf]  ;;  %v2434_v4 = vsel %vm4537_vm2, %v2429_v20, %v2433_v19  ;;  %v3867_v49 = vld [vmem:[%s4874_s8 + $0x20] sm:$0xff]   ;;  %v2622_v19 = vld [vmem:[#allocation2 + $0x18] sm:$0xe] }
 0x396   : > { %3564 = vmatprep.subr.bf16.mxu0 %v3852_v39  ;;  %3477 = vmatmul.mubr.msk.bf16.vlgmr.msra.gmra.mrb[8].mxu1 %vm403_vm1, %v3116_v21  ;;  %v3203_v56 = vcombine.low %v2392_v54, %v2406_v11  ;;  %v2436_v53 = vshrl.u32 %v2371_v63, 16  ;;  %v2439_v57 = vshll.u32 %v2371_v63, 16  ;;  %v2450_v21 = vshrl.u32 %v2373_v9, 16  ;;  %v3868_v54 = vld [vmem:[#allocation6 + $0x110] sm:$0xff]   ;;  %v3869_v9 = vld [vmem:[%s4874_s8 + $0x28] sm:$0xff]  }
 0x397   : > { %3480 = vmatprep.mubr.msk.bf16.mxu1 %vm403_vm1, %v3117_v5  ;;  %3597 = vmatpush3.bf16.msra.mxu1 %v3857_v25  ;;  %v2647_v11 = vrot.slane %v4687_v26, 5  ;;  %v3216_v30 = vrot.slane %v2622_v19, 9 }
 0x398   : > { %3557 = vmatmul.mubr.msk.bf16.vlgmr.msra.gmra.mrb[0].mxu0 %vm403_vm1, %v3853_v62  ;;  %3598 = vmatprep.subr.bf16.mxu1 %v4015_v1  ;;  %v2445_v62 = vshll.u32 %v4721_v52, 16  ;;  %v2441_v3 = vrot.slane %v2439_v57, 5  ;;  %v2623_v57 = vld [vmem:[#allocation2 + $0x20] sm:$0xe]  ;;  %v3872_v52 = vld [vmem:[%s4874_s8 + $0x38] sm:$0xff]  }
 0x399   : > { %3565 = vmatpush3.bf16.msra.mxu0 %v3852_v39  ;;  %3560 = vmatprep.mubr.msk.bf16.mxu0 %vm403_vm1, %v3858_v23  ;;  %v2415_v39 = vrot.slane %v2414_v46, 4  ;;  %v2452_v23 = vrot.slane %v2450_v21, 4  ;;  %v2651_v46 = vrot.slane %v4689_v2, 5  ;;  %v2807_v21 = vld [vmem:[%s379_s23] sm:$0x1]  ;;  %s3939_s23 = sshll.u32 %s4017_s26, 4  ;;  %s3940_s23 = int_to_ptr.vmem [resolvable:$false] %s3939_s23 }
 0x39a   : > { %3566 = vmatprep.subr.bf16.mxu0 %v3856_v17  ;;  %v2447_v27 = vrot.slane %v2445_v62, 5  ;;  %s3941_s16 = scalar_lea.vmem %s3940_s23, 1024  ;;  %p3942_p3 = scmp.lt.s32.totalorder %s4818_s20, %s3940_s23 }
 0x39b   : > { %3599 = vmatpush3.bf16.msra.mxu1 %v3860_v34  ;;  %v2420_v5 = vsel %vm4537_vm2, %v2415_v39, %v2419_v10  ;;  %v2456_v61 = vor.u32 %v2455_v16, %v2452_v23  ;;  %v2467_v34 = vshll.u32 %v2375_v31, 16  ;;  %v2624_v39 = vld [vmem:[#allocation2 + $0x28] sm:$0xe]  ;;  %v2652_v62 = vsel %vm4445_vm13, %v3216_v30, %v2651_v46  ;;  %p3943_p7 = scmp.lt.s32.totalorder %s3941_s16, %s3935_s24 }
 0x39c   : > { %3600 = vmatprep.subr.bf16.mxu1 %v4015_v1  ;;  %v3204_v32 = vcombine.low %v2420_v5, %v2434_v4  ;;  %v3218_v5 = vrot.slane %v2624_v39, 9  ;;  %v2659_v23 = vrot.slane %v4708_v47, 5  ;;  %v3235_v16 = vmul.f32 -1.442695, %v2807_v21 }
 0x39d   : > { %3567 = vmatpush3.bf16.msra.mxu0 %v3856_v17  ;;  %v2438_v17 = vrot.slane %v2436_v53, 4  ;;  %v2457_v18 = vrot.slane %v2456_v61, 4  ;;  %v2469_v55 = vrot.slane %v2467_v34, 5  ;;  %v2627_v61 = vld [vmem:[#allocation2 + $0x40] sm:$0xe]  ;;  %p3944_p10 = por %p3943_p7, %p3942_p3 }
 0x39e   : > { %3568 = vmatprep.subr.bf16.mxu0 %v3859_v14  ;;  %3481 = vmatmul.mubr.msk.bf16.gmra.mrb[12].mxu1 %vm403_vm1, %v3118_v8  ;;  %v2377_v8 = vld [vmem:[#allocation2 + $0x48] sm:$0xf]  ;;  %3873 = vpow2.f32 %v3235_v16  ;;  %v3221_v13 = vrot.slane %v2627_v61, 9 }
 0x39f   : > { %3601 = vmatpush3.bf16.msra.mxu1 %v3863_v6  ;;  %v2442_v25 = vor.u32 %v2441_v3, %v2438_v17  ;;  %3612 = vmatprep.mubr.msk.bf16.mxu1 %vm4014_vm0, %v4015_v1  ;;  %v2478_v24 = vshrl.u32 %v2377_v8, 16  ;;  %v2481_v38 = vshll.u32 %v2377_v8, 16  ;;  %v2462_v44 = vsel %vm4537_vm2, %v2457_v18, %v2461_v28  ;;  %p3945_p2 = pnand %p3944_p10, %p3938_p13 }
 0x3a0   : > { %3561 = vmatmul.mubr.msk.bf16.gmra.mrb[4].mxu0 %vm403_vm1, %v3861_v7  ;;  %3602 = vmatprep.subr.bf16.mxu1 %v4015_v1  ;;  %v2470_v35 = vor.u32 %v2469_v55, %v2466_v0  ;;  %v3217_v3 = vrot.slane %v2623_v57, 9  ;;  %v3219_v28 = vrot.slane %v2625_v59, 9 }
 0x3a1   : > { %3569 = vmatpush3.bf16.msra.mxu0 %v3859_v14  ;;  %3572 = vmatprep.mubr.msk.bf16.mxu0 %vm403_vm1, %v3203_v56  ;;  %v4741_v14 = vld [vmem:[#allocation2 + $0x4c] sm:$0x1]  ;;  %v2443_v12 = vrot.slane %v2442_v25, 4  ;;  %v2480_v51 = vrot.slane %v2478_v24, 4  ;;  %v2483_v10 = vrot.slane %v2481_v38, 5  ;;  %v3215_v56 = vrot.slane %v2621_v48, 9 }
 0x3a2   : > { %3570 = vmatprep.subr.bf16.mxu0 %v3862_v22  ;;  %v2487_v7 = vshll.u32 %v4741_v14, 16  ;;  %v2471_v53 = vrot.slane %v2470_v35, 4  ;;  %v3870_v25 = vld [vmem:[#allocation6 + $0x118] sm:$0xff]   ;;  %v2656_v47 = vsel %vm4445_vm13, %v3217_v3, %v2655_v15  ;;  %v2664_v37 = vsel %vm4445_vm13, %v3219_v28, %v2663_v33 }
 0x3a3   : > { %3603 = vmatpush3.bf16.msra.mxu1 %v3865_v43  ;;  %v2448_v60 = vsel %vm4537_vm2, %v2443_v12, %v2447_v27  ;;  %v2484_v63 = vor.u32 %v2483_v10, %v2480_v51  ;;  %v2648_v2 = vsel %vm4445_vm13, %v3215_v56, %v2647_v11  ;;  %v3871_v27 = vld [vmem:[%s4874_s8 + $0x30] sm:$0xff]   ;;  %v2675_v24 = vrot.slane %v4741_v14, 5 }
 0x3a4   : > { %3604 = vmatprep.subr.bf16.mxu1 %v4015_v1  ;;  %v3205_v6 = vcombine.low %v2448_v60, %v2462_v44  ;;  %v2476_v20 = vsel %vm4537_vm2, %v2471_v53, %v2475_v42  ;;  %v3223_v17 = vcombine.low %v2648_v2, %v2652_v62 }
 0x3a5   : > { %3571 = vmatpush3.bf16.msra.mxu0 %v3862_v22  ;;  %v2489_v22 = vrot.slane %v2487_v7, 5  ;;  %v2485_v26 = vrot.slane %v2484_v63, 4  ;;  %v2672_v7 = vsel %vm4445_vm13, %v3221_v13, %v2671_v36 }
 0x3a6   : > { %3580 = vmatprep.subr.bf16.mxu0 %v3864_v58 }
 0x3a7   : > { %3605 = vmatpush3.bf16.msra.mxu1 %v3867_v49  ;;  %v2490_v43 = vsel %vm4537_vm2, %v2485_v26, %v2489_v22 }
 0x3a8   : > { %3573 = vmatmul.mubr.msk.bf16.vlgmr.msra.gmra.mrb[0].mxu0 %vm403_vm1, %v3204_v32  ;;  %3606 = vmatprep.subr.bf16.mxu1 %v4015_v1  ;;  %v3206_v4 = vcombine.low %v2476_v20, %v2490_v43  ;;  %v2660_v32 = vsel %vm4445_vm13, %v3218_v5, %v2659_v23  ;;  %v3874_v38 = vpop.eup %3873 }
 0x3a9   : > { %3581 = vmatpush3.bf16.msra.mxu0 %v3864_v58  ;;  %3576 = vmatprep.mubr.msk.bf16.mxu0 %vm403_vm1, %v3205_v6  ;;  %v2626_v58 = vld [vmem:[#allocation2 + $0x38] sm:$0xe]  ;;  %v3224_v12 = vcombine.low %v2656_v47, %v2660_v32  ;;  %v2811_v49 = vadd.f32 1.0, %v3874_v38 }
 0x3aa   : > { %3582 = vmatprep.subr.bf16.mxu0 %v3866_v50  ;;  %v3220_v31 = vrot.slane %v2626_v58, 9 }
 0x3ab   : > { %3607 = vmatpush3.bf16.msra.mxu1 %v3869_v9  ;;  %3875 = vrcp.f32 %v2811_v49 }
 0x3ac   : > { %3608 = vmatprep.subr.bf16.mxu1 %v4015_v1  ;;  %v2668_v8 = vsel %vm4445_vm13, %v3220_v31, %v2667_v45 }
 0x3ad   : > { %3583 = vmatpush3.bf16.msra.mxu0 %v3866_v50  ;;  %v2628_v50 = vld [vmem:[#allocation2 + $0x48] sm:$0xe]  ;;  %v3225_v34 = vcombine.low %v2664_v37, %v2668_v8 }
 0x3ae   : > { %3584 = vmatprep.subr.bf16.mxu0 %v3868_v54  ;;  %v3222_v18 = vrot.slane %v2628_v50, 9 }
 0x3af   : > { %3609 = vmatpush3.bf16.msra.mxu1 %v3871_v27 }
 0x3b0   : > { %3577 = vmatmul.mubr.msk.bf16.gmra.mrb[4].mxu0 %vm403_vm1, %v3206_v4  ;;  %3610 = vmatprep.subr.bf16.mxu1 %v4015_v1  ;;  %v2676_v1 = vsel %vm4445_vm13, %v3222_v18, %v2675_v24 }
 0x3b1   : > { %3585 = vmatpush3.bf16.msra.mxu0 %v3868_v54  ;;  %3588 = vmatprep.mubr.msk.bf16.mxu0 %vm403_vm1, %v3223_v17  ;;  %v3226_v60 = vcombine.low %v2672_v7, %v2676_v1 }
 0x3b2   : > { %3586 = vmatprep.subr.bf16.mxu0 %v3870_v25 }
 0x3b3   : > { %3611 = vmatpush3.bf16.msra.mxu1 %v3872_v52 }
 0x3b5   : > { %3587 = vmatpush3.bf16.msra.mxu0 %v3870_v25  ;;  %v3876_v29 = vpop.eup %3875 }
 0x3b6   : > { %v2814_v0 = vmul.f32 %v3876_v29, %v2807_v21  ;;  %v3244_v21 = vld [vmem:[%s4872_s6] ss:$0 sm:$0xff] }
 0x3b8   : > { %3589 = vmatmul.mubr.msk.bf16.vlgmr.msra.gmra.mrb[0].mxu0 %vm403_vm1, %v3224_v12  ;;  %v2815_v14 = vpack.c.bf16 %v2814_v0, %v2814_v0 }
 0x3b9   : > { %3592 = vmatprep.mubr.msk.bf16.mxu0 %vm403_vm1, %v3225_v34 }
 0x3ba   : > { %3613 = vmatmul.mubr.bf16.vlgmr.msra.gmra.mrb[16].mxu1 %v2815_v14 }
 0x3c0   : > { %3593 = vmatmul.mubr.msk.bf16.gmra.mrb[4].mxu0 %vm403_vm1, %v3226_v60 }
 0x469   : > { %v3478_v55 = vpop.f32.mrb[8].mxu1 }
 0x46a   : > { %v1406_v42 = vpop.f32.mrb[9].mxu1 }
 0x46b   : > { %v3479_v44 = vpop.f32.mrb[10].mxu1 }
 0x46c   : > { %v1409_v51 = vpop.f32.mrb[11].mxu1 }
 0x471   : > { %v3482_v10 = vpop.f32.mrb[12].mxu1 }
 0x472   : > { %v1422_v22 = vpop.f32.mrb[13].mxu1 }
 0x473   : > { %v3483_v6 = vpop.f32.mrb[14].mxu1 }
 0x474   : > { %v1425_v54 = vpop.f32.mrb[15].mxu1 }
 0x48b   : > { %v3590_v35 = vpop.f32.mrb[0].mxu0 }
 0x48c   : > { %v3652_v41 = vadd.f32 %v3590_v35, %v3478_v55  ;;  %v2768_v48 = vpop.f32.mrb[1].mxu0 }
 0x48d   : > { %v3653_v19 = vadd.f32 %v2768_v48, %v1406_v42  ;;  %v3591_v11 = vpop.f32.mrb[2].mxu0  ;;  %v2914_v43 = vpop.f32.mrb[16].mxu1 }
 0x48e   : > { %v3654_v46 = vadd.f32 %v3591_v11, %v3479_v44  ;;  %v2771_v63 = vpop.f32.mrb[3].mxu0  ;;  %v2929_v15 = vadd.f32 %v3652_v41, %v3244_v21  ;;  %v2938_v16 = vrot.slane %v2914_v43, %v4373_v40  ;;  %v3614_v4 = vpop.f32.mrb[17].mxu1 }
 0x48f   : > { %v3655_v56 = vadd.f32 %v2771_v63, %v1409_v51  ;;  %v2927_v59 = vadd.f32 %v3653_v19, %v3244_v21  ;;  %v2917_v25 = vpop.f32.mrb[18].mxu1 }
 0x490   : > { %v2930_v58 = vadd.f32 %v3654_v46, %v3244_v21  ;;  %v3615_v45 = vpop.f32.mrb[19].mxu1  ;;  %v2941_v61 = vadd.f32 %v2938_v16, %v2929_v15 }
 0x491   : > { %v2928_v20 = vadd.f32 %v3655_v56, %v3244_v21  ;;  %v2939_v27 = vadd.f32 %v2938_v16, %v2927_v59 }
 0x492   : > { %v2942_v52 = vadd.f32 %v2938_v16, %v2930_v58 }
 0x493   : > { %v3594_v30 = vpop.f32.mrb[4].mxu0  ;;  %v2940_v28 = vadd.f32 %v2938_v16, %v2928_v20 }
 0x494   : > { %v3656_v9 = vadd.f32 %v3594_v30, %v3482_v10  ;;  %v2784_v53 = vpop.f32.mrb[5].mxu0  ;;  %v3268_v50 = vpack.c.bf16 %v2942_v52, %v2941_v61 }
 0x495   : > { %v3657_v57 = vadd.f32 %v2784_v53, %v1422_v22  ;;  %v3595_v39 = vpop.f32.mrb[6].mxu0  ;;  %v3263_v40 = vpack.c.bf16 %v2940_v28, %v2939_v27 }
 0x496   : > { %v3658_v26 = vadd.f32 %v3595_v39, %v3483_v6  ;;  %v2787_v2 = vpop.f32.mrb[7].mxu0  ;;  %v2933_v17 = vadd.f32 %v3656_v9, %v3244_v21  ;;  %3280 = vst [vmem:[%s4399_s14 + $0x8] sm:$0xff] %v3268_v50  }
 0x497   : > { %v3659_v62 = vadd.f32 %v2787_v2, %v1425_v54  ;;  %v2931_v3 = vadd.f32 %v3657_v57, %v3244_v21  ;;  %3264 = vst [vmem:[%s4399_s14] sm:$0xff] %v3263_v40  }
 0x498   : > { %v2934_v5 = vadd.f32 %v3658_v26, %v3244_v21  ;;  %v2945_v33 = vadd.f32 %v2938_v16, %v2933_v17 }
 0x499   : > { %v2932_v23 = vadd.f32 %v3659_v62, %v3244_v21  ;;  %v2943_v31 = vadd.f32 %v2938_v16, %v2931_v3 }
 0x49a   : > { %v2946_v47 = vadd.f32 %v2938_v16, %v2934_v5 }
 0x49b   : > { %v2944_v32 = vadd.f32 %v2938_v16, %v2932_v23 }
 0x49c   : > { %v3278_v37 = vpack.c.bf16 %v2946_v47, %v2945_v33 }
 0x49d   : > { %v3273_v8 = vpack.c.bf16 %v2944_v32, %v2943_v31 }
 0x49e   : > { %3282 = vst [vmem:[%s4399_s14 + $0x18] sm:$0xff] %v3278_v37  }
 0x49f   : > { %3281 = vst [vmem:[%s4399_s14 + $0x10] sm:$0xff] %v3273_v8  }
 0x4a0   : > { %3948 = shalt.err (!%p3945_p2)
}
 0x4a1   : > { %s3949_s14 = scalar_lea.hbm %s4816_s13, 512  ;;  %s3953_s27 = scalar_lea.hbm %s4875_s9, 1024 }
 0x4a2   : > { %p3950_p0 = scmp.ne.s32.totalorder %s4816_s13, %s3949_s14  ;;  %p3954_p1 = scmp.lt.u32.totalorder %s4816_s13, %s4875_s9 }
 0x4a3   : > { %p3955_p4 = scmp.lt.u32.totalorder %s3953_s27, %s3949_s14  ;;  %p3957_p8 = scmp.lt.u32.totalorder %s3949_s14, %s4816_s13 }
 0x4a4   : > { %p3951_p5 = pnand %p3950_p0, %p4162_p11 }
 0x4a5   : > { %p3956_p6 = por %p3955_p4, %p3954_p1 }
 0x4a6   : > { %p3952_p12 = pneg %p3951_p5 }
 0x4a7   : > { %p3958_p9 = por %p3957_p8, %p3956_p6 }
 0x4a9   : > { %p3959_p13 = pnand %p3958_p9, %p3952_p12 }
 0x4ab   : > { %3962 = shalt.err (!%p3959_p13)
}
 0x4ac   : > { %s4018_s15 = smov 64   ;;  %s4019_s24 = smov 4  }
 0x4ad   : > { %3722 = dma.vmem_to_hbm [thread:$0]  (%p4162_p11), %s4818_s20, 512, %s4816_s13, %s2964_s22, %s4018_s15, %s4018_s15, %s4019_s24  }
 0x4ae PF: > { %s4905_s26 = sld [smem:[#allocation12_spill]]  ;;  %s2992_s23 = sand.u32 1, %s3993_s30  }
 0x4af   : > { %p4907_p7 = scmp.ge.s32.totalorder %s4005_s12, 2  ;;  %s2993_s16 = scalar_lea.sflag [#allocation5], %s2992_s23 }
 0x4b4   : > { %p4906_p3 = scmp.ne.s32.totalorder %s4905_s26, 0 }
 0x4b6   : > { %p3733_p10 = pnand %p4907_p7, %p4906_p3 }
 0x4b8   : > { %3988 = dma.done.wait (!%p3733_p10), %s2993_s16, 512  }
 0x4b9   : > { %3990 = vsyncadd (!%p3733_p10), %s2993_s16, 4294966784  ;;  %s4908_s12 = sld [smem:[#allocation13_spill]]  ;;  %s4909_s30 = smov %s3997_s10 }
 0x4ba   : > { %s4910_s10 = smov %s4001_s11  ;;  %s4911_s11 = smov %s4158_s28 }
 0x4bf   : > { %p23_p2 = scmp.ge.s32.totalorder %s4908_s12, 4  }
 0x4c1   :  { %25 = sbr.rel (!%p23_p2) target bundleno = 6 (0x6), region = 122 }
 0x4c8   :  { %2998 = vsyncpa [#allocation4], 1 }
 0x4c9   :  { %3000 = vsyncpa [#allocation4 + $0x1], 1 }
 0x4ca   :  { %3001 = vsyncpa [#allocation7], 1 }
 0x4cb   :  { %3002 = vsyncpa [#allocation5], 1 }
 0x4cc   :  { %3004 = vsyncpa [#allocation5 + $0x1], 1 }

// kernel: tpu_custom_call.1
= control target key start
LH: loop header
LB: loop body
LE: loop exit
PB: predicated region body
PF: predicated region fallthrough
CT: control target
= control target key end

     0   :  { %14 = vsyncpa [#allocation4], 0  ;;  %s4866_s0 = inlined_call_operand.hbm [shape: f32[2,8,8,64], index: 0, kind: input, shape index: {}]   ;;  %s4867_s1 = inlined_call_operand.vmem [shape: f32[1,64], index: 1, kind: input, shape index: {}]   ;;  %s4868_s2 = inlined_call_operand.vmem [shape: f32[1,64], index: 2, kind: input, shape index: {}]   ;;  %s4869_s3 = inlined_call_operand.vmem [shape: f32[64,32], index: 3, kind: input, shape index: {}]   ;;  %s4870_s4 = inlined_call_operand.vmem [shape: f32[32,64], index: 4, kind: input, shape index: {}]   ;;  %s4871_s5 = inlined_call_operand.hbm [shape: bf16[9,64,128], index: 5, kind: input, shape index: {}]   ;;  %s4872_s6 = inlined_call_operand.vmem [shape: f32[1,128], index: 6, kind: input, shape index: {}]   ;;  %s4873_s7 = inlined_call_operand.vmem [shape: f32[2,1,128], index: 7, kind: input, shape index: {}]   ;;  %s4874_s8 = inlined_call_operand.vmem [shape: bf16[128,128], index: 8, kind: input, shape index: {}]   ;;  %s4875_s9 = inlined_call_operand.hbm [shape: bf16[2,8,8,128], index: 9, kind: output, shape index: {}]  }
   0x1   :  { %16 = vsyncpa [#allocation4 + $0x1], 0 }
   0x2   :  { %17 = vsyncpa [#allocation7], 0 }
   0x3   :  { %18 = vsyncpa [#allocation5], 0 }
   0x4   :  { %20 = vsyncpa [#allocation5 + $0x1], 0  ;;  %s4070_s30 = smov 0   ;;  %s4072_s10 = smov 0  }
   0x5   :  { %s4074_s11 = smov 0   ;;  %s4076_s12 = smov 0  }
   0x6 LB: > { %s4091_s13 = sadd.s32 4294967295, %s4005_s12   ;;  %s3069_s14 = sadd.s32 4294967294, %s4005_s12   ;;  %s4005_s12 = sphi %s4076_s12, %s4908_s12   ;;  %s4001_s11 = sphi %s4074_s11, %s4911_s11   ;;  %s3997_s10 = sphi %s4072_s10, %s4910_s10   ;;  %s3993_s30 = sphi %s4070_s30, %s4909_s30  }
   0x7   : > { %p46_p0 = scmp.ne.s32.totalorder %s3997_s10, %s3993_s30  ;;  %p4876_p1 = scmp.eq.s32.totalorder %s4091_s13, 0 }
   0x8   : > { %p249_p3 = scmp.eq.s32.totalorder %s3069_s14, 1  ;;  %p3070_p5 = scmp.ge.s32.totalorder %s4005_s12, 1 }
   0x9   : > { %p4100_p4 = por %p4876_p1, %p46_p0  ;;  %p256_p7 = scmp.lt.s32.totalorder %s4005_s12, 3 }
   0xa   : > { %p4105_p6 = por %p249_p3, %p46_p0  ;;  %s4007_s18 = smov [#allocation6]  }
   0xb   : > { %s4882_s15 = scalar_select %p4100_p4, 1, 0 }
   0xc   : > { %s4883_s16 = scalar_select %p4105_p6, 1, 0 }
   0xd   : > { %p4111_p9 = pnand %p3070_p5, %p256_p7  ;;  %s280_s19 = sshll.u32 %s4007_s18, 4  ;;  %s4115_s19 = int_to_ptr.vmem [resolvable:$true] %s280_s19 }
   0xe   : > { %4884 = sst [smem:[#allocation12_spill]] %s4883_s16  ;;  %s4127_s21 = sadd.s32 1, %s4005_s12  }
   0xf   : > { %s4885_s17 = scalar_select %p4111_p9, 1, 0 }
  0x10   : > { %p3724_p10 = pneg %p4111_p9  ;;  %4887 = sst [smem:[#allocation13_spill]] %s4127_s21 }
  0x11   : > { %s33_s22 = sadd.s32 1, %s4001_s11  ;;  %s30_s23 = ssub.s32 %s4005_s12, %s4127_s21 }
  0x12   : > { %p4122_p12 = pnand %p3724_p10, %p4876_p1  ;;  %s3877_s26 = scalar_lea.hbm %s4871_s5, 4608 }
  0x13   : > { %p3878_p13 = scmp.ne.s32.totalorder %s4871_s5, %s3877_s26  ;;  %p3884_p7 = scmp.lt.u32.totalorder %s3877_s26, %s4871_s5 }
  0x14   : > { %p3879_p0 = pneg %p4122_p12 }
  0x16   : > { %p3880_p3 = pnand %p3879_p0, %p3878_p13 }
  0x18   : > { %p3881_p5 = pneg %p3880_p3 }
  0x1a   : > { %p3886_p10 = pnand %p3884_p7, %p3881_p5 }
  0x1c   : > { %3889 = shalt.err (!%p3886_p10)
}
  0x1d   : > { %s3890_s18 = scalar_lea.vmem %s4115_s19, 4608  ;;  %p3898_p2 = scmp.lt.s32.totalorder %s4115_s19, %s4115_s19 }
  0x1e   : > { %p3891_p11 = scmp.ne.s32.totalorder %s4115_s19, %s3890_s18  ;;  %p3899_p6 = scmp.lt.s32.totalorder %s3890_s18, %s3890_s18 }
  0x20   : > { %p3893_p8 = pnand %p3891_p11, %p3879_p0  ;;  %p3900_p4 = por %p3899_p6, %p3898_p2 }
  0x22   : > { %p3894_p1 = pneg %p3893_p8 }
  0x24   : > { %p3901_p9 = pnand %p3900_p4, %p3894_p1 }
  0x26   : > { %3904 = shalt.err (!%p3901_p9)
}
  0x27   : > { %s4008_s24 = smov 64   ;;  %s4009_s25 = smov 4  }
  0x28   : > { %3727 = dma.hbm_to_vmem [thread:$0]  (!%p4122_p12), %s4871_s5, 4608, %s4115_s19, [#allocation7], %s4008_s24, %s4008_s24, %s4009_s25  }
  0x29   : > { %p31_p2 = scmp.eq.s32.totalorder %s30_s23, 0  ;;  %p40_p1 = scmp.ne.s32.totalorder %s4001_s11, %s3997_s10 }
  0x2a   : > { %p41_p4 = scmp.eq.s32.totalorder %s4005_s12, 0  ;;  %p3737_p6 = scmp.lt.s32.totalorder %s4005_s12, 2 }
  0x2b   : > { %s4158_s28 = scalar_select %p31_p2, %s4001_s11, %s33_s22  }
  0x2c   : > { %p42_p8 = por %p41_p4, %p40_p1  ;;  %p4888_p9 = scmp.eq.s32.totalorder %s4091_s13, 1 }
  0x2d   : > { %s300_s14 = sand.u32 1, %s4001_s11   ;;  %s3250_s18 = sshll.u32 %s4005_s12, 10 }
  0x2e   : > { %p4162_p11 = por %p4888_p9, %p40_p1  ;;  %s3073_s21 = sshll.u32 %s300_s14, 6 }
  0x2f   : > { %s4171_s26 = scalar_lea.hbm %s4866_s0, %s3250_s18  ;;  %s304_s19 = scalar_lea.vmem [#allocation3], %s3073_s21 }
  0x30   : > { %s311_s22 = sshll.u32 %s304_s19, 4  ;;  %p4173_p12 = pnand %p3737_p6, %p42_p8  ;;  %s4177_s22 = int_to_ptr.vmem [resolvable:$true] %s311_s22 }
  0x31   : > { %s4179_s24 = scalar_lea.sflag [#allocation4], %s300_s14  ;;  %s3905_s25 = scalar_lea.hbm %s4171_s26, 1024 }
  0x32   : > { %p3906_p13 = scmp.ne.s32.totalorder %s4171_s26, %s3905_s25  ;;  %p3907_p0 = pneg %p4173_p12 }
  0x33   : > { %s3910_s27 = scalar_lea.hbm %s4866_s0, 2048  ;;  %p3911_p7 = scmp.lt.u32.totalorder %s4171_s26, %s4866_s0 }
  0x34   : > { %p3908_p3 = pnand %p3907_p0, %p3906_p13  ;;  %p3912_p10 = scmp.lt.u32.totalorder %s3910_s27, %s3905_s25 }
  0x35   : > { %p3914_p1 = scmp.lt.u32.totalorder %s3905_s25, %s4171_s26 }
  0x36   : > { %p3909_p5 = pneg %p3908_p3  ;;  %p3913_p2 = por %p3912_p10, %p3911_p7 }
  0x38   : > { %p3915_p4 = por %p3914_p1, %p3913_p2 }
  0x3a   : > { %p3916_p6 = pnand %p3915_p4, %p3909_p5 }
  0x3c   : > { %3919 = shalt.err (!%p3916_p6)
}
  0x3d   : > { %s3920_s14 = scalar_lea.vmem %s4177_s22, 1024  ;;  %s4010_s19 = smov [#allocation3]  }
  0x3e   : > { %p3921_p8 = scmp.ne.s32.totalorder %s4177_s22, %s3920_s14  ;;  %s3925_s16 = sshll.u32 %s4010_s19, 4  ;;  %s3926_s16 = int_to_ptr.vmem [resolvable:$false] %s3925_s16 }
  0x3f   : > { %s3927_s21 = scalar_lea.vmem %s3926_s16, 2048  ;;  %p3928_p3 = scmp.lt.s32.totalorder %s4177_s22, %s3926_s16 }
  0x40   : > { %p3923_p9 = pnand %p3921_p8, %p3907_p0  ;;  %p3929_p7 = scmp.lt.s32.totalorder %s3927_s21, %s3920_s14 }
  0x42   : > { %p3924_p13 = pneg %p3923_p9  ;;  %p3930_p10 = por %p3929_p7, %p3928_p3 }
  0x44   : > { %p3931_p2 = pnand %p3930_p10, %p3924_p13 }
  0x46   : > { %3934 = shalt.err (!%p3931_p2)
}
  0x47   : > { %s4011_s25 = smov 128   ;;  %s4012_s27 = smov 8  }
  0x48   : > { %3731 = dma.hbm_to_vmem [thread:$0]  (!%p4173_p12), %s4171_s26, 1024, %s4177_s22, %s4179_s24, %s4011_s25, %s4011_s25, %s4012_s27  }
  0x49   : > { %p4891_p0 = scmp.ne.s32.totalorder %s4885_s17, 0 }
  0x4a   : > { %s4210_s18 = sand.u32 (!%p4891_p0), 1, %s3997_s10   ;;  %p4892_p5 = scmp.ne.s32.totalorder (!%p4891_p0), %s4882_s15, 0 }
  0x4b   : > { %329 = sbr.rel (%p4891_p0) target bundleno = 1198 (0x4ae), region = 56  ;;  %s3077_s20 = sshll.u32 (!%p4891_p0), %s4210_s18, 6 }
  0x4c   : > { %s332_s14 = scalar_lea.sflag (!%p4891_p0), [#allocation4], %s4210_s18  ;;  %s4214_s19 = scalar_lea.vmem (!%p4891_p0), [#allocation3], %s3077_s20 }
  0x52   : > { %3980 = dma.done.wait (%p4892_p5), %s332_s14, 1024  }
  0x53   : > { %3982 = vsyncadd (%p4892_p5), %s332_s14, 4294966272  ;;  %p4893_p12 = scmp.eq.s32.totalorder %s4091_s13, 0 }
  0x55   : > { %3984 = dma.done.wait (%p4893_p12), [#allocation7], 4608   ;;  %p4894_p1 = pmov %p4893_p12 }
  0x56   : > { %p377_p4 = scmp.lt.s32.totalorder %s4091_s13, 1  ;;  %v4013_v0 = vmov 0.0|0.0   ;;  %vm4014_vm0 = vmmov 0   ;;  %v4015_v1 = vmov 0.0   ;;  %v391_v2 = vld [vmem:[%s4869_s3] sm:$0xff]  ;;  %v392_v3 = vld [vmem:[%s4869_s3 + $0x8] sm:$0xff] }
  0x57   : > { %3986 = vsyncadd (%p4894_p1), [#allocation7], 4294962688  ;;  %3616 = vmatprep.subr.bf16.mxu1 %v4013_v0  ;;  %3408 = vmatprep.mubr.msk.f32.mxu1 %vm4014_vm0, %v4015_v1  ;;  %v393_v4 = vld [vmem:[%s4869_s3 + $0x10] sm:$0xff]  ;;  %vm403_vm1 = vcmask 523264   ;;  %v4245_v5 = vpack.c.bf16 %v392_v3, %v391_v2  ;;  %v394_v6 = vld [vmem:[%s4869_s3 + $0x18] sm:$0xff]  ;;  %vm527_vm2 = vcmask 261120  }
  0x58   : > { %s4228_s26 = scalar_select %p377_p4, %s4091_s13, 1  ;;  %v4251_v7 = vld [vmem:[%s4214_s19] sm:$0xff]  ;;  %v4254_v8 = vpack.c.bf16 %v394_v6, %v393_v4  ;;  %v4257_v9 = vld [vmem:[%s4214_s19 + $0x8] sm:$0xff]  ;;  %v4260_v10 = vld [vmem:[%s4214_s19 + $0x10] sm:$0xff] }
  0x59   : > { %3618 = vmatpush3.bf16.msra.mxu1 %v4245_v5  ;;  %v4263_v11 = vld [vmem:[%s4214_s19 + $0x18] sm:$0xff]  ;;  %v404_v12 = vsel %vm403_vm1, %v4251_v7, 0.0  ;;  %v395_v13 = vld [vmem:[%s4869_s3 + $0x20] sm:$0xff]  ;;  %v405_v15 = vsel %vm403_vm1, %v4257_v9, 0.0  ;;  %v407_v16 = vsel %vm403_vm1, %v4260_v10, 0.0  ;;  %v4279_v17 = vld [vmem:[%s4214_s19 + $0x20] sm:$0xff]  ;;  %v425_v49 = vmul.f32 %v4251_v7, %v4251_v7 }
  0x5a   : > { %s379_s23 = scalar_lea.vmem %s4873_s7, %s4228_s26  ;;  %3619 = vmatprep.subr.bf16.mxu1 %v4013_v0  ;;  %v396_v14 = vld [vmem:[%s4869_s3 + $0x28] sm:$0xff]  ;;  %v406_v18 = vadd.f32 %v405_v15, %v404_v12  ;;  %v409_v19 = vsel %vm403_vm1, %v4263_v11, 0.0  ;;  %v4287_v21 = vld [vmem:[%s4214_s19 + $0x28] sm:$0xff]  ;;  %v397_v23 = vld [vmem:[%s4869_s3 + $0x30] sm:$0xff]  ;;  %v411_v25 = vsel %vm403_vm1, %v4279_v17, 0.0  ;;  %v426_v50 = vmul.f32 %v4257_v9, %v4257_v9  ;;  %s4895_s20 = sshll.u32 %s4210_s18, 5 }
  0x5b   : > { %v4284_v20 = vpack.c.bf16 %v396_v14, %v395_v13  ;;  %v398_v24 = vld [vmem:[%s4869_s3 + $0x38] sm:$0xff]  ;;  %v4299_v26 = vld [vmem:[%s4214_s19 + $0x30] sm:$0xff]  ;;  %v413_v28 = vsel %vm403_vm1, %v4287_v21, 0.0  ;;  %v4307_v30 = vld [vmem:[%s4214_s19 + $0x38] sm:$0xff]  ;;  %v427_v51 = vmul.f32 %v4260_v10, %v4260_v10  ;;  %v433_v52 = vsel %vm403_vm1, %v425_v49, 0.0  ;;  %s4399_s14 = scalar_lea.vmem [#allocation8], %s4895_s20 }
  0x5c   : > { %v408_v22 = vadd.f32 %v407_v16, %v406_v18  ;;  %v4304_v29 = vpack.c.bf16 %v398_v24, %v397_v23  ;;  %v415_v32 = vsel %vm403_vm1, %v4299_v26, 0.0  ;;  %v417_v34 = vsel %vm403_vm1, %v4307_v30, 0.0  ;;  %v399_v41 = vld [vmem:[%s4870_s4] sm:$0xff]  ;;  %v400_v42 = vld [vmem:[%s4870_s4 + $0x8] sm:$0xff]  ;;  %v401_v46 = vld [vmem:[%s4870_s4 + $0x10] sm:$0xff]  ;;  %p4896_p6 = scmp.ne.s32.totalorder %s4091_s13, 0 }
  0x5d   : > { %3621 = vmatpush3.bf16.msra.mxu1 %v4254_v8  ;;  %v3629_v44 = vpack.c.bf16 %v400_v42, %v399_v41  ;;  %v402_v47 = vld [vmem:[%s4870_s4 + $0x18] sm:$0xff]  ;;  %v434_v53 = vsel %vm403_vm1, %v426_v50, 0.0  ;;  %v428_v55 = vmul.f32 %v4263_v11, %v4263_v11  ;;  %v436_v56 = vsel %vm403_vm1, %v427_v51, 0.0 }
  0x5e   : > { %3622 = vmatprep.subr.bf16.mxu1 %v4013_v0  ;;  %v410_v27 = vadd.f32 %v409_v19, %v408_v22  ;;  %v3632_v48 = vpack.c.bf16 %v402_v47, %v401_v46  ;;  %v435_v54 = vadd.f32 %v434_v53, %v433_v52  ;;  %v429_v58 = vmul.f32 %v4279_v17, %v4279_v17 }
  0x5f   : > { %v438_v59 = vsel %vm403_vm1, %v428_v55, 0.0  ;;  %v430_v61 = vmul.f32 %v4287_v21, %v4287_v21  ;;  %v431_v2 = vmul.f32 %v4299_v26, %v4299_v26  ;;  %v432_v6 = vmul.f32 %v4307_v30, %v4307_v30 }
  0x60   : > { %v412_v31 = vadd.f32 %v411_v25, %v410_v27  ;;  %v437_v57 = vadd.f32 %v436_v56, %v435_v54  ;;  %v440_v62 = vsel %vm403_vm1, %v429_v58, 0.0  ;;  %vm866_vm3 = vcmask (!%p4896_p6), 519168  }
  0x61   : > { %3624 = vmatpush3.bf16.msra.mxu1 %v4284_v20  ;;  %v442_v3 = vsel %vm403_vm1, %v430_v61, 0.0  ;;  %v444_v12 = vsel %vm403_vm1, %v431_v2, 0.0  ;;  %v446_v14 = vsel %vm403_vm1, %v432_v6, 0.0  ;;  %vm868_vm4 = vcmask (!%p4896_p6), 516096  }
  0x62   : > { %3625 = vmatprep.subr.bf16.mxu1 %v4013_v0  ;;  %v414_v33 = vadd.f32 %v413_v28, %v412_v31  ;;  %v439_v60 = vadd.f32 %v438_v59, %v437_v57 }
  0x64   : > { %v416_v35 = vadd.f32 %v415_v32, %v414_v33  ;;  %v441_v63 = vadd.f32 %v440_v62, %v439_v60 }
  0x65   : > { %3627 = vmatpush3.bf16.msra.mxu1 %v4304_v29 }
  0x66   : > { %3628 = vmatprep.subr.bf16.mxu1 %v4013_v0  ;;  %v418_v36 = vadd.f32 %v417_v34, %v416_v35  ;;  %v443_v4 = vadd.f32 %v442_v3, %v441_v63  ;;  %v754_v35 = vlaneseq }
  0x68   : > { %v419_v37 = vrot.slane %v418_v36, 4  ;;  %v445_v13 = vadd.f32 %v444_v12, %v443_v4 }
  0x6a   : > { %v420_v38 = vadd.f32 %v419_v37, %v418_v36  ;;  %v447_v15 = vadd.f32 %v446_v14, %v445_v13 }
  0x6c   : > { %v421_v39 = vrot.slane %v420_v38, 2  ;;  %v448_v16 = vrot.slane %v447_v15, 4 }
  0x6e   : > { %v422_v40 = vadd.f32 %v421_v39, %v420_v38  ;;  %v449_v18 = vadd.f32 %v448_v16, %v447_v15  ;;  %v755_v38 = vshrl.u32 %v754_v35, 7 }
  0x70   : > { %v423_v43 = vrot.slane %v422_v40, 1  ;;  %v450_v23 = vrot.slane %v449_v18, 2 }
  0x72   : > { %v424_v45 = vadd.f32 %v423_v43, %v422_v40  ;;  %v451_v24 = vadd.f32 %v450_v23, %v449_v18  ;;  %v4373_v40 = vsub.s32 0, %v755_v38 }
  0x74   : > { %3409 = vmatmul.mubr.msk.f32.vlgmr.msra.gmra.mrb[0].mxu1 %vm403_vm1, %v424_v45  ;;  %v452_v25 = vrot.slane %v451_v24, 1 }
  0x75   : > { %3630 = vmatpush3.bf16.msra.mxu1 %v3629_v44  ;;  %3419 = vmatprep.mubr.msk.f32.mxu1 %vm4014_vm0, %v4015_v1 }
  0x76   : > { %3631 = vmatprep.subr.bf16.mxu1 %v4013_v0  ;;  %v453_v27 = vadd.f32 %v452_v25, %v451_v24 }
  0x79   : > { %3633 = vmatpush3.bf16.msra.mxu1 %v3632_v48 }
  0x7a   : > { %3634 = vmatprep.subr.bf16.mxu1 %v4013_v0 }
 0x147   : > { %v523_v19 = vpop.f32.mrb[0].mxu1 }
 0x148   : > { %v3410_v22 = vpop.f32.mrb[1].mxu1  ;;  %3420 = vmatmul.mubr.msk.f32.vlgmr.msra.gmra.mrb[2].mxu1 %vm527_vm2, %v523_v19 }
 0x149   : > { %3636 = vmatpush3.bf16.msra.mxu1 %v4245_v5  ;;  %3438 = vmatprep.mubr.msk.f32.mxu1 %vm4014_vm0, %v4015_v1 }
 0x14a   : > { %3637 = vmatprep.subr.bf16.mxu1 %v4013_v0 }
 0x14d   : > { %3639 = vmatpush3.bf16.msra.mxu1 %v4254_v8 }
 0x14e   : > { %3640 = vmatprep.subr.bf16.mxu1 %v4013_v0 }
 0x151   : > { %3642 = vmatpush3.bf16.msra.mxu1 %v4284_v20 }
 0x152   : > { %3643 = vmatprep.subr.bf16.mxu1 %v4013_v0 }
 0x155   : > { %3645 = vmatpush3.bf16.msra.mxu1 %v4304_v29 }
 0x156   : > { %3646 = vmatprep.subr.bf16.mxu1 %v4013_v0 }
 0x158   : > { %3439 = vmatmul.mubr.msk.f32.vlgmr.msra.gmra.mrb[4].mxu1 %vm403_vm1, %v453_v27 }
 0x159   : > { %3648 = vmatpush3.bf16.msra.mxu1 %v3629_v44  ;;  %3449 = vmatprep.mubr.msk.f32.mxu1 %vm4014_vm0, %v4015_v1 }
 0x15a   : > { %3649 = vmatprep.subr.bf16.mxu1 %v4013_v0 }
 0x15d   : > { %3651 = vmatpush3.bf16.msra.mxu1 %v3632_v48 }
 0x21b   : > { %v597_v5 = vpop.f32.mrb[2].mxu1 }
 0x21c   : > { %v3421_v8 = vpop.f32.mrb[3].mxu1  ;;  %v601_v31 = vmul.f32 0.015625, %v597_v5 }
 0x21e   : > { %v749_v29 = vmul.f32 %v601_v31, %v601_v31  ;;  %v757_v0 = vrot.slane %v601_v31, %v4373_v40 }
 0x220   : > { %v758_v42 = vsub.f32 %v4251_v7, %v757_v0  ;;  %v759_v43 = vsub.f32 %v4257_v9, %v757_v0  ;;  %v760_v44 = vsub.f32 %v4260_v10, %v757_v0  ;;  %v761_v45 = vsub.f32 %v4263_v11, %v757_v0  ;;  %v3084_v7 = vld [vmem:[%s4867_s1] ss:$0 sm:$0xff] }
 0x221   : > { %v762_v47 = vsub.f32 %v4279_v17, %v757_v0  ;;  %v763_v48 = vsub.f32 %v4287_v21, %v757_v0  ;;  %v764_v49 = vsub.f32 %v4299_v26, %v757_v0  ;;  %v765_v50 = vsub.f32 %v4307_v30, %v757_v0  ;;  %v3085_v11 = vld [vmem:[%s4868_s2] ss:$0 sm:$0xff] }
 0x22b   : > { %v671_v28 = vpop.f32.mrb[4].mxu1 }
 0x22c   : > { %v3440_v20 = vpop.f32.mrb[5].mxu1  ;;  %3450 = vmatmul.mubr.msk.f32.vlgmr.msra.gmra.mrb[6].mxu1 %vm527_vm2, %v671_v28 }
 0x2ff   : > { %v744_v32 = vpop.f32.mrb[6].mxu1 }
 0x300   : > { %v748_v33 = vmul.f32 0.015625, %v744_v32  ;;  %v3451_v34 = vpop.f32.mrb[7].mxu1 }
 0x302   : > { %v750_v36 = vsub.f32 %v748_v33, %v749_v29 }
 0x304   : > { %v751_v37 = vmax.f32 %v750_v36, 0.0 }
 0x306   : > { %v752_v39 = vadd.f32 1e-06, %v751_v37 }
 0x308   : > { %3783 = vrsqrt.f32 %v752_v39 }
 0x312   : > { %v3784_v41 = vpop.eup %3783 }
 0x313   : > { %v769_v46 = vrot.slane %v3784_v41, %v4373_v40 }
 0x315   : > { %v770_v51 = vmul.f32 %v769_v46, %v758_v42  ;;  %v771_v9 = vmul.f32 %v769_v46, %v759_v43  ;;  %v772_v52 = vmul.f32 %v769_v46, %v760_v44  ;;  %v773_v10 = vmul.f32 %v769_v46, %v761_v45 }
 0x316   : > { %v774_v53 = vmul.f32 %v769_v46, %v762_v47  ;;  %v775_v17 = vmul.f32 %v769_v46, %v763_v48  ;;  %v776_v54 = vmul.f32 %v769_v46, %v764_v49  ;;  %v777_v21 = vmul.f32 %v769_v46, %v765_v50 }
 0x317   : > { %v784_v55 = vmul.f32 %v3084_v7, %v770_v51  ;;  %v785_v26 = vmul.f32 %v3084_v7, %v771_v9  ;;  %v786_v56 = vmul.f32 %v3084_v7, %v772_v52  ;;  %v787_v30 = vmul.f32 %v3084_v7, %v773_v10 }
 0x318   : > { %v788_v57 = vmul.f32 %v3084_v7, %v774_v53  ;;  %v789_v58 = vmul.f32 %v3084_v7, %v775_v17  ;;  %v790_v59 = vmul.f32 %v3084_v7, %v776_v54  ;;  %v791_v60 = vmul.f32 %v3084_v7, %v777_v21 }
 0x319   : > { %v798_v61 = vadd.f32 %v3085_v11, %v784_v55  ;;  %v799_v62 = vadd.f32 %v3085_v11, %v785_v26  ;;  %v800_v63 = vadd.f32 %v3085_v11, %v786_v56  ;;  %v801_v2 = vadd.f32 %v3085_v11, %v787_v30 }
 0x31a   : > { %v802_v3 = vadd.f32 %v3085_v11, %v788_v57  ;;  %v803_v4 = vadd.f32 %v3085_v11, %v789_v58  ;;  %v804_v6 = vadd.f32 %v3085_v11, %v790_v59  ;;  %v805_v15 = vadd.f32 %v3085_v11, %v791_v60 }
 0x31b   : > { %v3086_v12 = vmul.f32 -1.442695, %v798_v61  ;;  %v3087_v13 = vmul.f32 -1.442695, %v799_v62  ;;  %v3088_v14 = vmul.f32 -1.442695, %v800_v63 }
 0x31c   : > { %v3089_v16 = vmul.f32 -1.442695, %v801_v2  ;;  %v3090_v18 = vmul.f32 -1.442695, %v802_v3  ;;  %v3091_v19 = vmul.f32 -1.442695, %v803_v4 }
 0x31d   : > { %3785 = vpow2.f32 %v3086_v12  ;;  %v3092_v22 = vmul.f32 -1.442695, %v804_v6  ;;  %v3093_v23 = vmul.f32 -1.442695, %v805_v15  ;;  %v4016_v10 = vmov (!%p4896_p6), 0  }
 0x31e   : > { %3787 = vpow2.f32 %v3087_v13  ;;  %867 = vst.msk [vmem:[#allocation2] sm:$0xf] (!%p4896_p6), %vm866_vm3, %v4016_v10  ;;  %870 = vst.msk [vmem:[#allocation2 + $0x8] sm:$0xf] (!%p4896_p6), %vm866_vm3, %v4016_v10 }
 0x31f   : > { %3789 = vpow2.f32 %v3088_v14  ;;  %872 = vst.msk [vmem:[#allocation2 + $0x10] sm:$0xf] (!%p4896_p6), %vm866_vm3, %v4016_v10  ;;  %874 = vst.msk [vmem:[#allocation2 + $0x18] sm:$0xf] (!%p4896_p6), %vm866_vm3, %v4016_v10 }
 0x320   : > { %3791 = vpow2.f32 %v3089_v16  ;;  %876 = vst.msk [vmem:[#allocation2 + $0x20] sm:$0xf] (!%p4896_p6), %vm866_vm3, %v4016_v10  ;;  %878 = vst.msk [vmem:[#allocation2 + $0x28] sm:$0xf] (!%p4896_p6), %vm866_vm3, %v4016_v10 }
 0x321   : > { %3793 = vpow2.f32 %v3090_v18  ;;  %880 = vst.msk [vmem:[#allocation2 + $0x30] sm:$0xf] (!%p4896_p6), %vm866_vm3, %v4016_v10  ;;  %882 = vst.msk [vmem:[#allocation2 + $0x38] sm:$0xf] (!%p4896_p6), %vm866_vm3, %v4016_v10 }
 0x322   : > { %3795 = vpow2.f32 %v3091_v19  ;;  %884 = vst.msk [vmem:[#allocation2 + $0x40] sm:$0xf] (!%p4896_p6), %vm866_vm3, %v4016_v10  ;;  %886 = vst.msk [vmem:[#allocation2 + $0x48] sm:$0xf] (!%p4896_p6), %vm866_vm3, %v4016_v10 }
 0x323   : > { %3797 = vpow2.f32 %v3092_v22  ;;  %869 = vst.msk [vmem:[#allocation2 + $0x4] sm:$0x1] (!%p4896_p6), %vm868_vm4, %v4016_v10  ;;  %871 = vst.msk [vmem:[#allocation2 + $0xc] sm:$0x1] (!%p4896_p6), %vm868_vm4, %v4016_v10 }
 0x324   : > { %3799 = vpow2.f32 %v3093_v23  ;;  %873 = vst.msk [vmem:[#allocation2 + $0x14] sm:$0x1] (!%p4896_p6), %vm868_vm4, %v4016_v10  ;;  %875 = vst.msk [vmem:[#allocation2 + $0x1c] sm:$0x1] (!%p4896_p6), %vm868_vm4, %v4016_v10 }
 0x325   : > { %877 = vst.msk [vmem:[#allocation2 + $0x24] sm:$0x1] (!%p4896_p6), %vm868_vm4, %v4016_v10  ;;  %879 = vst.msk [vmem:[#allocation2 + $0x2c] sm:$0x1] (!%p4896_p6), %vm868_vm4, %v4016_v10 }
 0x326   : > { %881 = vst.msk [vmem:[#allocation2 + $0x34] sm:$0x1] (!%p4896_p6), %vm868_vm4, %v4016_v10  ;;  %883 = vst.msk [vmem:[#allocation2 + $0x3c] sm:$0x1] (!%p4896_p6), %vm868_vm4, %v4016_v10 }
 0x327   : > { %v3786_v24 = vpop.eup %3785  ;;  %885 = vst.msk [vmem:[#allocation2 + $0x44] sm:$0x1] (!%p4896_p6), %vm868_vm4, %v4016_v10  ;;  %887 = vst.msk [vmem:[#allocation2 + $0x4c] sm:$0x1] (!%p4896_p6), %vm868_vm4, %v4016_v10 }
 0x328   : > { %v3788_v25 = vpop.eup %3787  ;;  %v830_v27 = vadd.f32 1.0, %v3786_v24 }
 0x329   : > { %v3790_v5 = vpop.eup %3789  ;;  %v831_v8 = vadd.f32 1.0, %v3788_v25 }
 0x32a   : > { %v3792_v28 = vpop.eup %3791  ;;  %v832_v20 = vadd.f32 1.0, %v3790_v5  ;;  %3801 = vrcp.f32 %v830_v27 }
 0x32b   : > { %v3794_v31 = vpop.eup %3793  ;;  %v833_v32 = vadd.f32 1.0, %v3792_v28  ;;  %3803 = vrcp.f32 %v831_v8 }
 0x32c   : > { %v3796_v29 = vpop.eup %3795  ;;  %v834_v33 = vadd.f32 1.0, %v3794_v31  ;;  %3805 = vrcp.f32 %v832_v20 }
 0x32d   : > { %v3798_v34 = vpop.eup %3797  ;;  %v835_v35 = vadd.f32 1.0, %v3796_v29  ;;  %3807 = vrcp.f32 %v833_v32 }
 0x32e   : > { %v3800_v36 = vpop.eup %3799  ;;  %v836_v37 = vadd.f32 1.0, %v3798_v34  ;;  %3809 = vrcp.f32 %v834_v33 }
 0x32f   : > { %v837_v38 = vadd.f32 1.0, %v3800_v36  ;;  %3811 = vrcp.f32 %v835_v35 }
 0x330   : > { %3813 = vrcp.f32 %v836_v37 }
 0x331   : > { %3815 = vrcp.f32 %v837_v38 }
 0x334   : > { %v3802_v39 = vpop.eup %3801 }
 0x335   : > { %v3804_v0 = vpop.eup %3803  ;;  %v854_v41 = vmul.f32 %v3802_v39, %v798_v61 }
 0x336   : > { %v3806_v42 = vpop.eup %3805  ;;  %v855_v43 = vmul.f32 %v3804_v0, %v799_v62  ;;  %865 = sbr.rel (%p4896_p6) target bundleno = 829 (0x33d), region = 68 }
 0x337   : > { %v3808_v44 = vpop.eup %3807  ;;  %v856_v45 = vmul.f32 %v3806_v42, %v800_v63 }
 0x338   : > { %v3810_v46 = vpop.eup %3809  ;;  %v857_v47 = vmul.f32 %v3808_v44, %v801_v2 }
 0x339   : > { %v3812_v48 = vpop.eup %3811  ;;  %v858_v49 = vmul.f32 %v3810_v46, %v802_v3 }
 0x33a   : > { %v3814_v50 = vpop.eup %3813  ;;  %v4391_v7 = vmul.f32 %v3812_v48, %v803_v4 }
 0x33b   : > { %v3816_v51 = vpop.eup %3815  ;;  %v4393_v9 = vmul.f32 %v3814_v50, %v804_v6 }
 0x33c   : > { %v4395_v52 = vmul.f32 %v3816_v51, %v805_v15 }
 0x33d PF: > { %v3817_v11 = vld [vmem:[#allocation6 + $0x40] sm:$0xff]   ;;  %v3251_v53 = vpack.c.bf16 %v854_v41, %v854_v41  ;;  %v3818_v17 = vld [vmem:[#allocation6 + $0x48] sm:$0xff]   ;;  %vm1001_vm5 = vcmask 519168   ;;  %vm1007_vm6 = vcmask 516096   ;;  %v3252_v55 = vpack.c.bf16 %v855_v43, %v855_v43  ;;  %v3819_v26 = vld [vmem:[#allocation6 + $0x50] sm:$0xff]   ;;  %s3259_s19 = sshll.u32 %s4091_s13, 9 }
 0x33e   : > { %3484 = vmatprep.subr.bf16.mxu0 %v3817_v11  ;;  %vm1002_vm7 = vsmask.f32 7938  ;;  %v1004_v30 = vld [vmem:[#allocation2 + $0x8] sm:$0xf]  ;;  %v3253_v57 = vpack.c.bf16 %v856_v45, %v856_v45  ;;  %vm1008_vm9 = vsmask.f32 256  ;;  %v3254_v6 = vpack.c.bf16 %v857_v47, %v857_v47  ;;  %s4816_s13 = scalar_lea.hbm %s4875_s9, %s3259_s19 }
 0x33f   : > { %v921_v54 = vshrl.u32 %v3251_v53, 16  ;;  %3485 = vmatpush3.bf16.msra.mxu0 %v3817_v11  ;;  %v924_v21 = vshll.u32 %v3251_v53, 16  ;;  %vm4413_vm8 = vmand %vm1001_vm5, %vm1002_vm7  ;;  %v1010_v59 = vld [vmem:[#allocation2 + $0xc] sm:$0x1]  ;;  %v4417_v60 = vld [vmem:[#allocation2 + $0x4] sm:$0x1]  ;;  %v3255_v12 = vpack.c.bf16 %v858_v49, %v858_v49  ;;  %v3256_v27 = vpack.c.bf16 %v4391_v7, %v4391_v7 }
 0x340   : > { %3486 = vmatprep.subr.bf16.mxu0 %v3818_v17  ;;  %vm4419_vm10 = vmand %vm1007_vm6, %vm1008_vm9  ;;  %v4423_v2 = vld [vmem:[#allocation2] sm:$0xe]  ;;  %vm1461_vm11 = vcmask 1042432   ;;  %vm1462_vm12 = vcmask 1046532   ;;  %v1466_v3 = vrot.slane %v4417_v60, 5  ;;  %v929_v4 = vshrl.u32 %v3252_v55, 16 }
 0x341   : > { %v923_v56 = vrot.slane %v921_v54, 7  ;;  %v3820_v13 = vld [vmem:[#allocation6 + $0x58] sm:$0xff]   ;;  %v932_v16 = vshll.u32 %v3252_v55, 16  ;;  %v937_v18 = vshrl.u32 %v3253_v57, 16  ;;  %v1013_v19 = vld [vmem:[#allocation2 + $0x10] sm:$0xf]  ;;  %v4435_v28 = vpack.c.bf16 %v4393_v9, %v4393_v9  ;;  %vm4445_vm13 = vmor %vm1461_vm11, %vm1462_vm12 }
 0x342   : > { %v931_v22 = vrot.slane %v929_v4, 7  ;;  %v940_v23 = vshll.u32 %v3253_v57, 16  ;;  %v1016_v24 = vld [vmem:[#allocation2 + $0x14] sm:$0x1]  ;;  %v1019_v25 = vld [vmem:[#allocation2 + $0x18] sm:$0xf]  ;;  %v4439_v20 = vpack.c.bf16 %v4395_v52, %v4395_v52 }
 0x343   : > { %v926_v61 = vor.u32 %v924_v21, %v923_v56  ;;  %v927_v62 = vrot.slane %v923_v56, 4  ;;  %3487 = vmatpush3.bf16.msra.mxu0 %v3818_v17  ;;  %v3127_v5 = vrot.slane %v4423_v2, 9  ;;  %v939_v8 = vrot.slane %v937_v18, 7  ;;  %v1022_v29 = vld [vmem:[#allocation2 + $0x1c] sm:$0x1]  ;;  %v4441_v35 = vld [vmem:[#allocation6 + $0x60] sm:$0xff]  }
 0x344   : > { %3488 = vmatprep.subr.bf16.mxu0 %v3819_v26  ;;  %v934_v31 = vor.u32 %v932_v16, %v931_v22  ;;  %v935_v32 = vrot.slane %v931_v22, 4  ;;  %v945_v33 = vshrl.u32 %v3254_v6, 16  ;;  %v948_v34 = vshll.u32 %v3254_v6, 16  ;;  %v1025_v0 = vld [vmem:[#allocation2 + $0x20] sm:$0xf]  ;;  %s2977_s20 = sshll.u32 %s4399_s14, 4  ;;  %s4818_s20 = int_to_ptr.vmem [resolvable:$true] %s2977_s20 }
 0x345   : > { %v1005_v14 = vsel %vm4413_vm8, %v926_v61, %v1004_v30  ;;  %v1011_v15 = vsel %vm4419_vm10, %v927_v62, %v1010_v59  ;;  %v942_v36 = vor.u32 %v940_v23, %v939_v8  ;;  %v943_v37 = vrot.slane %v939_v8, 4  ;;  %v1028_v45 = vld [vmem:[#allocation2 + $0x24] sm:$0x1]  ;;  %v1031_v46 = vld [vmem:[#allocation2 + $0x28] sm:$0xf]  ;;  %s2964_s22 = scalar_lea.sflag [#allocation5], %s4210_s18 }
 0x346   : > { %1006 = vst [vmem:[#allocation2 + $0x8] sm:$0xf] %v1005_v14  ;;  %1012 = vst [vmem:[#allocation2 + $0xc] sm:$0x1] %v1011_v15  ;;  %v953_v38 = vshrl.u32 %v3255_v12, 16  ;;  %v956_v39 = vshll.u32 %v3255_v12, 16  ;;  %v1014_v42 = vsel %vm4413_vm8, %v934_v31, %v1013_v19  ;;  %v1017_v43 = vsel %vm4419_vm10, %v935_v32, %v1016_v24 }
 0x347   : > { %3489 = vmatpush3.bf16.msra.mxu0 %v3819_v26  ;;  %v947_v44 = vrot.slane %v945_v33, 7  ;;  %v961_v47 = vshrl.u32 %v3256_v27, 16  ;;  %1015 = vst [vmem:[#allocation2 + $0x10] sm:$0xf] %v1014_v42  ;;  %1018 = vst [vmem:[#allocation2 + $0x14] sm:$0x1] %v1017_v43  ;;  %v1020_v48 = vsel %vm4413_vm8, %v942_v36, %v1019_v25  ;;  %v1023_v49 = vsel %vm4419_vm10, %v943_v37, %v1022_v29 }
 0x348   : > { %3490 = vmatprep.subr.bf16.mxu0 %v3820_v13  ;;  %v955_v50 = vrot.slane %v953_v38, 7  ;;  %v964_v7 = vshll.u32 %v3256_v27, 16  ;;  %1021 = vst [vmem:[#allocation2 + $0x18] sm:$0xf] %v1020_v48  ;;  %1024 = vst [vmem:[#allocation2 + $0x1c] sm:$0x1] %v1023_v49  ;;  %v1467_v54 = vsel %vm4445_vm13, %v3127_v5, %v1466_v3 }
 0x349   : > { %v950_v51 = vor.u32 %v948_v34, %v947_v44  ;;  %v951_v9 = vrot.slane %v947_v44, 4  ;;  %v1034_v52 = vld [vmem:[#allocation2 + $0x2c] sm:$0x1]  ;;  %v963_v10 = vrot.slane %v961_v47, 7  ;;  %v969_v11 = vshrl.u32 %v4435_v28, 16  ;;  %v3822_v37 = vld [vmem:[#allocation6 + $0x68] sm:$0xff]  }
 0x34a   : > { %v958_v21 = vor.u32 %v956_v39, %v955_v50  ;;  %v959_v55 = vrot.slane %v955_v50, 4  ;;  %v972_v26 = vshll.u32 %v4435_v28, 16  ;;  %v1037_v61 = vld [vmem:[#allocation2 + $0x30] sm:$0xf]  ;;  %v1040_v62 = vld [vmem:[#allocation2 + $0x34] sm:$0x1] }
 0x34b   : > { %3491 = vmatpush3.bf16.msra.mxu0 %v3820_v13  ;;  %v1026_v57 = vsel %vm4413_vm8, %v950_v51, %v1025_v0  ;;  %v1029_v59 = vsel %vm4419_vm10, %v951_v9, %v1028_v45  ;;  %v966_v4 = vor.u32 %v964_v7, %v963_v10  ;;  %v967_v6 = vrot.slane %v963_v10, 4  ;;  %v1043_v12 = vld [vmem:[#allocation2 + $0x38] sm:$0xf]  ;;  %v1046_v13 = vld [vmem:[#allocation2 + $0x3c] sm:$0x1]  ;;  %v3823_v9 = vld [vmem:[#allocation6 + $0x70] sm:$0xff]  }
 0x34c   : > { %3500 = vmatprep.subr.bf16.mxu0 %v4441_v35  ;;  %1027 = vst [vmem:[#allocation2 + $0x20] sm:$0xf] %v1026_v57  ;;  %1030 = vst [vmem:[#allocation2 + $0x24] sm:$0x1] %v1029_v59  ;;  %v1032_v2 = vsel %vm4413_vm8, %v958_v21, %v1031_v46  ;;  %v1035_v3 = vsel %vm4419_vm10, %v959_v55, %v1034_v52  ;;  %v971_v15 = vrot.slane %v969_v11, 7  ;;  %v977_v27 = vshrl.u32 %v4439_v20, 16 }
 0x34d   : > { %v4458_v53 = vld [vmem:[#allocation2 + $0xc] sm:$0x1]  ;;  %v1438_v17 = vld [vmem:[#allocation2 + $0x8] sm:$0xe]  ;;  %1033 = vst [vmem:[#allocation2 + $0x28] sm:$0xf] %v1032_v2  ;;  %v1038_v18 = vsel %vm4413_vm8, %v966_v4, %v1037_v61  ;;  %v1041_v19 = vsel %vm4419_vm10, %v967_v6, %v1040_v62 }
 0x34e   : > { %v3128_v56 = vrot.slane %v1438_v17, 9  ;;  %v1470_v30 = vrot.slane %v4458_v53, 5  ;;  %1036 = vst [vmem:[#allocation2 + $0x2c] sm:$0x1] %v1035_v3  ;;  %v4479_v22 = vld [vmem:[#allocation2 + $0x14] sm:$0x1]  ;;  %v974_v24 = vor.u32 %v972_v26, %v971_v15 }
 0x34f   : > { %v1439_v23 = vld [vmem:[#allocation2 + $0x10] sm:$0xe]  ;;  %v975_v25 = vrot.slane %v971_v15, 4  ;;  %1039 = vst [vmem:[#allocation2 + $0x30] sm:$0xf] %v1038_v18  ;;  %v1474_v31 = vrot.slane %v4479_v22, 5 }
 0x350   : > { %v1471_v14 = vsel %vm4445_vm13, %v3128_v56, %v1470_v30  ;;  %1042 = vst [vmem:[#allocation2 + $0x34] sm:$0x1] %v1041_v19  ;;  %v4483_v5 = vld [vmem:[#allocation2 + $0x1c] sm:$0x1]  ;;  %v1440_v8 = vld [vmem:[#allocation2 + $0x18] sm:$0xe]  ;;  %v1044_v33 = vsel %vm4413_vm8, %v974_v24, %v1043_v12 }
 0x351   : > { %v3135_v16 = vcombine.low %v1467_v54, %v1471_v14  ;;  %v3129_v28 = vrot.slane %v1439_v23, 9  ;;  %v3130_v32 = vrot.slane %v1440_v8, 9  ;;  %v1478_v29 = vrot.slane %v4483_v5, 5  ;;  %1045 = vst [vmem:[#allocation2 + $0x38] sm:$0xf] %v1044_v33  ;;  %v3832_v59 = vld [vmem:[#allocation6 + $0x20] sm:$0xff]  }
 0x352   : > { %v1047_v34 = vsel %vm4419_vm10, %v975_v25, %v1046_v13  ;;  %v4510_v17 = vrot.slane %v977_v27, 7  ;;  %v980_v54 = vshll.u32 %v4439_v20, 16  ;;  %v1049_v21 = vld [vmem:[#allocation2 + $0x40] sm:$0xf]  ;;  %v3824_v61 = vld [vmem:[#allocation6 + $0x78] sm:$0xff]   ;;  %3452 = vmatprep.subr.bf16.mxu1 %v3832_v59  ;;  %v3834_v3 = vld [vmem:[#allocation6 + $0x28] sm:$0xff]  }
 0x353   : > { %3492 = vmatprep.mubr.msk.bf16.mxu0 %vm403_vm1, %v3135_v16  ;;  %v1475_v36 = vsel %vm4445_vm13, %v3129_v28, %v1474_v31  ;;  %1048 = vst [vmem:[#allocation2 + $0x3c] sm:$0x1] %v1047_v34  ;;  %v1479_v38 = vsel %vm4445_vm13, %v3130_v32, %v1478_v29  ;;  %v4495_v39 = vld [vmem:[#allocation2 + $0x24] sm:$0x1]  ;;  %v1441_v0 = vld [vmem:[#allocation2 + $0x20] sm:$0xe]  ;;  %3453 = vmatpush3.bf16.msra.mxu1 %v3832_v59 }
 0x354   : > { %v3136_v42 = vcombine.low %v1475_v36, %v1479_v38  ;;  %v1442_v44 = vld [vmem:[#allocation2 + $0x28] sm:$0xe]  ;;  %v3131_v45 = vrot.slane %v1441_v0, 9  ;;  %v1482_v46 = vrot.slane %v4495_v39, 5  ;;  %v982_v57 = vor.u32 %v980_v54, %v4510_v17  ;;  %3454 = vmatprep.subr.bf16.mxu1 %v3834_v3  ;;  %v4524_v12 = vld [vmem:[#allocation2 + $0xc] sm:$0x1] }
 0x355   : > { %v4497_v43 = vld [vmem:[#allocation2 + $0x2c] sm:$0x1]  ;;  %v3132_v47 = vrot.slane %v1442_v44, 9  ;;  %v3825_v62 = vld [vmem:[#allocation2 + $0x8] ss:$8 sps:$4 sm:$0xff]   ;;  %v1798_v58 = vshll.u32 %v4524_v12, 16 }
 0x356   : > { %v1486_v48 = vrot.slane %v4497_v43, 5  ;;  %3493 = vmatmul.mubr.msk.bf16.vlgmr.msra.gmra.mrb[0].mxu0 %vm403_vm1, %v3136_v42  ;;  %v1483_v49 = vsel %vm4445_vm13, %v3131_v45, %v1482_v46  ;;  %v1443_v7 = vld [vmem:[#allocation2 + $0x30] sm:$0xe]  ;;  %v1050_v2 = vsel %vm4413_vm8, %v982_v57, %v1049_v21  ;;  %vm1079_vm14 = vsmask.f32 3328  ;;  %v3836_v8 = vld [vmem:[#allocation6 + $0x30] sm:$0xff]  }
 0x357   : > { %v4504_v50 = vld [vmem:[#allocation2 + $0x34] sm:$0x1]  ;;  %3501 = vmatpush3.bf16.msra.mxu0 %v4441_v35  ;;  %v3133_v52 = vrot.slane %v1443_v7, 9  ;;  %1051 = vst [vmem:[#allocation2 + $0x40] sm:$0xf] %v1050_v2  ;;  %v1800_v31 = vrot.slane %v1798_v58, 5  ;;  %3455 = vmatpush3.bf16.msra.mxu1 %v3834_v3 }
 0x358   : > { %v1487_v51 = vsel %vm4445_vm13, %v3132_v47, %v1486_v48  ;;  %v1490_v10 = vrot.slane %v4504_v50, 5  ;;  %3502 = vmatprep.subr.bf16.mxu0 %v3822_v37  ;;  %v1444_v26 = vld [vmem:[#allocation2 + $0x38] sm:$0xe]  ;;  %vm1080_vm15 = vsmask.f32 7440  ;;  %v3826_v16 = vld [vmem:[#allocation6 + $0x80] sm:$0xff]   ;;  %3456 = vmatprep.subr.bf16.mxu1 %v3836_v8 }
 0x359   : > { %v3137_v11 = vcombine.low %v1483_v49, %v1487_v51  ;;  %v3134_v56 = vrot.slane %v1444_v26, 9  ;;  %v1772_v6 = vld [vmem:[#allocation2 + $0x8] sm:$0xf]  ;;  %v1774_v13 = vld [vmem:[#allocation2 + $0x10] sm:$0xf]  ;;  %v1092_v33 = vshll.u32 %v4417_v60, 16  ;;  %vm4537_vm2 = vmor %vm1079_vm14, %vm1080_vm15 }
 0x35a   : > { %v4513_v55 = vld [vmem:[#allocation2 + $0x3c] sm:$0x1]  ;;  %v1491_v35 = vsel %vm4445_vm13, %v3133_v52, %v1490_v10  ;;  %v1789_v14 = vshrl.u32 %v1772_v6, 16  ;;  %v1792_v15 = vshll.u32 %v1772_v6, 16  ;;  %v4527_v18 = vld [vmem:[#allocation2 + $0x14] sm:$0x1] }
 0x35b   : > { %3496 = vmatprep.mubr.msk.bf16.mxu0 %vm403_vm1, %v3137_v11  ;;  %v1494_v30 = vrot.slane %v4513_v55, 5  ;;  %3503 = vmatpush3.bf16.msra.mxu0 %v3822_v37  ;;  %v1803_v19 = vshrl.u32 %v1774_v13, 16  ;;  %v1806_v23 = vshll.u32 %v1774_v13, 16  ;;  %v1812_v27 = vshll.u32 %v4527_v18, 16  ;;  %v3827_v28 = vld [vmem:[#allocation2 + $0x18] ss:$8 sps:$4 sm:$0xff]  }
 0x35c   : > { %3504 = vmatprep.subr.bf16.mxu0 %v3823_v9  ;;  %v1791_v24 = vrot.slane %v1789_v14, 4  ;;  %v1794_v25 = vrot.slane %v1792_v15, 5  ;;  %v3829_v34 = vld [vmem:[#allocation2 + $0x28] ss:$8 sps:$4 sm:$0xff]   ;;  %v1776_v38 = vld [vmem:[#allocation2 + $0x18] sm:$0xf]  ;;  %3457 = vmatpush3.bf16.msra.mxu1 %v3836_v8 }
 0x35d   : > { %v1495_v20 = vsel %vm4445_vm13, %v3134_v56, %v1494_v30  ;;  %v1805_v32 = vrot.slane %v1803_v19, 4  ;;  %v1808_v29 = vrot.slane %v1806_v23, 5  ;;  %v1814_v37 = vrot.slane %v1812_v27, 5  ;;  %v4533_v0 = vld [vmem:[#allocation2 + $0x1c] sm:$0x1]  ;;  %v3838_v42 = vld [vmem:[#allocation6 + $0x38] sm:$0xff]  }
 0x35e   : > { %v3138_v4 = vcombine.low %v1491_v35, %v1495_v20  ;;  %v1795_v36 = vor.u32 %v1794_v25, %v1791_v24  ;;  %v3828_v44 = vld [vmem:[#allocation6 + $0x88] sm:$0xff]   ;;  %v1778_v47 = vld [vmem:[#allocation2 + $0x20] sm:$0xf]  ;;  %v4541_v48 = vld [vmem:[#allocation2 + $0x24] sm:$0x1]  ;;  %v1817_v60 = vshrl.u32 %v1776_v38, 16  ;;  %3458 = vmatprep.subr.bf16.mxu1 %v3838_v42 }
 0x35f   : > { %3505 = vmatpush3.bf16.msra.mxu0 %v3823_v9  ;;  %v1809_v46 = vor.u32 %v1808_v29, %v1805_v32  ;;  %v1820_v49 = vshll.u32 %v1776_v38, 16  ;;  %v983_v7 = vrot.slane %v4510_v17, 4  ;;  %v1826_v9 = vshll.u32 %v4533_v0, 16  ;;  %v3830_v17 = vld [vmem:[#allocation6 + $0x90] sm:$0xff]   ;;  %v4555_v6 = vld [vmem:[#allocation2 + $0x2c] sm:$0x1] }
 0x360   : > { %3497 = vmatmul.mubr.msk.bf16.gmra.mrb[4].mxu0 %vm403_vm1, %v3138_v4  ;;  %3506 = vmatprep.subr.bf16.mxu0 %v3824_v61  ;;  %v1796_v51 = vrot.slane %v1795_v36, 4  ;;  %v1106_v52 = vshll.u32 %v4458_v53, 16  ;;  %v1819_v11 = vrot.slane %v1817_v60, 4  ;;  %v1831_v21 = vshrl.u32 %v1778_v47, 16  ;;  %v3831_v2 = vld [vmem:[#allocation2 + $0x38] ss:$8 sps:$4 sm:$0xff]  }
 0x361   : > { %3508 = vmatprep.mubr.msk.bf16.mxu0 %vm403_vm1, %v3825_v62  ;;  %v1810_v10 = vrot.slane %v1809_v46, 4  ;;  %v1822_v54 = vrot.slane %v1820_v49, 5  ;;  %v1828_v35 = vrot.slane %v1826_v9, 5  ;;  %v1834_v56 = vshll.u32 %v1778_v47, 16  ;;  %v1780_v4 = vld [vmem:[#allocation2 + $0x28] sm:$0xf]  ;;  %3459 = vmatpush3.bf16.msra.mxu1 %v3838_v42 }
 0x362   : > { %v1801_v26 = vsel %vm4537_vm2, %v1796_v51, %v1800_v31  ;;  %v1840_v30 = vshll.u32 %v4541_v48, 16  ;;  %v1833_v59 = vrot.slane %v1831_v21, 4  ;;  %v4557_v13 = vrot.slane %v1106_v52, 5  ;;  %v1782_v58 = vld [vmem:[#allocation2 + $0x30] sm:$0xf]  ;;  %v3833_v24 = vld [vmem:[#allocation6 + $0x98] sm:$0xff]  }
 0x363   : > { %3507 = vmatpush3.bf16.msra.mxu0 %v3824_v61  ;;  %v1815_v53 = vsel %vm4537_vm2, %v1810_v10, %v1814_v37  ;;  %v1823_v57 = vor.u32 %v1822_v54, %v1819_v11  ;;  %v4552_v61 = vrot.slane %v1092_v33, 5  ;;  %v1836_v62 = vrot.slane %v1834_v56, 5  ;;  %v4559_v19 = vld [vmem:[#allocation2 + $0x34] sm:$0x1]  ;;  %v1052_v42 = vld [vmem:[#allocation2 + $0x44] sm:$0x1] }
 0x364   : > { %3516 = vmatprep.subr.bf16.mxu0 %v3826_v16  ;;  %v1842_v20 = vrot.slane %v1840_v30, 5  ;;  %v3159_v14 = vcombine.low %v1801_v26, %v1815_v53  ;;  %v1845_v23 = vshrl.u32 %v1780_v4, 16  ;;  %v1854_v27 = vshll.u32 %v4555_v6, 16  ;;  %v4564_v31 = vld [vmem:[#allocation6] sm:$0xff]   ;;  %v1784_v51 = vld [vmem:[#allocation2 + $0x38] sm:$0xf] }
 0x365   : > { %v1824_v3 = vrot.slane %v1823_v57, 4  ;;  %v1837_v15 = vor.u32 %v1836_v62, %v1833_v59  ;;  %v1859_v8 = vshrl.u32 %v1782_v58, 16  ;;  %v1120_v46 = vshll.u32 %v4479_v22, 16  ;;  %3468 = vmatprep.subr.bf16.mxu1 %v4564_v31  ;;  %v4573_v9 = vld [vmem:[#allocation2 + $0x3c] sm:$0x1]  ;;  %v3835_v26 = vld [vmem:[#allocation6 + $0xa0] sm:$0xff]  }
 0x366   : > { %v1847_v29 = vrot.slane %v1845_v23, 4  ;;  %v1856_v36 = vrot.slane %v1854_v27, 5  ;;  %v1786_v11 = vld [vmem:[#allocation2 + $0x40] sm:$0xf]  ;;  %v1873_v22 = vshrl.u32 %v1784_v51, 16  ;;  %v1876_v54 = vshll.u32 %v1784_v51, 16 }
 0x367   : > { %v1829_v25 = vsel %vm4537_vm2, %v1824_v3, %v1828_v35  ;;  %v1838_v32 = vrot.slane %v1837_v15, 4  ;;  %v1861_v37 = vrot.slane %v1859_v8, 4  ;;  %v4576_v21 = vld [vmem:[#allocation2] sm:$0xf]  ;;  %v1882_v63 = vshll.u32 %v4573_v9, 16  ;;  %s3935_s24 = scalar_lea.vmem %s4818_s20, 512 }
 0x368   : > { %3509 = vmatmul.mubr.msk.bf16.vlgmr.msra.gmra.mrb[0].mxu0 %vm403_vm1, %v3827_v28  ;;  %v1862_v28 = vshll.u32 %v1782_v58, 16  ;;  %v1890_v56 = vshll.u32 %v1786_v11, 16  ;;  %v1875_v53 = vrot.slane %v1873_v22, 4  ;;  %v1878_v57 = vrot.slane %v1876_v54, 5  ;;  %v4580_v59 = vld [vmem:[#allocation2 + $0x8] sm:$0xf]  ;;  %p3936_p8 = scmp.ne.s32.totalorder %s4818_s20, %s3935_s24 }
 0x369   : > { %3517 = vmatpush3.bf16.msra.mxu0 %v3826_v16  ;;  %3512 = vmatprep.mubr.msk.bf16.mxu0 %vm403_vm1, %v3829_v34  ;;  %v1848_v16 = vshll.u32 %v1780_v4, 16  ;;  %v1868_v34 = vshll.u32 %v4559_v19, 16  ;;  %v1843_v47 = vsel %vm4537_vm2, %v1838_v32, %v1842_v20  ;;  %v1083_v62 = vshrl.u32 %v4576_v21, 16  ;;  %v4585_v4 = vld [vmem:[#allocation2 + $0x10] sm:$0xf]  ;;  %s4017_s26 = smov [#allocation8]  }
 0x36a   : > { %3518 = vmatprep.subr.bf16.mxu0 %v3828_v44  ;;  %v1864_v38 = vrot.slane %v1862_v28, 5  ;;  %v3160_v52 = vcombine.low %v1829_v25, %v1843_v47  ;;  %v1892_v3 = vrot.slane %v1890_v56, 5  ;;  %v1879_v58 = vor.u32 %v1878_v57, %v1875_v53  ;;  %v4590_v25 = vld [vmem:[#allocation2 + $0x18] sm:$0xf]  ;;  %p3937_p9 = pnand %p3936_p8, %p4162_p11 }
 0x36b   : > { %v1850_v33 = vrot.slane %v1848_v16, 5  ;;  %v1870_v49 = vrot.slane %v1868_v34, 5  ;;  %v1085_v23 = vrot.slane %v1083_v62, 4  ;;  %v1086_v16 = vshll.u32 %v4576_v21, 16 }
 0x36c   : > { %v1865_v10 = vor.u32 %v1864_v38, %v1861_v37  ;;  %v1097_v28 = vshrl.u32 %v4580_v59, 16  ;;  %v1100_v32 = vshll.u32 %v4580_v59, 16  ;;  %v1111_v34 = vshrl.u32 %v4585_v4, 16  ;;  %p3938_p13 = pneg %p3937_p9 }
 0x36d   : > { %3519 = vmatpush3.bf16.msra.mxu0 %v3828_v44  ;;  %v1851_v60 = vor.u32 %v1850_v33, %v1847_v29  ;;  %v1053_v44 = vsel %vm4419_vm10, %v983_v7, %v1052_v42  ;;  %v1887_v7 = vshrl.u32 %v1786_v11, 16  ;;  %v1880_v29 = vrot.slane %v1879_v58, 4  ;;  %v3839_v11 = vld [vmem:[#allocation6 + $0xb0] sm:$0xff]  }
 0x36e   : > { %3520 = vmatprep.subr.bf16.mxu0 %v3830_v17  ;;  %1054 = vst [vmem:[#allocation2 + $0x44] sm:$0x1] %v1053_v44  ;;  %v1866_v30 = vrot.slane %v1865_v10, 4  ;;  %v1088_v33 = vrot.slane %v1086_v16, 5  ;;  %v1099_v42 = vrot.slane %v1097_v28, 4  ;;  %v1102_v47 = vrot.slane %v1100_v32, 5 }
 0x36f   : > { %v1852_v35 = vrot.slane %v1851_v60, 4  ;;  %v1122_v60 = vrot.slane %v1120_v46, 5  ;;  %v1113_v51 = vrot.slane %v1111_v34, 4  ;;  %v2030_v10 = vld [vmem:[#allocation2 + $0x8] sm:$0xe]  ;;  %v1128_v46 = vshll.u32 %v4590_v25, 16 }
 0x370   : > { %3513 = vmatmul.mubr.msk.bf16.gmra.mrb[4].mxu0 %vm403_vm1, %v3831_v2  ;;  %v1889_v2 = vrot.slane %v1887_v7, 4  ;;  %v1871_v15 = vsel %vm4537_vm2, %v1866_v30, %v1870_v49  ;;  %v1089_v44 = vor.u32 %v1088_v33, %v1085_v23  ;;  %v1103_v22 = vor.u32 %v1102_v47, %v1099_v42  ;;  %v3841_v32 = vld [vmem:[#allocation6 + $0xb8] sm:$0xff]   ;;  %v3842_v42 = vld [vmem:[#allocation6 + $0x8] sm:$0xff]  }
 0x371   : > { %3521 = vmatpush3.bf16.msra.mxu0 %v3830_v17  ;;  %3524 = vmatprep.mubr.msk.bf16.mxu0 %vm403_vm1, %v3159_v14  ;;  %v1857_v20 = vsel %vm4537_vm2, %v1852_v35, %v1856_v36  ;;  %v1884_v17 = vrot.slane %v1882_v63, 5  ;;  %v3837_v14 = vld [vmem:[#allocation6 + $0xa8] sm:$0xff]   ;;  %v1114_v36 = vshll.u32 %v4585_v4, 16  ;;  %v1125_v35 = vshrl.u32 %v4590_v25, 16  ;;  %v2031_v63 = vld [vmem:[#allocation2 + $0x10] sm:$0xe] }
 0x372   : > { %3522 = vmatprep.subr.bf16.mxu0 %v3833_v24  ;;  %v3161_v27 = vcombine.low %v1857_v20, %v1871_v15  ;;  %v1893_v8 = vor.u32 %v1892_v3, %v1889_v2  ;;  %v1090_v7 = vrot.slane %v1089_v44, 4  ;;  %v1134_v56 = vshll.u32 %v4483_v5, 16  ;;  %v2032_v15 = vld [vmem:[#allocation2 + $0x18] sm:$0xe]  ;;  %v3843_v44 = vld [vmem:[#allocation6 + $0xc0] sm:$0xff]  }
 0x373   : > { %v1116_v54 = vrot.slane %v1114_v36, 5  ;;  %v3171_v30 = vrot.slane %v2030_v10, 9  ;;  %v1104_v53 = vrot.slane %v1103_v22, 4  ;;  %v1127_v62 = vrot.slane %v1125_v35, 4 }
 0x374   : > { %v1894_v38 = vrot.slane %v1893_v8, 4  ;;  %v1136_v2 = vrot.slane %v1134_v56, 5  ;;  %v2056_v3 = vrot.slane %v4524_v12, 5  ;;  %v4615_v8 = vld [vmem:[#allocation2 + $0x20] sm:$0xf]  ;;  %v2060_v12 = vrot.slane %v4527_v18, 5 }
 0x375   : > { %3523 = vmatpush3.bf16.msra.mxu0 %v3833_v24  ;;  %v4596_v37 = vld [vmem:[#allocation2 + $0x44] sm:$0x1]  ;;  %v1885_v24 = vsel %vm4537_vm2, %v1880_v29, %v1884_v17  ;;  %v1117_v57 = vor.u32 %v1116_v54, %v1113_v51  ;;  %v1095_v17 = vsel %vm4537_vm2, %v1090_v7, %v4552_v61  ;;  %v1109_v5 = vsel %vm4537_vm2, %v1104_v53, %v4557_v13  ;;  %v4644_v7 = vld [vmem:[#allocation2 + $0x38] sm:$0xf] }
 0x376   : > { %3532 = vmatprep.subr.bf16.mxu0 %v3835_v26  ;;  %v1896_v49 = vshll.u32 %v4596_v37, 16  ;;  %v3103_v28 = vcombine.low %v1095_v17, %v1109_v5  ;;  %v2057_v61 = vsel %vm4445_vm13, %v3171_v30, %v2056_v3  ;;  %v3172_v29 = vrot.slane %v2031_v63, 9  ;;  %v3845_v3 = vld [vmem:[#allocation6 + $0xc8] sm:$0xff]  }
 0x377   : > { %v1118_v23 = vrot.slane %v1117_v57, 4  ;;  %v3173_v34 = vrot.slane %v2032_v15, 9  ;;  %v2064_v36 = vrot.slane %v4533_v0, 5  ;;  %v1142_v10 = vshll.u32 %v4615_v8, 16  ;;  %v2035_v15 = vld [vmem:[#allocation2 + $0x30] sm:$0xe] }
 0x378   : > { %3525 = vmatmul.mubr.msk.bf16.vlgmr.msra.gmra.mrb[0].mxu0 %vm403_vm1, %v3160_v52  ;;  %v1898_v52 = vrot.slane %v1896_v49, 5  ;;  %3460 = vmatprep.mubr.msk.bf16.mxu1 %vm403_vm1, %v3103_v28  ;;  %v2061_v47 = vsel %vm4445_vm13, %v3172_v29, %v2060_v12  ;;  %v1139_v49 = vshrl.u32 %v4615_v8, 16  ;;  %v1162_v30 = vshll.u32 %v4497_v43, 16 }
 0x379   : > { %3533 = vmatpush3.bf16.msra.mxu0 %v3835_v26  ;;  %3528 = vmatprep.mubr.msk.bf16.mxu0 %vm403_vm1, %v3161_v27  ;;  %v1130_v26 = vrot.slane %v1128_v46, 5  ;;  %v2033_v27 = vld [vmem:[#allocation2 + $0x20] sm:$0xe]  ;;  %v1123_v33 = vsel %vm4537_vm2, %v1118_v23, %v1122_v60  ;;  %v3179_v0 = vcombine.low %v2057_v61, %v2061_v47  ;;  %v2065_v51 = vsel %vm4445_vm13, %v3173_v34, %v2064_v36  ;;  %v3846_v47 = vld [vmem:[#allocation6 + $0x18] sm:$0xff]  }
 0x37a   : > { %3534 = vmatprep.subr.bf16.mxu0 %v3837_v14  ;;  %v1899_v20 = vsel %vm4537_vm2, %v1894_v38, %v1898_v52  ;;  %v4625_v38 = vld [vmem:[#allocation2 + $0x30] sm:$0xf]  ;;  %v3174_v18 = vrot.slane %v2033_v27, 9  ;;  %v1141_v35 = vrot.slane %v1139_v49, 4  ;;  %v1144_v46 = vrot.slane %v1142_v10, 5 }
 0x37b   : > { %v3162_v58 = vcombine.low %v1885_v24, %v1899_v20  ;;  %v1131_v16 = vor.u32 %v1130_v26, %v1127_v62  ;;  %v2068_v24 = vrot.slane %v4541_v48, 5  ;;  %v1148_v48 = vshll.u32 %v4495_v39, 16  ;;  %v3844_v39 = vld [vmem:[#allocation6 + $0x10] sm:$0xff]   ;;  %v2034_v62 = vld [vmem:[#allocation2 + $0x28] sm:$0xe] }
 0x37c   : > { %v1167_v53 = vshrl.u32 %v4625_v38, 16  ;;  %v1170_v57 = vshll.u32 %v4625_v38, 16  ;;  %v1145_v26 = vor.u32 %v1144_v46, %v1141_v35  ;;  %v1181_v23 = vshrl.u32 %v4644_v7, 16 }
 0x37d   : > { %3535 = vmatpush3.bf16.msra.mxu0 %v3837_v14  ;;  %v4620_v14 = vld [vmem:[#allocation2 + $0x28] sm:$0xf]  ;;  %v1132_v13 = vrot.slane %v1131_v16, 4  ;;  %v2069_v54 = vsel %vm4445_vm13, %v3174_v18, %v2068_v24  ;;  %v1150_v56 = vrot.slane %v1148_v48, 5  ;;  %v3175_v12 = vrot.slane %v2034_v62, 9 }
 0x37e   : > { %3536 = vmatprep.subr.bf16.mxu0 %v3839_v11  ;;  %v1153_v63 = vshrl.u32 %v4620_v14, 16  ;;  %v1156_v52 = vshll.u32 %v4620_v14, 16  ;;  %v1169_v43 = vrot.slane %v1167_v53, 4  ;;  %v1172_v5 = vrot.slane %v1170_v57, 5  ;;  %v3853_v62 = vld [vmem:[#allocation2 + $0x20] ss:$8 sps:$4 sm:$0xff]  }
 0x37f   : > { %v1137_v60 = vsel %vm4537_vm2, %v1132_v13, %v1136_v2  ;;  %v1176_v2 = vshll.u32 %v4504_v50, 16  ;;  %v1146_v16 = vrot.slane %v1145_v26, 4  ;;  %v1183_v29 = vrot.slane %v1181_v23, 4  ;;  %v4687_v26 = vld [vmem:[#allocation2 + $0x14] sm:$0x1] }
 0x380   : > { %3529 = vmatmul.mubr.msk.bf16.gmra.mrb[4].mxu0 %vm403_vm1, %v3162_v58  ;;  %v3104_v22 = vcombine.low %v1123_v33, %v1137_v60  ;;  %v1155_v20 = vrot.slane %v1153_v63, 4  ;;  %v1158_v17 = vrot.slane %v1156_v52, 5  ;;  %v1164_v58 = vrot.slane %v1162_v30, 5  ;;  %v2037_v33 = vld [vmem:[#allocation2 + $0x40] sm:$0xe]  ;;  %v3850_v63 = vld [vmem:[#allocation6 + $0xd8] sm:$0xff]  }
 0x381   : > { %3537 = vmatpush3.bf16.msra.mxu0 %v3839_v11  ;;  %3540 = vmatprep.mubr.msk.bf16.mxu0 %vm403_vm1, %v3179_v0  ;;  %v3180_v11 = vcombine.low %v2065_v51, %v2069_v54  ;;  %v1178_v28 = vrot.slane %v1176_v2, 5  ;;  %v1173_v61 = vor.u32 %v1172_v5, %v1169_v43  ;;  %v1190_v50 = vshll.u32 %v4513_v55, 16  ;;  %v3847_v51 = vld [vmem:[#allocation6 + $0xd0] sm:$0xff]   ;;  %v4689_v2 = vld [vmem:[#allocation2 + $0x1c] sm:$0x1] }
 0x382   : > { %3538 = vmatprep.subr.bf16.mxu0 %v3841_v32  ;;  %3461 = vmatmul.mubr.msk.bf16.vlgmr.msra.gmra.mrb[8].mxu1 %vm403_vm1, %v3104_v22  ;;  %v1159_v27 = vor.u32 %v1158_v17, %v1155_v20  ;;  %v1151_v13 = vsel %vm4537_vm2, %v1146_v16, %v1150_v56  ;;  %v2072_v18 = vrot.slane %v4555_v6, 5  ;;  %v3176_v60 = vrot.slane %v2035_v15, 9  ;;  %v3851_v56 = vld [vmem:[#allocation2 + $0x10] ss:$8 sps:$4 sm:$0xff]  }
 0x383   : > { %3469 = vmatpush3.bf16.msra.mxu1 %v4564_v31  ;;  %v1184_v31 = vshll.u32 %v4644_v7, 16  ;;  %v1174_v24 = vrot.slane %v1173_v61, 4  ;;  %v1192_v49 = vrot.slane %v1190_v50, 5  ;;  %v2076_v0 = vrot.slane %v4559_v19, 5  ;;  %v2365_v20 = vld [vmem:[#allocation2 + $0x18] sm:$0xf] }
 0x384   : > { %3470 = vmatprep.subr.bf16.mxu1 %v3842_v42  ;;  %v1160_v34 = vrot.slane %v1159_v27, 4  ;;  %v2080_v35 = vrot.slane %v4573_v9, 5  ;;  %v2084_v46 = vrot.slane %v4596_v37, 5  ;;  %v3115_v37 = vcombine.low %v4576_v21, %v4580_v59  ;;  %v2363_v59 = vld [vmem:[#allocation2 + $0x10] sm:$0xf]  ;;  %v3856_v17 = vld [vmem:[#allocation6 + $0xe8] sm:$0xff]  }
 0x385   : > { %3539 = vmatpush3.bf16.msra.mxu0 %v3841_v32  ;;  %v2036_v32 = vld [vmem:[#allocation2 + $0x38] sm:$0xe]  ;;  %v1186_v36 = vrot.slane %v1184_v31, 5  ;;  %v1179_v6 = vsel %vm4537_vm2, %v1174_v24, %v1178_v28  ;;  %v2077_v54 = vsel %vm4445_vm13, %v3176_v60, %v2076_v0  ;;  %v3116_v21 = vcombine.low %v4585_v4, %v4590_v25  ;;  %v3857_v25 = vld [vmem:[%s4874_s8] sm:$0xff]  }
 0x386   : > { %3548 = vmatprep.subr.bf16.mxu0 %v3843_v44  ;;  %v1165_v55 = vsel %vm4537_vm2, %v1160_v34, %v1164_v58  ;;  %v3177_v10 = vrot.slane %v2036_v32, 9  ;;  %v2383_v15 = vshll.u32 %v2363_v59, 16  ;;  %v2389_v58 = vshll.u32 %v4687_v26, 16  ;;  %v3858_v23 = vld [vmem:[#allocation2 + $0x30] ss:$8 sps:$4 sm:$0xff]   ;;  %v3860_v34 = vld [vmem:[%s4874_s8 + $0x8] sm:$0xff]  }
 0x387   : > { %3471 = vmatpush3.bf16.msra.mxu1 %v3842_v42  ;;  %v1187_v42 = vor.u32 %v1186_v36, %v1183_v29  ;;  %v3105_v22 = vcombine.low %v1151_v13, %v1165_v55  ;;  %v2394_v43 = vshrl.u32 %v2365_v20, 16  ;;  %v3117_v5 = vcombine.low %v4615_v8, %v4620_v14  ;;  %v3859_v14 = vld [vmem:[#allocation6 + $0xf0] sm:$0xff]   ;;  %v2369_v13 = vld [vmem:[#allocation2 + $0x28] sm:$0xf] }
 0x388   : > { %3541 = vmatmul.mubr.msk.bf16.vlgmr.msra.gmra.mrb[0].mxu0 %vm403_vm1, %v3180_v11  ;;  %3472 = vmatprep.subr.bf16.mxu1 %v3844_v39  ;;  %v3178_v11 = vrot.slane %v2037_v33, 9  ;;  %v2081_v52 = vsel %vm4445_vm13, %v3177_v10, %v2080_v35  ;;  %v2397_v16 = vshll.u32 %v2365_v20, 16  ;;  %v2403_v4 = vshll.u32 %v4689_v2, 16  ;;  %v4702_v33 = vld [vmem:[#allocation2 + $0x24] sm:$0x1] }
 0x389   : > { %3549 = vmatpush3.bf16.msra.mxu0 %v3843_v44  ;;  %v2073_v44 = vsel %vm4445_vm13, %v3175_v12, %v2072_v18  ;;  %v1188_v48 = vrot.slane %v1187_v42, 4  ;;  %3464 = vmatprep.mubr.msk.bf16.mxu1 %vm403_vm1, %v3105_v22  ;;  %v2385_v28 = vrot.slane %v2383_v15, 5  ;;  %v2396_v31 = vrot.slane %v2394_v43, 4  ;;  %v2367_v12 = vld [vmem:[#allocation2 + $0x20] sm:$0xf]  ;;  %v3862_v22 = vld [vmem:[#allocation6 + $0xf8] sm:$0xff]  }
 0x38a   : > { %3550 = vmatprep.subr.bf16.mxu0 %v3845_v3  ;;  %v3181_v19 = vcombine.low %v2073_v44, %v2077_v54  ;;  %v2085_v9 = vsel %vm4445_vm13, %v3178_v11, %v2084_v46  ;;  %v2391_v32 = vrot.slane %v2389_v58, 5  ;;  %v2399_v61 = vrot.slane %v2397_v16, 5  ;;  %v3864_v58 = vld [vmem:[#allocation6 + $0x100] sm:$0xff]   ;;  %v3865_v43 = vld [vmem:[%s4874_s8 + $0x18] sm:$0xff]  }
 0x38b   : > { %3473 = vmatpush3.bf16.msra.mxu1 %v3844_v39  ;;  %v1193_v30 = vsel %vm4537_vm2, %v1188_v48, %v1192_v49  ;;  %v3182_v57 = vcombine.low %v2081_v52, %v2085_v9  ;;  %v3852_v39 = vld [vmem:[#allocation6 + $0xe0] sm:$0xff]   ;;  %v2405_v29 = vrot.slane %v2403_v4, 5  ;;  %v3118_v8 = vcombine.low %v4625_v38, %v4644_v7  ;;  %v3861_v7 = vld [vmem:[#allocation2 + $0x40] ss:$8 sps:$4 sm:$0xff]   ;;  %v2373_v9 = vld [vmem:[#allocation2 + $0x38] sm:$0xf] }
 0x38c   : > { %3474 = vmatprep.subr.bf16.mxu1 %v3846_v47  ;;  %3544 = vmatprep.mubr.msk.bf16.mxu0 %vm403_vm1, %v3181_v19  ;;  %v3106_v53 = vcombine.low %v1179_v6, %v1193_v30  ;;  %v2400_v36 = vor.u32 %v2399_v61, %v2396_v31  ;;  %v2408_v18 = vshrl.u32 %v2367_v12, 16  ;;  %v2411_v24 = vshll.u32 %v2367_v12, 16  ;;  %v3863_v6 = vld [vmem:[%s4874_s8 + $0x10] sm:$0xff]   ;;  %v2375_v31 = vld [vmem:[#allocation2 + $0x40] sm:$0xf] }
 0x38d   : > { %3551 = vmatpush3.bf16.msra.mxu0 %v3845_v3  ;;  %v2380_v3 = vshrl.u32 %v2363_v59, 16  ;;  %v2417_v38 = vshll.u32 %v4702_v33, 16  ;;  %v2422_v60 = vshrl.u32 %v2369_v13, 16  ;;  %v2425_v0 = vshll.u32 %v2369_v13, 16  ;;  %v4721_v52 = vld [vmem:[#allocation2 + $0x34] sm:$0x1] }
 0x38e   : > { %3552 = vmatprep.subr.bf16.mxu0 %v3847_v51  ;;  %3465 = vmatmul.mubr.msk.bf16.gmra.mrb[12].mxu1 %vm403_vm1, %v3106_v53  ;;  %v2401_v42 = vrot.slane %v2400_v36, 4  ;;  %v2410_v44 = vrot.slane %v2408_v18, 4  ;;  %v2453_v59 = vshll.u32 %v2373_v9, 16  ;;  %v2464_v13 = vshrl.u32 %v2375_v31, 16 }
 0x38f   : > { %3475 = vmatpush3.bf16.msra.mxu1 %v3846_v47  ;;  %3476 = vmatprep.mubr.msk.bf16.mxu1 %vm403_vm1, %v3115_v37  ;;  %v2382_v27 = vrot.slane %v2380_v3, 4  ;;  %v4708_v47 = vld [vmem:[#allocation2 + $0x2c] sm:$0x1]  ;;  %v2419_v10 = vrot.slane %v2417_v38, 5  ;;  %v2424_v35 = vrot.slane %v2422_v60, 4  ;;  %v2427_v48 = vrot.slane %v2425_v0, 5 }
 0x390   : > { %3545 = vmatmul.mubr.msk.bf16.gmra.mrb[4].mxu0 %vm403_vm1, %v3182_v57  ;;  %3596 = vmatprep.subr.bf16.mxu1 %v4015_v1  ;;  %v2431_v55 = vshll.u32 %v4708_v47, 16  ;;  %v2406_v11 = vsel %vm4537_vm2, %v2401_v42, %v2405_v29  ;;  %v4723_v37 = vld [vmem:[#allocation2 + $0x3c] sm:$0x1]  ;;  %v2455_v16 = vrot.slane %v2453_v59, 5  ;;  %v4739_v29 = vld [vmem:[#allocation2 + $0x44] sm:$0x1] }
 0x391   : > { %3553 = vmatpush3.bf16.msra.mxu0 %v3847_v51  ;;  %3556 = vmatprep.mubr.msk.bf16.mxu0 %vm403_vm1, %v3851_v56  ;;  %v2386_v50 = vor.u32 %v2385_v28, %v2382_v27  ;;  %v2413_v51 = vrot.slane %v2411_v24, 5  ;;  %v2428_v30 = vor.u32 %v2427_v48, %v2424_v35  ;;  %v2459_v15 = vshll.u32 %v4723_v37, 16  ;;  %v2621_v48 = vld [vmem:[#allocation2 + $0x10] sm:$0xe] }
 0x392   : > { %3554 = vmatprep.subr.bf16.mxu0 %v3850_v63  ;;  %v2433_v19 = vrot.slane %v2431_v55, 5  ;;  %v2473_v36 = vshll.u32 %v4739_v29, 16  ;;  %v2466_v0 = vrot.slane %v2464_v13, 4  ;;  %v2625_v59 = vld [vmem:[#allocation2 + $0x30] sm:$0xe]  ;;  %v2667_v45 = vrot.slane %v4723_v37, 5 }
 0x393   : > { %v2387_v49 = vrot.slane %v2386_v50, 4  ;;  %v2414_v46 = vor.u32 %v2413_v51, %v2410_v44  ;;  %v2429_v20 = vrot.slane %v2428_v30, 4  ;;  %v2461_v28 = vrot.slane %v2459_v15, 5  ;;  %v3866_v50 = vld [vmem:[#allocation6 + $0x108] sm:$0xff]  }
 0x394   : > { %v2475_v42 = vrot.slane %v2473_v36, 5  ;;  %v2655_v15 = vrot.slane %v4702_v33, 5  ;;  %v2663_v33 = vrot.slane %v4721_v52, 5  ;;  %v2671_v36 = vrot.slane %v4739_v29, 5 }
 0x395   : > { %3555 = vmatpush3.bf16.msra.mxu0 %v3850_v63  ;;  %v2392_v54 = vsel %vm4537_vm2, %v2387_v49, %v2391_v32  ;;  %v2371_v63 = vld [vmem:[#allocation2 + $0x30] sm:$0xf]  ;;  %v2434_v4 = vsel %vm4537_vm2, %v2429_v20, %v2433_v19  ;;  %v3867_v49 = vld [vmem:[%s4874_s8 + $0x20] sm:$0xff]   ;;  %v2622_v19 = vld [vmem:[#allocation2 + $0x18] sm:$0xe] }
 0x396   : > { %3564 = vmatprep.subr.bf16.mxu0 %v3852_v39  ;;  %3477 = vmatmul.mubr.msk.bf16.vlgmr.msra.gmra.mrb[8].mxu1 %vm403_vm1, %v3116_v21  ;;  %v3203_v56 = vcombine.low %v2392_v54, %v2406_v11  ;;  %v2436_v53 = vshrl.u32 %v2371_v63, 16  ;;  %v2439_v57 = vshll.u32 %v2371_v63, 16  ;;  %v2450_v21 = vshrl.u32 %v2373_v9, 16  ;;  %v3868_v54 = vld [vmem:[#allocation6 + $0x110] sm:$0xff]   ;;  %v3869_v9 = vld [vmem:[%s4874_s8 + $0x28] sm:$0xff]  }
 0x397   : > { %3480 = vmatprep.mubr.msk.bf16.mxu1 %vm403_vm1, %v3117_v5  ;;  %3597 = vmatpush3.bf16.msra.mxu1 %v3857_v25  ;;  %v2647_v11 = vrot.slane %v4687_v26, 5  ;;  %v3216_v30 = vrot.slane %v2622_v19, 9 }
 0x398   : > { %3557 = vmatmul.mubr.msk.bf16.vlgmr.msra.gmra.mrb[0].mxu0 %vm403_vm1, %v3853_v62  ;;  %3598 = vmatprep.subr.bf16.mxu1 %v4015_v1  ;;  %v2445_v62 = vshll.u32 %v4721_v52, 16  ;;  %v2441_v3 = vrot.slane %v2439_v57, 5  ;;  %v2623_v57 = vld [vmem:[#allocation2 + $0x20] sm:$0xe]  ;;  %v3872_v52 = vld [vmem:[%s4874_s8 + $0x38] sm:$0xff]  }
 0x399   : > { %3565 = vmatpush3.bf16.msra.mxu0 %v3852_v39  ;;  %3560 = vmatprep.mubr.msk.bf16.mxu0 %vm403_vm1, %v3858_v23  ;;  %v2415_v39 = vrot.slane %v2414_v46, 4  ;;  %v2452_v23 = vrot.slane %v2450_v21, 4  ;;  %v2651_v46 = vrot.slane %v4689_v2, 5  ;;  %v2807_v21 = vld [vmem:[%s379_s23] sm:$0x1]  ;;  %s3939_s23 = sshll.u32 %s4017_s26, 4  ;;  %s3940_s23 = int_to_ptr.vmem [resolvable:$false] %s3939_s23 }
 0x39a   : > { %3566 = vmatprep.subr.bf16.mxu0 %v3856_v17  ;;  %v2447_v27 = vrot.slane %v2445_v62, 5  ;;  %s3941_s16 = scalar_lea.vmem %s3940_s23, 1024  ;;  %p3942_p3 = scmp.lt.s32.totalorder %s4818_s20, %s3940_s23 }
 0x39b   : > { %3599 = vmatpush3.bf16.msra.mxu1 %v3860_v34  ;;  %v2420_v5 = vsel %vm4537_vm2, %v2415_v39, %v2419_v10  ;;  %v2456_v61 = vor.u32 %v2455_v16, %v2452_v23  ;;  %v2467_v34 = vshll.u32 %v2375_v31, 16  ;;  %v2624_v39 = vld [vmem:[#allocation2 + $0x28] sm:$0xe]  ;;  %v2652_v62 = vsel %vm4445_vm13, %v3216_v30, %v2651_v46  ;;  %p3943_p7 = scmp.lt.s32.totalorder %s3941_s16, %s3935_s24 }
 0x39c   : > { %3600 = vmatprep.subr.bf16.mxu1 %v4015_v1  ;;  %v3204_v32 = vcombine.low %v2420_v5, %v2434_v4  ;;  %v3218_v5 = vrot.slane %v2624_v39, 9  ;;  %v2659_v23 = vrot.slane %v4708_v47, 5  ;;  %v3235_v16 = vmul.f32 -1.442695, %v2807_v21 }
 0x39d   : > { %3567 = vmatpush3.bf16.msra.mxu0 %v3856_v17  ;;  %v2438_v17 = vrot.slane %v2436_v53, 4  ;;  %v2457_v18 = vrot.slane %v2456_v61, 4  ;;  %v2469_v55 = vrot.slane %v2467_v34, 5  ;;  %v2627_v61 = vld [vmem:[#allocation2 + $0x40] sm:$0xe]  ;;  %p3944_p10 = por %p3943_p7, %p3942_p3 }
 0x39e   : > { %3568 = vmatprep.subr.bf16.mxu0 %v3859_v14  ;;  %3481 = vmatmul.mubr.msk.bf16.gmra.mrb[12].mxu1 %vm403_vm1, %v3118_v8  ;;  %v2377_v8 = vld [vmem:[#allocation2 + $0x48] sm:$0xf]  ;;  %3873 = vpow2.f32 %v3235_v16  ;;  %v3221_v13 = vrot.slane %v2627_v61, 9 }
 0x39f   : > { %3601 = vmatpush3.bf16.msra.mxu1 %v3863_v6  ;;  %v2442_v25 = vor.u32 %v2441_v3, %v2438_v17  ;;  %3612 = vmatprep.mubr.msk.bf16.mxu1 %vm4014_vm0, %v4015_v1  ;;  %v2478_v24 = vshrl.u32 %v2377_v8, 16  ;;  %v2481_v38 = vshll.u32 %v2377_v8, 16  ;;  %v2462_v44 = vsel %vm4537_vm2, %v2457_v18, %v2461_v28  ;;  %p3945_p2 = pnand %p3944_p10, %p3938_p13 }
 0x3a0   : > { %3561 = vmatmul.mubr.msk.bf16.gmra.mrb[4].mxu0 %vm403_vm1, %v3861_v7  ;;  %3602 = vmatprep.subr.bf16.mxu1 %v4015_v1  ;;  %v2470_v35 = vor.u32 %v2469_v55, %v2466_v0  ;;  %v3217_v3 = vrot.slane %v2623_v57, 9  ;;  %v3219_v28 = vrot.slane %v2625_v59, 9 }
 0x3a1   : > { %3569 = vmatpush3.bf16.msra.mxu0 %v3859_v14  ;;  %3572 = vmatprep.mubr.msk.bf16.mxu0 %vm403_vm1, %v3203_v56  ;;  %v4741_v14 = vld [vmem:[#allocation2 + $0x4c] sm:$0x1]  ;;  %v2443_v12 = vrot.slane %v2442_v25, 4  ;;  %v2480_v51 = vrot.slane %v2478_v24, 4  ;;  %v2483_v10 = vrot.slane %v2481_v38, 5  ;;  %v3215_v56 = vrot.slane %v2621_v48, 9 }
 0x3a2   : > { %3570 = vmatprep.subr.bf16.mxu0 %v3862_v22  ;;  %v2487_v7 = vshll.u32 %v4741_v14, 16  ;;  %v2471_v53 = vrot.slane %v2470_v35, 4  ;;  %v3870_v25 = vld [vmem:[#allocation6 + $0x118] sm:$0xff]   ;;  %v2656_v47 = vsel %vm4445_vm13, %v3217_v3, %v2655_v15  ;;  %v2664_v37 = vsel %vm4445_vm13, %v3219_v28, %v2663_v33 }
 0x3a3   : > { %3603 = vmatpush3.bf16.msra.mxu1 %v3865_v43  ;;  %v2448_v60 = vsel %vm4537_vm2, %v2443_v12, %v2447_v27  ;;  %v2484_v63 = vor.u32 %v2483_v10, %v2480_v51  ;;  %v2648_v2 = vsel %vm4445_vm13, %v3215_v56, %v2647_v11  ;;  %v3871_v27 = vld [vmem:[%s4874_s8 + $0x30] sm:$0xff]   ;;  %v2675_v24 = vrot.slane %v4741_v14, 5 }
 0x3a4   : > { %3604 = vmatprep.subr.bf16.mxu1 %v4015_v1  ;;  %v3205_v6 = vcombine.low %v2448_v60, %v2462_v44  ;;  %v2476_v20 = vsel %vm4537_vm2, %v2471_v53, %v2475_v42  ;;  %v3223_v17 = vcombine.low %v2648_v2, %v2652_v62 }
 0x3a5   : > { %3571 = vmatpush3.bf16.msra.mxu0 %v3862_v22  ;;  %v2489_v22 = vrot.slane %v2487_v7, 5  ;;  %v2485_v26 = vrot.slane %v2484_v63, 4  ;;  %v2672_v7 = vsel %vm4445_vm13, %v3221_v13, %v2671_v36 }
 0x3a6   : > { %3580 = vmatprep.subr.bf16.mxu0 %v3864_v58 }
 0x3a7   : > { %3605 = vmatpush3.bf16.msra.mxu1 %v3867_v49  ;;  %v2490_v43 = vsel %vm4537_vm2, %v2485_v26, %v2489_v22 }
 0x3a8   : > { %3573 = vmatmul.mubr.msk.bf16.vlgmr.msra.gmra.mrb[0].mxu0 %vm403_vm1, %v3204_v32  ;;  %3606 = vmatprep.subr.bf16.mxu1 %v4015_v1  ;;  %v3206_v4 = vcombine.low %v2476_v20, %v2490_v43  ;;  %v2660_v32 = vsel %vm4445_vm13, %v3218_v5, %v2659_v23  ;;  %v3874_v38 = vpop.eup %3873 }
 0x3a9   : > { %3581 = vmatpush3.bf16.msra.mxu0 %v3864_v58  ;;  %3576 = vmatprep.mubr.msk.bf16.mxu0 %vm403_vm1, %v3205_v6  ;;  %v2626_v58 = vld [vmem:[#allocation2 + $0x38] sm:$0xe]  ;;  %v3224_v12 = vcombine.low %v2656_v47, %v2660_v32  ;;  %v2811_v49 = vadd.f32 1.0, %v3874_v38 }
 0x3aa   : > { %3582 = vmatprep.subr.bf16.mxu0 %v3866_v50  ;;  %v3220_v31 = vrot.slane %v2626_v58, 9 }
 0x3ab   : > { %3607 = vmatpush3.bf16.msra.mxu1 %v3869_v9  ;;  %3875 = vrcp.f32 %v2811_v49 }
 0x3ac   : > { %3608 = vmatprep.subr.bf16.mxu1 %v4015_v1  ;;  %v2668_v8 = vsel %vm4445_vm13, %v3220_v31, %v2667_v45 }
 0x3ad   : > { %3583 = vmatpush3.bf16.msra.mxu0 %v3866_v50  ;;  %v2628_v50 = vld [vmem:[#allocation2 + $0x48] sm:$0xe]  ;;  %v3225_v34 = vcombine.low %v2664_v37, %v2668_v8 }
 0x3ae   : > { %3584 = vmatprep.subr.bf16.mxu0 %v3868_v54  ;;  %v3222_v18 = vrot.slane %v2628_v50, 9 }
 0x3af   : > { %3609 = vmatpush3.bf16.msra.mxu1 %v3871_v27 }
 0x3b0   : > { %3577 = vmatmul.mubr.msk.bf16.gmra.mrb[4].mxu0 %vm403_vm1, %v3206_v4  ;;  %3610 = vmatprep.subr.bf16.mxu1 %v4015_v1  ;;  %v2676_v1 = vsel %vm4445_vm13, %v3222_v18, %v2675_v24 }
 0x3b1   : > { %3585 = vmatpush3.bf16.msra.mxu0 %v3868_v54  ;;  %3588 = vmatprep.mubr.msk.bf16.mxu0 %vm403_vm1, %v3223_v17  ;;  %v3226_v60 = vcombine.low %v2672_v7, %v2676_v1 }
 0x3b2   : > { %3586 = vmatprep.subr.bf16.mxu0 %v3870_v25 }
 0x3b3   : > { %3611 = vmatpush3.bf16.msra.mxu1 %v3872_v52 }
 0x3b5   : > { %3587 = vmatpush3.bf16.msra.mxu0 %v3870_v25  ;;  %v3876_v29 = vpop.eup %3875 }
 0x3b6   : > { %v2814_v0 = vmul.f32 %v3876_v29, %v2807_v21  ;;  %v3244_v21 = vld [vmem:[%s4872_s6] ss:$0 sm:$0xff] }
 0x3b8   : > { %3589 = vmatmul.mubr.msk.bf16.vlgmr.msra.gmra.mrb[0].mxu0 %vm403_vm1, %v3224_v12  ;;  %v2815_v14 = vpack.c.bf16 %v2814_v0, %v2814_v0 }
 0x3b9   : > { %3592 = vmatprep.mubr.msk.bf16.mxu0 %vm403_vm1, %v3225_v34 }
 0x3ba   : > { %3613 = vmatmul.mubr.bf16.vlgmr.msra.gmra.mrb[16].mxu1 %v2815_v14 }
 0x3c0   : > { %3593 = vmatmul.mubr.msk.bf16.gmra.mrb[4].mxu0 %vm403_vm1, %v3226_v60 }
 0x469   : > { %v3478_v55 = vpop.f32.mrb[8].mxu1 }
 0x46a   : > { %v1406_v42 = vpop.f32.mrb[9].mxu1 }
 0x46b   : > { %v3479_v44 = vpop.f32.mrb[10].mxu1 }
 0x46c   : > { %v1409_v51 = vpop.f32.mrb[11].mxu1 }
 0x471   : > { %v3482_v10 = vpop.f32.mrb[12].mxu1 }
 0x472   : > { %v1422_v22 = vpop.f32.mrb[13].mxu1 }
 0x473   : > { %v3483_v6 = vpop.f32.mrb[14].mxu1 }
 0x474   : > { %v1425_v54 = vpop.f32.mrb[15].mxu1 }
 0x48b   : > { %v3590_v35 = vpop.f32.mrb[0].mxu0 }
 0x48c   : > { %v3652_v41 = vadd.f32 %v3590_v35, %v3478_v55  ;;  %v2768_v48 = vpop.f32.mrb[1].mxu0 }
 0x48d   : > { %v3653_v19 = vadd.f32 %v2768_v48, %v1406_v42  ;;  %v3591_v11 = vpop.f32.mrb[2].mxu0  ;;  %v2914_v43 = vpop.f32.mrb[16].mxu1 }
 0x48e   : > { %v3654_v46 = vadd.f32 %v3591_v11, %v3479_v44  ;;  %v2771_v63 = vpop.f32.mrb[3].mxu0  ;;  %v2929_v15 = vadd.f32 %v3652_v41, %v3244_v21  ;;  %v2938_v16 = vrot.slane %v2914_v43, %v4373_v40  ;;  %v3614_v4 = vpop.f32.mrb[17].mxu1 }
 0x48f   : > { %v3655_v56 = vadd.f32 %v2771_v63, %v1409_v51  ;;  %v2927_v59 = vadd.f32 %v3653_v19, %v3244_v21  ;;  %v2917_v25 = vpop.f32.mrb[18].mxu1 }
 0x490   : > { %v2930_v58 = vadd.f32 %v3654_v46, %v3244_v21  ;;  %v3615_v45 = vpop.f32.mrb[19].mxu1  ;;  %v2941_v61 = vadd.f32 %v2938_v16, %v2929_v15 }
 0x491   : > { %v2928_v20 = vadd.f32 %v3655_v56, %v3244_v21  ;;  %v2939_v27 = vadd.f32 %v2938_v16, %v2927_v59 }
 0x492   : > { %v2942_v52 = vadd.f32 %v2938_v16, %v2930_v58 }
 0x493   : > { %v3594_v30 = vpop.f32.mrb[4].mxu0  ;;  %v2940_v28 = vadd.f32 %v2938_v16, %v2928_v20 }
 0x494   : > { %v3656_v9 = vadd.f32 %v3594_v30, %v3482_v10  ;;  %v2784_v53 = vpop.f32.mrb[5].mxu0  ;;  %v3268_v50 = vpack.c.bf16 %v2942_v52, %v2941_v61 }
 0x495   : > { %v3657_v57 = vadd.f32 %v2784_v53, %v1422_v22  ;;  %v3595_v39 = vpop.f32.mrb[6].mxu0  ;;  %v3263_v40 = vpack.c.bf16 %v2940_v28, %v2939_v27 }
 0x496   : > { %v3658_v26 = vadd.f32 %v3595_v39, %v3483_v6  ;;  %v2787_v2 = vpop.f32.mrb[7].mxu0  ;;  %v2933_v17 = vadd.f32 %v3656_v9, %v3244_v21  ;;  %3280 = vst [vmem:[%s4399_s14 + $0x8] sm:$0xff] %v3268_v50  }
 0x497   : > { %v3659_v62 = vadd.f32 %v2787_v2, %v1425_v54  ;;  %v2931_v3 = vadd.f32 %v3657_v57, %v3244_v21  ;;  %3264 = vst [vmem:[%s4399_s14] sm:$0xff] %v3263_v40  }
 0x498   : > { %v2934_v5 = vadd.f32 %v3658_v26, %v3244_v21  ;;  %v2945_v33 = vadd.f32 %v2938_v16, %v2933_v17 }
 0x499   : > { %v2932_v23 = vadd.f32 %v3659_v62, %v3244_v21  ;;  %v2943_v31 = vadd.f32 %v2938_v16, %v2931_v3 }
 0x49a   : > { %v2946_v47 = vadd.f32 %v2938_v16, %v2934_v5 }
 0x49b   : > { %v2944_v32 = vadd.f32 %v2938_v16, %v2932_v23 }
 0x49c   : > { %v3278_v37 = vpack.c.bf16 %v2946_v47, %v2945_v33 }
 0x49d   : > { %v3273_v8 = vpack.c.bf16 %v2944_v32, %v2943_v31 }
 0x49e   : > { %3282 = vst [vmem:[%s4399_s14 + $0x18] sm:$0xff] %v3278_v37  }
 0x49f   : > { %3281 = vst [vmem:[%s4399_s14 + $0x10] sm:$0xff] %v3273_v8  }
 0x4a0   : > { %3948 = shalt.err (!%p3945_p2)
}
 0x4a1   : > { %s3949_s14 = scalar_lea.hbm %s4816_s13, 512  ;;  %s3953_s27 = scalar_lea.hbm %s4875_s9, 1024 }
 0x4a2   : > { %p3950_p0 = scmp.ne.s32.totalorder %s4816_s13, %s3949_s14  ;;  %p3954_p1 = scmp.lt.u32.totalorder %s4816_s13, %s4875_s9 }
 0x4a3   : > { %p3955_p4 = scmp.lt.u32.totalorder %s3953_s27, %s3949_s14  ;;  %p3957_p8 = scmp.lt.u32.totalorder %s3949_s14, %s4816_s13 }
 0x4a4   : > { %p3951_p5 = pnand %p3950_p0, %p4162_p11 }
 0x4a5   : > { %p3956_p6 = por %p3955_p4, %p3954_p1 }
 0x4a6   : > { %p3952_p12 = pneg %p3951_p5 }
 0x4a7   : > { %p3958_p9 = por %p3957_p8, %p3956_p6 }
 0x4a9   : > { %p3959_p13 = pnand %p3958_p9, %p3952_p12 }
 0x4ab   : > { %3962 = shalt.err (!%p3959_p13)
}
 0x4ac   : > { %s4018_s15 = smov 64   ;;  %s4019_s24 = smov 4  }
 0x4ad   : > { %3722 = dma.vmem_to_hbm [thread:$0]  (%p4162_p11), %s4818_s20, 512, %s4816_s13, %s2964_s22, %s4018_s15, %s4018_s15, %s4019_s24  }
 0x4ae PF: > { %s4905_s26 = sld [smem:[#allocation12_spill]]  ;;  %s2992_s23 = sand.u32 1, %s3993_s30  }
 0x4af   : > { %p4907_p7 = scmp.ge.s32.totalorder %s4005_s12, 2  ;;  %s2993_s16 = scalar_lea.sflag [#allocation5], %s2992_s23 }
 0x4b4   : > { %p4906_p3 = scmp.ne.s32.totalorder %s4905_s26, 0 }
 0x4b6   : > { %p3733_p10 = pnand %p4907_p7, %p4906_p3 }
 0x4b8   : > { %3988 = dma.done.wait (!%p3733_p10), %s2993_s16, 512  }
 0x4b9   : > { %3990 = vsyncadd (!%p3733_p10), %s2993_s16, 4294966784  ;;  %s4908_s12 = sld [smem:[#allocation13_spill]]  ;;  %s4909_s30 = smov %s3997_s10 }
 0x4ba   : > { %s4910_s10 = smov %s4001_s11  ;;  %s4911_s11 = smov %s4158_s28 }
 0x4bf   : > { %p23_p2 = scmp.ge.s32.totalorder %s4908_s12, 4  }
 0x4c1   :  { %25 = sbr.rel (!%p23_p2) target bundleno = 6 (0x6), region = 122 }
 0x4c8   :  { %2998 = vsyncpa [#allocation4], 1 }
 0x4c9   :  { %3000 = vsyncpa [#allocation4 + $0x1], 1 }
 0x4ca   :  { %3001 = vsyncpa [#allocation7], 1 }
 0x4cb   :  { %3002 = vsyncpa [#allocation5], 1 }
 0x4cc   :  { %3004 = vsyncpa [#allocation5 + $0x1], 1 }

</bundles_post_ra>
